<compile_context>
chip_gen: v6e
topology: v6e:2x2x1
jax: 0.10.0
libtpu: 0.0.40
codegen_flags: <defaults>
</compile_context>

<pallas_src>
import math

import jax
import jax.numpy as jnp
from jax import lax
from jax.experimental import pallas as pl
from jax.experimental.pallas import tpu as pltpu

# Scaled-down shapes consistent with the module
# (original: input=1024, hidden=2048, num_layers=4, time_steps=16).
INPUT_SIZE = 128
HIDDEN_SIZE = 128
NUM_LAYERS = 2
TIME_STEPS = 8
BATCH = 8


def _make_fused_lstm_kernel(num_layers, T, B, H):
    """Builds a kernel computing the full stacked-LSTM forward in VMEM.

    Ref layout (all full arrays, VMEM resident):
      refs[0]                      x      (T*B, D_in)  bf16, row = t*B + b
      refs[1 : 1+3L]               per layer: wih_t (D_in,4H) bf16,
                                              whh_t (H,4H)   bf16,
                                              b     (1,4H)   f32 (b_ih+b_hh)
                                   gate column order: (i, f, o, g)
      refs[1+3L]                   out    (T*B, H)     f32 (time-major)
      refs[2+3L], refs[3+3L]       scratch: gates (T*B,4H) f32, seq (T*B,H) bf16
    """

    def kernel(*refs):
        x_ref = refs[0]
        w_refs = refs[1:1 + 3 * num_layers]
        out_ref = refs[1 + 3 * num_layers]
        gates_sc = refs[2 + 3 * num_layers]
        seq_sc = refs[3 + 3 * num_layers]

        layer_in = x_ref
        for l in range(num_layers):
            wih_ref = w_refs[3 * l + 0]
            whh_ref = w_refs[3 * l + 1]
            b_ref = w_refs[3 * l + 2]
            dst_ref = out_ref if l == num_layers - 1 else seq_sc

            # Batched input projection for the whole sequence: one big MXU
            # matmul per layer; bias broadcast hoisted out of the time loop.
            gates_sc[...] = (
                jnp.dot(layer_in[...], wih_ref[...],
                        preferred_element_type=jnp.float32)
                + b_ref[...])

            # Hoist the recurrent weight read out of the unrolled loop: one
            # (H, 4H) VMEM load per layer instead of one per step.
            whh = whh_ref[...]

            def step(t, carry):
                h, c = carry
                row = pl.multiple_of(t * B, B)
                # Recurrent half of the gates: (B,H) @ (H,4H) on the MXU.
                gates = (gates_sc[pl.ds(row, B), :]
                         + jnp.dot(h.astype(jnp.bfloat16), whh,
                                   preferred_element_type=jnp.float32))
                # Gate column order was permuted to (i, f, o, g) at parameter
                # prep time -> one contiguous sigmoid over [:, :3H] and one
                # tanh over [:, 3H:].  sigmoid(x) = 0.5*(tanh(0.5x)+1) is a
                # single EUP pass (no exp + exact divide) on the serial path.
                sig = 0.5 * (jnp.tanh(0.5 * gates[:, 0:3 * H]) + 1.0)
                i_g = sig[:, 0 * H:1 * H]
                f_g = sig[:, 1 * H:2 * H]
                o_g = sig[:, 2 * H:3 * H]
                g_g = jnp.tanh(gates[:, 3 * H:4 * H])
                c_new = f_g * c + i_g * g_g
                h_new = o_g * jnp.tanh(c_new)
                dst_ref[pl.ds(row, B), :] = h_new.astype(dst_ref.dtype)
                return h_new, c_new

            h0 = jnp.zeros((B, H), jnp.float32)
            c0 = jnp.zeros((B, H), jnp.float32)
            # Short fixed trip count -> fully unroll for scheduler visibility.
            lax.fori_loop(0, T, step, (h0, c0), unroll=True)

            # Next layer consumes this layer's full h sequence (still in VMEM).
            layer_in = dst_ref

    return kernel


def _flatten_params(params):
    flat = []
    for p in params:
        flat += [p["wih_t"], p["whh_t"], p["b"]]
    return flat


@jax.jit
def _fused_lstm(params, x):
    """Runs the fused kernel. x: (B, T, D) f32 -> (T, B, H) f32 (time-major)."""
    B, T, D = x.shape
    H = params[0]["whh_t"].shape[0]
    num_layers = len(params)

    # Time-major flatten: row index = t*B + b, so each step's B rows form one
    # aligned sublane block inside the kernel.  Pre-cast to bf16: the MXU
    # consumes bf16 anyway and the f32 copy is never used again.
    x_flat = jnp.transpose(x, (1, 0, 2)).reshape(T * B, D).astype(jnp.bfloat16)

    vmem = pl.BlockSpec(memory_space=pltpu.MemorySpace.VMEM)
    n_in = 1 + 3 * num_layers

    out_flat = pl.pallas_call(
        _make_fused_lstm_kernel(num_layers, T, B, H),
        out_shape=jax.ShapeDtypeStruct((T * B, H), jnp.float32),
        in_specs=[vmem] * n_in,
        out_specs=vmem,
        scratch_shapes=[
            pltpu.VMEM((T * B, 4 * H), jnp.float32),   # per-layer x-projection gates
            pltpu.VMEM((T * B, H), jnp.bfloat16),      # inter-layer h sequence
        ],
    )(x_flat, *_flatten_params(params))

    # Stay time-major; per-step slicing happens in model_forward (no transpose).
    return out_flat.reshape(T, B, H)


def model_forward(params, x):
    """Mirrors Model.forward: list of (B, 1, H) outputs, one per time step."""
    out_tm = _fused_lstm(params, x)       # (T, B, H), time-major
    T = out_tm.shape[0]
    return [out_tm[t][:, None, :] for t in range(T)]


def init_lstm_params(key, input_size, hidden_size, num_layers):
    """Deterministic f32 init matching PyTorch nn.LSTM parameter shapes/order."""
    params = []
    stdv = 1.0 / math.sqrt(hidden_size)
    for layer in range(num_layers):
        d_in = input_size if layer == 0 else hidden_size
        key, k1, k2, k3, k4 = jax.random.split(key, 5)
        params.append({
            "w_ih": jax.random.uniform(k1, (4 * hidden_size, d_in),
                                       minval=-stdv, maxval=stdv, dtype=jnp.float32),
            "w_hh": jax.random.uniform(k2, (4 * hidden_size, hidden_size),
                                       minval=-stdv, maxval=stdv, dtype=jnp.float32),
            "b_ih": jax.random.uniform(k3, (4 * hidden_size,),
                                       minval=-stdv, maxval=stdv, dtype=jnp.float32),
            "b_hh": jax.random.uniform(k4, (4 * hidden_size,),
                                       minval=-stdv, maxval=stdv, dtype=jnp.float32),
        })
    return params


def _permute_gates_ifog(w, hidden_size):
    """Reorder PyTorch gate blocks (i, f, g, o) -> kernel order (i, f, o, g)."""
    i, f, g, o = jnp.split(w, 4, axis=0)
    return jnp.concatenate([i, f, o, g], axis=0)


def prepare_kernel_params(raw_params, hidden_size):
    """Transposed bf16 MXU weights + fused f32 bias, gate columns as (i,f,o,g)."""
    params = []
    for p in raw_params:
        wih = _permute_gates_ifog(p["w_ih"], hidden_size)
        whh = _permute_gates_ifog(p["w_hh"], hidden_size)
        b = _permute_gates_ifog(p["b_ih"] + p["b_hh"], hidden_size)
        params.append({
            "wih_t": wih.T.astype(jnp.bfloat16),   # (D_in, 4H) MXU operand
            "whh_t": whh.T.astype(jnp.bfloat16),   # (H, 4H)    MXU operand
            "b": b[None, :],                       # (1, 4H)    f32 fused bias
        })
    return params


def reference_forward(raw_params, x):
    """Pure-JAX full-f32 LSTM reference (true PyTorch nn.LSTM semantics)."""
    B, T, _ = x.shape
    H = raw_params[0]["w_hh"].shape[1]
    num_layers = len(raw_params)
    h = [jnp.zeros((B, H), jnp.float32) for _ in range(num_layers)]
    c = [jnp.zeros((B, H), jnp.float32) for _ in range(num_layers)]
    outs = []
    for t in range(T):
        inp = x[:, t, :]
        for l in range(num_layers):
            p = raw_params[l]
            gates = (inp @ p["w_ih"].T + h[l] @ p["w_hh"].T
                     + p["b_ih"] + p["b_hh"])
            i_g = jax.nn.sigmoid(gates[:, 0 * H:1 * H])
            f_g = jax.nn.sigmoid(gates[:, 1 * H:2 * H])
            g_g = jnp.tanh(gates[:, 2 * H:3 * H])
            o_g = jax.nn.sigmoid(gates[:, 3 * H:4 * H])
            c[l] = f_g * c[l] + i_g * g_g
            h[l] = o_g * jnp.tanh(c[l])
            inp = h[l]
        outs.append(h[-1][:, None, :])
    return outs


if __name__ == "__main__":
    key = jax.random.PRNGKey(0)
    kp, kx = jax.random.split(key)
    raw_params = init_lstm_params(kp, INPUT_SIZE, HIDDEN_SIZE, NUM_LAYERS)
    kernel_params = prepare_kernel_params(raw_params, HIDDEN_SIZE)
    x = jax.random.normal(kx, (BATCH, TIME_STEPS, INPUT_SIZE), dtype=jnp.float32)

    outs = model_forward(kernel_params, x)
    for o in outs:
        jax.block_until_ready(o)

    assert len(outs) == TIME_STEPS
    assert all(o.shape == (BATCH, 1, HIDDEN_SIZE) for o in outs)
    assert all(bool(jnp.all(jnp.isfinite(o))) for o in outs)

    # Numerical check against a TRUE f32 LSTM reference (PyTorch semantics).
    # The only deviation is bf16 matmul operands inside the kernel.
    refs = reference_forward(raw_params, x)
    max_err = max(float(jnp.max(jnp.abs(o - r))) for o, r in zip(outs, refs))
    assert max_err < 5e-2, f"max abs err vs f32 reference: {max_err}"

    print("KERNEL_OK")
</pallas_src>

<mosaic_0001>
module attributes {stable_mosaic.version = 11 : i64} {
  func.func @kernel(%arg0: memref<64x128xbf16, #tpu.memory_space<vmem>>, %arg1: memref<128x512xbf16, #tpu.memory_space<vmem>>, %arg2: memref<128x512xbf16, #tpu.memory_space<vmem>>, %arg3: memref<1x512xf32, #tpu.memory_space<vmem>>, %arg4: memref<128x512xbf16, #tpu.memory_space<vmem>>, %arg5: memref<128x512xbf16, #tpu.memory_space<vmem>>, %arg6: memref<1x512xf32, #tpu.memory_space<vmem>>, %arg7: memref<64x128xf32, #tpu.memory_space<vmem>>, %arg8: memref<64x512xf32, #tpu.memory_space<vmem>>, %arg9: memref<64x128xbf16, #tpu.memory_space<vmem>>) attributes {dimension_semantics = [], scalar_prefetch = 0 : i64, scratch_operands = 2 : i64, tpu.core_type = #tpu.core_type<tc>} {
    %c0 = arith.constant 0 : index
    %c0_0 = arith.constant 0 : index
    %0 = vector.load %arg0[%c0, %c0_0] : memref<64x128xbf16, #tpu.memory_space<vmem>>, vector<64x128xbf16>
    %c0_1 = arith.constant 0 : index
    %c0_2 = arith.constant 0 : index
    %1 = vector.load %arg1[%c0_1, %c0_2] : memref<128x512xbf16, #tpu.memory_space<vmem>>, vector<128x512xbf16>
    %cst = arith.constant dense<0.000000e+00> : vector<64x512xf32>
    %2 = tpu.matmul %0, %1, %cst {dimension_numbers = #tpu.dot_dimension_numbers<[1], [0], [0], [1], [0, 0, 1, 1], [], []>} : vector<64x128xbf16>, vector<128x512xbf16>, vector<64x512xf32> -> vector<64x512xf32>
    %c0_3 = arith.constant 0 : index
    %c0_4 = arith.constant 0 : index
    %3 = vector.load %arg3[%c0_3, %c0_4] : memref<1x512xf32, #tpu.memory_space<vmem>>, vector<1x512xf32>
    %4 = vector.broadcast %3 : vector<1x512xf32> to vector<64x512xf32>
    %5 = arith.addf %2, %4 : vector<64x512xf32>
    %c0_5 = arith.constant 0 : index
    %c0_6 = arith.constant 0 : index
    %6 = vector.load %arg8[%c0_5, %c0_6] : memref<64x512xf32, #tpu.memory_space<vmem>>, vector<64x512xf32>
    tpu.vector_store %arg8[%c0_5, %c0_6], %5 {strides = array<i32>} : memref<64x512xf32, #tpu.memory_space<vmem>>, vector<64x512xf32>,
    %c0_7 = arith.constant 0 : index
    %c0_8 = arith.constant 0 : index
    %7 = vector.load %arg2[%c0_7, %c0_8] : memref<128x512xbf16, #tpu.memory_space<vmem>>, vector<128x512xbf16>
    %cst_9 = arith.constant 0.000000e+00 : f32
    %8 = vector.broadcast %cst_9 : f32 to vector<8x128xf32>
    %cst_10 = arith.constant 0.000000e+00 : f32
    %9 = vector.broadcast %cst_10 : f32 to vector<8x128xf32>
    %c0_i32 = arith.constant 0 : i32
    %c8_i32 = arith.constant 8 : i32
    %10 = arith.muli %c0_i32, %c8_i32 : i32
    %11 = tpu.assume_multiple %10, 8 : i32
    %12 = arith.index_cast %11 : i32 to index
    %c0_11 = arith.constant 0 : index
    %13 = vector.load %arg8[%12, %c0_11] : memref<64x512xf32, #tpu.memory_space<vmem>>, vector<8x512xf32>
    %14 = arith.truncf %8 : vector<8x128xf32> to vector<8x128xbf16>
    %cst_12 = arith.constant dense<0.000000e+00> : vector<8x512xf32>
    %15 = tpu.matmul %14, %7, %cst_12 {dimension_numbers = #tpu.dot_dimension_numbers<[1], [0], [0], [1], [0, 0, 1, 1], [], []>} : vector<8x128xbf16>, vector<128x512xbf16>, vector<8x512xf32> -> vector<8x512xf32>
    %16 = arith.addf %13, %15 : vector<8x512xf32>
    %17 = vector.extract_strided_slice %16 {offsets = [0, 0], sizes = [8, 384], strides = [1, 1]} : vector<8x512xf32> to vector<8x384xf32>
    %cst_13 = arith.constant 5.000000e-01 : f32
    %18 = vector.broadcast %cst_13 : f32 to vector<8x384xf32>
    %19 = arith.mulf %18, %17 : vector<8x384xf32>
    %20 = math.tanh %19 : vector<8x384xf32>
    %cst_14 = arith.constant 1.000000e+00 : f32
    %21 = vector.broadcast %cst_14 : f32 to vector<8x384xf32>
    %22 = arith.addf %20, %21 : vector<8x384xf32>
    %cst_15 = arith.constant 5.000000e-01 : f32
    %23 = vector.broadcast %cst_15 : f32 to vector<8x384xf32>
    %24 = arith.mulf %23, %22 : vector<8x384xf32>
    %25 = vector.extract_strided_slice %24 {offsets = [0, 0], sizes = [8, 128], strides = [1, 1]} : vector<8x384xf32> to vector<8x128xf32>
    %26 = vector.extract_strided_slice %24 {offsets = [0, 128], sizes = [8, 128], strides = [1, 1]} : vector<8x384xf32> to vector<8x128xf32>
    %27 = vector.extract_strided_slice %24 {offsets = [0, 256], sizes = [8, 128], strides = [1, 1]} : vector<8x384xf32> to vector<8x128xf32>
    %28 = vector.extract_strided_slice %16 {offsets = [0, 384], sizes = [8, 128], strides = [1, 1]} : vector<8x512xf32> to vector<8x128xf32>
    %29 = math.tanh %28 : vector<8x128xf32>
    %30 = arith.mulf %26, %9 : vector<8x128xf32>
    %31 = arith.mulf %25, %29 : vector<8x128xf32>
    %32 = arith.addf %30, %31 : vector<8x128xf32>
    %33 = math.tanh %32 : vector<8x128xf32>
    %34 = arith.mulf %27, %33 : vector<8x128xf32>
    %35 = arith.truncf %34 : vector<8x128xf32> to vector<8x128xbf16>
    %36 = arith.index_cast %11 : i32 to index
    %c0_16 = arith.constant 0 : index
    %37 = vector.load %arg9[%36, %c0_16] : memref<64x128xbf16, #tpu.memory_space<vmem>>, vector<8x128xbf16>
    tpu.vector_store %arg9[%36, %c0_16], %35 {strides = array<i32>} : memref<64x128xbf16, #tpu.memory_space<vmem>>, vector<8x128xbf16>,
    %c1_i32 = arith.constant 1 : i32
    %c8_i32_17 = arith.constant 8 : i32
    %38 = arith.muli %c1_i32, %c8_i32_17 : i32
    %39 = tpu.assume_multiple %38, 8 : i32
    %40 = arith.index_cast %39 : i32 to index
    %c0_18 = arith.constant 0 : index
    %41 = vector.load %arg8[%40, %c0_18] : memref<64x512xf32, #tpu.memory_space<vmem>>, vector<8x512xf32>
    %42 = arith.truncf %34 : vector<8x128xf32> to vector<8x128xbf16>
    %cst_19 = arith.constant dense<0.000000e+00> : vector<8x512xf32>
    %43 = tpu.matmul %42, %7, %cst_19 {dimension_numbers = #tpu.dot_dimension_numbers<[1], [0], [0], [1], [0, 0, 1, 1], [], []>} : vector<8x128xbf16>, vector<128x512xbf16>, vector<8x512xf32> -> vector<8x512xf32>
    %44 = arith.addf %41, %43 : vector<8x512xf32>
    %45 = vector.extract_strided_slice %44 {offsets = [0, 0], sizes = [8, 384], strides = [1, 1]} : vector<8x512xf32> to vector<8x384xf32>
    %cst_20 = arith.constant 5.000000e-01 : f32
    %46 = vector.broadcast %cst_20 : f32 to vector<8x384xf32>
    %47 = arith.mulf %46, %45 : vector<8x384xf32>
    %48 = math.tanh %47 : vector<8x384xf32>
    %cst_21 = arith.constant 1.000000e+00 : f32
    %49 = vector.broadcast %cst_21 : f32 to vector<8x384xf32>
    %50 = arith.addf %48, %49 : vector<8x384xf32>
    %cst_22 = arith.constant 5.000000e-01 : f32
    %51 = vector.broadcast %cst_22 : f32 to vector<8x384xf32>
    %52 = arith.mulf %51, %50 : vector<8x384xf32>
    %53 = vector.extract_strided_slice %52 {offsets = [0, 0], sizes = [8, 128], strides = [1, 1]} : vector<8x384xf32> to vector<8x128xf32>
    %54 = vector.extract_strided_slice %52 {offsets = [0, 128], sizes = [8, 128], strides = [1, 1]} : vector<8x384xf32> to vector<8x128xf32>
    %55 = vector.extract_strided_slice %52 {offsets = [0, 256], sizes = [8, 128], strides = [1, 1]} : vector<8x384xf32> to vector<8x128xf32>
    %56 = vector.extract_strided_slice %44 {offsets = [0, 384], sizes = [8, 128], strides = [1, 1]} : vector<8x512xf32> to vector<8x128xf32>
    %57 = math.tanh %56 : vector<8x128xf32>
    %58 = arith.mulf %54, %32 : vector<8x128xf32>
    %59 = arith.mulf %53, %57 : vector<8x128xf32>
    %60 = arith.addf %58, %59 : vector<8x128xf32>
    %61 = math.tanh %60 : vector<8x128xf32>
    %62 = arith.mulf %55, %61 : vector<8x128xf32>
    %63 = arith.truncf %62 : vector<8x128xf32> to vector<8x128xbf16>
    %64 = arith.index_cast %39 : i32 to index
    %c0_23 = arith.constant 0 : index
    %65 = vector.load %arg9[%64, %c0_23] : memref<64x128xbf16, #tpu.memory_space<vmem>>, vector<8x128xbf16>
    tpu.vector_store %arg9[%64, %c0_23], %63 {strides = array<i32>} : memref<64x128xbf16, #tpu.memory_space<vmem>>, vector<8x128xbf16>,
    %c2_i32 = arith.constant 2 : i32
    %c8_i32_24 = arith.constant 8 : i32
    %66 = arith.muli %c2_i32, %c8_i32_24 : i32
    %67 = tpu.assume_multiple %66, 8 : i32
    %68 = arith.index_cast %67 : i32 to index
    %c0_25 = arith.constant 0 : index
    %69 = vector.load %arg8[%68, %c0_25] : memref<64x512xf32, #tpu.memory_space<vmem>>, vector<8x512xf32>
    %70 = arith.truncf %62 : vector<8x128xf32> to vector<8x128xbf16>
    %cst_26 = arith.constant dense<0.000000e+00> : vector<8x512xf32>
    %71 = tpu.matmul %70, %7, %cst_26 {dimension_numbers = #tpu.dot_dimension_numbers<[1], [0], [0], [1], [0, 0, 1, 1], [], []>} : vector<8x128xbf16>, vector<128x512xbf16>, vector<8x512xf32> -> vector<8x512xf32>
    %72 = arith.addf %69, %71 : vector<8x512xf32>
    %73 = vector.extract_strided_slice %72 {offsets = [0, 0], sizes = [8, 384], strides = [1, 1]} : vector<8x512xf32> to vector<8x384xf32>
    %cst_27 = arith.constant 5.000000e-01 : f32
    %74 = vector.broadcast %cst_27 : f32 to vector<8x384xf32>
    %75 = arith.mulf %74, %73 : vector<8x384xf32>
    %76 = math.tanh %75 : vector<8x384xf32>
    %cst_28 = arith.constant 1.000000e+00 : f32
    %77 = vector.broadcast %cst_28 : f32 to vector<8x384xf32>
    %78 = arith.addf %76, %77 : vector<8x384xf32>
    %cst_29 = arith.constant 5.000000e-01 : f32
    %79 = vector.broadcast %cst_29 : f32 to vector<8x384xf32>
    %80 = arith.mulf %79, %78 : vector<8x384xf32>
    %81 = vector.extract_strided_slice %80 {offsets = [0, 0], sizes = [8, 128], strides = [1, 1]} : vector<8x384xf32> to vector<8x128xf32>
    %82 = vector.extract_strided_slice %80 {offsets = [0, 128], sizes = [8, 128], strides = [1, 1]} : vector<8x384xf32> to vector<8x128xf32>
    %83 = vector.extract_strided_slice %80 {offsets = [0, 256], sizes = [8, 128], strides = [1, 1]} : vector<8x384xf32> to vector<8x128xf32>
    %84 = vector.extract_strided_slice %72 {offsets = [0, 384], sizes = [8, 128], strides = [1, 1]} : vector<8x512xf32> to vector<8x128xf32>
    %85 = math.tanh %84 : vector<8x128xf32>
    %86 = arith.mulf %82, %60 : vector<8x128xf32>
    %87 = arith.mulf %81, %85 : vector<8x128xf32>
    %88 = arith.addf %86, %87 : vector<8x128xf32>
    %89 = math.tanh %88 : vector<8x128xf32>
    %90 = arith.mulf %83, %89 : vector<8x128xf32>
    %91 = arith.truncf %90 : vector<8x128xf32> to vector<8x128xbf16>
    %92 = arith.index_cast %67 : i32 to index
    %c0_30 = arith.constant 0 : index
    %93 = vector.load %arg9[%92, %c0_30] : memref<64x128xbf16, #tpu.memory_space<vmem>>, vector<8x128xbf16>
    tpu.vector_store %arg9[%92, %c0_30], %91 {strides = array<i32>} : memref<64x128xbf16, #tpu.memory_space<vmem>>, vector<8x128xbf16>,
    %c3_i32 = arith.constant 3 : i32
    %c8_i32_31 = arith.constant 8 : i32
    %94 = arith.muli %c3_i32, %c8_i32_31 : i32
    %95 = tpu.assume_multiple %94, 8 : i32
    %96 = arith.index_cast %95 : i32 to index
    %c0_32 = arith.constant 0 : index
    %97 = vector.load %arg8[%96, %c0_32] : memref<64x512xf32, #tpu.memory_space<vmem>>, vector<8x512xf32>
    %98 = arith.truncf %90 : vector<8x128xf32> to vector<8x128xbf16>
    %cst_33 = arith.constant dense<0.000000e+00> : vector<8x512xf32>
    %99 = tpu.matmul %98, %7, %cst_33 {dimension_numbers = #tpu.dot_dimension_numbers<[1], [0], [0], [1], [0, 0, 1, 1], [], []>} : vector<8x128xbf16>, vector<128x512xbf16>, vector<8x512xf32> -> vector<8x512xf32>
    %100 = arith.addf %97, %99 : vector<8x512xf32>
    %101 = vector.extract_strided_slice %100 {offsets = [0, 0], sizes = [8, 384], strides = [1, 1]} : vector<8x512xf32> to vector<8x384xf32>
    %cst_34 = arith.constant 5.000000e-01 : f32
    %102 = vector.broadcast %cst_34 : f32 to vector<8x384xf32>
    %103 = arith.mulf %102, %101 : vector<8x384xf32>
    %104 = math.tanh %103 : vector<8x384xf32>
    %cst_35 = arith.constant 1.000000e+00 : f32
    %105 = vector.broadcast %cst_35 : f32 to vector<8x384xf32>
    %106 = arith.addf %104, %105 : vector<8x384xf32>
    %cst_36 = arith.constant 5.000000e-01 : f32
    %107 = vector.broadcast %cst_36 : f32 to vector<8x384xf32>
    %108 = arith.mulf %107, %106 : vector<8x384xf32>
    %109 = vector.extract_strided_slice %108 {offsets = [0, 0], sizes = [8, 128], strides = [1, 1]} : vector<8x384xf32> to vector<8x128xf32>
    %110 = vector.extract_strided_slice %108 {offsets = [0, 128], sizes = [8, 128], strides = [1, 1]} : vector<8x384xf32> to vector<8x128xf32>
    %111 = vector.extract_strided_slice %108 {offsets = [0, 256], sizes = [8, 128], strides = [1, 1]} : vector<8x384xf32> to vector<8x128xf32>
    %112 = vector.extract_strided_slice %100 {offsets = [0, 384], sizes = [8, 128], strides = [1, 1]} : vector<8x512xf32> to vector<8x128xf32>
    %113 = math.tanh %112 : vector<8x128xf32>
    %114 = arith.mulf %110, %88 : vector<8x128xf32>
    %115 = arith.mulf %109, %113 : vector<8x128xf32>
    %116 = arith.addf %114, %115 : vector<8x128xf32>
    %117 = math.tanh %116 : vector<8x128xf32>
    %118 = arith.mulf %111, %117 : vector<8x128xf32>
    %119 = arith.truncf %118 : vector<8x128xf32> to vector<8x128xbf16>
    %120 = arith.index_cast %95 : i32 to index
    %c0_37 = arith.constant 0 : index
    %121 = vector.load %arg9[%120, %c0_37] : memref<64x128xbf16, #tpu.memory_space<vmem>>, vector<8x128xbf16>
    tpu.vector_store %arg9[%120, %c0_37], %119 {strides = array<i32>} : memref<64x128xbf16, #tpu.memory_space<vmem>>, vector<8x128xbf16>,
    %c4_i32 = arith.constant 4 : i32
    %c8_i32_38 = arith.constant 8 : i32
    %122 = arith.muli %c4_i32, %c8_i32_38 : i32
    %123 = tpu.assume_multiple %122, 8 : i32
    %124 = arith.index_cast %123 : i32 to index
    %c0_39 = arith.constant 0 : index
    %125 = vector.load %arg8[%124, %c0_39] : memref<64x512xf32, #tpu.memory_space<vmem>>, vector<8x512xf32>
    %126 = arith.truncf %118 : vector<8x128xf32> to vector<8x128xbf16>
    %cst_40 = arith.constant dense<0.000000e+00> : vector<8x512xf32>
    %127 = tpu.matmul %126, %7, %cst_40 {dimension_numbers = #tpu.dot_dimension_numbers<[1], [0], [0], [1], [0, 0, 1, 1], [], []>} : vector<8x128xbf16>, vector<128x512xbf16>, vector<8x512xf32> -> vector<8x512xf32>
    %128 = arith.addf %125, %127 : vector<8x512xf32>
    %129 = vector.extract_strided_slice %128 {offsets = [0, 0], sizes = [8, 384], strides = [1, 1]} : vector<8x512xf32> to vector<8x384xf32>
    %cst_41 = arith.constant 5.000000e-01 : f32
    %130 = vector.broadcast %cst_41 : f32 to vector<8x384xf32>
    %131 = arith.mulf %130, %129 : vector<8x384xf32>
    %132 = math.tanh %131 : vector<8x384xf32>
    %cst_42 = arith.constant 1.000000e+00 : f32
    %133 = vector.broadcast %cst_42 : f32 to vector<8x384xf32>
    %134 = arith.addf %132, %133 : vector<8x384xf32>
    %cst_43 = arith.constant 5.000000e-01 : f32
    %135 = vector.broadcast %cst_43 : f32 to vector<8x384xf32>
    %136 = arith.mulf %135, %134 : vector<8x384xf32>
    %137 = vector.extract_strided_slice %136 {offsets = [0, 0], sizes = [8, 128], strides = [1, 1]} : vector<8x384xf32> to vector<8x128xf32>
    %138 = vector.extract_strided_slice %136 {offsets = [0, 128], sizes = [8, 128], strides = [1, 1]} : vector<8x384xf32> to vector<8x128xf32>
    %139 = vector.extract_strided_slice %136 {offsets = [0, 256], sizes = [8, 128], strides = [1, 1]} : vector<8x384xf32> to vector<8x128xf32>
    %140 = vector.extract_strided_slice %128 {offsets = [0, 384], sizes = [8, 128], strides = [1, 1]} : vector<8x512xf32> to vector<8x128xf32>
    %141 = math.tanh %140 : vector<8x128xf32>
    %142 = arith.mulf %138, %116 : vector<8x128xf32>
    %143 = arith.mulf %137, %141 : vector<8x128xf32>
    %144 = arith.addf %142, %143 : vector<8x128xf32>
    %145 = math.tanh %144 : vector<8x128xf32>
    %146 = arith.mulf %139, %145 : vector<8x128xf32>
    %147 = arith.truncf %146 : vector<8x128xf32> to vector<8x128xbf16>
    %148 = arith.index_cast %123 : i32 to index
    %c0_44 = arith.constant 0 : index
    %149 = vector.load %arg9[%148, %c0_44] : memref<64x128xbf16, #tpu.memory_space<vmem>>, vector<8x128xbf16>
    tpu.vector_store %arg9[%148, %c0_44], %147 {strides = array<i32>} : memref<64x128xbf16, #tpu.memory_space<vmem>>, vector<8x128xbf16>,
    %c5_i32 = arith.constant 5 : i32
    %c8_i32_45 = arith.constant 8 : i32
    %150 = arith.muli %c5_i32, %c8_i32_45 : i32
    %151 = tpu.assume_multiple %150, 8 : i32
    %152 = arith.index_cast %151 : i32 to index
    %c0_46 = arith.constant 0 : index
    %153 = vector.load %arg8[%152, %c0_46] : memref<64x512xf32, #tpu.memory_space<vmem>>, vector<8x512xf32>
    %154 = arith.truncf %146 : vector<8x128xf32> to vector<8x128xbf16>
    %cst_47 = arith.constant dense<0.000000e+00> : vector<8x512xf32>
    %155 = tpu.matmul %154, %7, %cst_47 {dimension_numbers = #tpu.dot_dimension_numbers<[1], [0], [0], [1], [0, 0, 1, 1], [], []>} : vector<8x128xbf16>, vector<128x512xbf16>, vector<8x512xf32> -> vector<8x512xf32>
    %156 = arith.addf %153, %155 : vector<8x512xf32>
    %157 = vector.extract_strided_slice %156 {offsets = [0, 0], sizes = [8, 384], strides = [1, 1]} : vector<8x512xf32> to vector<8x384xf32>
    %cst_48 = arith.constant 5.000000e-01 : f32
    %158 = vector.broadcast %cst_48 : f32 to vector<8x384xf32>
    %159 = arith.mulf %158, %157 : vector<8x384xf32>
    %160 = math.tanh %159 : vector<8x384xf32>
    %cst_49 = arith.constant 1.000000e+00 : f32
    %161 = vector.broadcast %cst_49 : f32 to vector<8x384xf32>
    %162 = arith.addf %160, %161 : vector<8x384xf32>
    %cst_50 = arith.constant 5.000000e-01 : f32
    %163 = vector.broadcast %cst_50 : f32 to vector<8x384xf32>
    %164 = arith.mulf %163, %162 : vector<8x384xf32>
    %165 = vector.extract_strided_slice %164 {offsets = [0, 0], sizes = [8, 128], strides = [1, 1]} : vector<8x384xf32> to vector<8x128xf32>
    %166 = vector.extract_strided_slice %164 {offsets = [0, 128], sizes = [8, 128], strides = [1, 1]} : vector<8x384xf32> to vector<8x128xf32>
    %167 = vector.extract_strided_slice %164 {offsets = [0, 256], sizes = [8, 128], strides = [1, 1]} : vector<8x384xf32> to vector<8x128xf32>
    %168 = vector.extract_strided_slice %156 {offsets = [0, 384], sizes = [8, 128], strides = [1, 1]} : vector<8x512xf32> to vector<8x128xf32>
    %169 = math.tanh %168 : vector<8x128xf32>
    %170 = arith.mulf %166, %144 : vector<8x128xf32>
    %171 = arith.mulf %165, %169 : vector<8x128xf32>
    %172 = arith.addf %170, %171 : vector<8x128xf32>
    %173 = math.tanh %172 : vector<8x128xf32>
    %174 = arith.mulf %167, %173 : vector<8x128xf32>
    %175 = arith.truncf %174 : vector<8x128xf32> to vector<8x128xbf16>
    %176 = arith.index_cast %151 : i32 to index
    %c0_51 = arith.constant 0 : index
    %177 = vector.load %arg9[%176, %c0_51] : memref<64x128xbf16, #tpu.memory_space<vmem>>, vector<8x128xbf16>
    tpu.vector_store %arg9[%176, %c0_51], %175 {strides = array<i32>} : memref<64x128xbf16, #tpu.memory_space<vmem>>, vector<8x128xbf16>,
    %c6_i32 = arith.constant 6 : i32
    %c8_i32_52 = arith.constant 8 : i32
    %178 = arith.muli %c6_i32, %c8_i32_52 : i32
    %179 = tpu.assume_multiple %178, 8 : i32
    %180 = arith.index_cast %179 : i32 to index
    %c0_53 = arith.constant 0 : index
    %181 = vector.load %arg8[%180, %c0_53] : memref<64x512xf32, #tpu.memory_space<vmem>>, vector<8x512xf32>
    %182 = arith.truncf %174 : vector<8x128xf32> to vector<8x128xbf16>
    %cst_54 = arith.constant dense<0.000000e+00> : vector<8x512xf32>
    %183 = tpu.matmul %182, %7, %cst_54 {dimension_numbers = #tpu.dot_dimension_numbers<[1], [0], [0], [1], [0, 0, 1, 1], [], []>} : vector<8x128xbf16>, vector<128x512xbf16>, vector<8x512xf32> -> vector<8x512xf32>
    %184 = arith.addf %181, %183 : vector<8x512xf32>
    %185 = vector.extract_strided_slice %184 {offsets = [0, 0], sizes = [8, 384], strides = [1, 1]} : vector<8x512xf32> to vector<8x384xf32>
    %cst_55 = arith.constant 5.000000e-01 : f32
    %186 = vector.broadcast %cst_55 : f32 to vector<8x384xf32>
    %187 = arith.mulf %186, %185 : vector<8x384xf32>
    %188 = math.tanh %187 : vector<8x384xf32>
    %cst_56 = arith.constant 1.000000e+00 : f32
    %189 = vector.broadcast %cst_56 : f32 to vector<8x384xf32>
    %190 = arith.addf %188, %189 : vector<8x384xf32>
    %cst_57 = arith.constant 5.000000e-01 : f32
    %191 = vector.broadcast %cst_57 : f32 to vector<8x384xf32>
    %192 = arith.mulf %191, %190 : vector<8x384xf32>
    %193 = vector.extract_strided_slice %192 {offsets = [0, 0], sizes = [8, 128], strides = [1, 1]} : vector<8x384xf32> to vector<8x128xf32>
    %194 = vector.extract_strided_slice %192 {offsets = [0, 128], sizes = [8, 128], strides = [1, 1]} : vector<8x384xf32> to vector<8x128xf32>
    %195 = vector.extract_strided_slice %192 {offsets = [0, 256], sizes = [8, 128], strides = [1, 1]} : vector<8x384xf32> to vector<8x128xf32>
    %196 = vector.extract_strided_slice %184 {offsets = [0, 384], sizes = [8, 128], strides = [1, 1]} : vector<8x512xf32> to vector<8x128xf32>
    %197 = math.tanh %196 : vector<8x128xf32>
    %198 = arith.mulf %194, %172 : vector<8x128xf32>
    %199 = arith.mulf %193, %197 : vector<8x128xf32>
    %200 = arith.addf %198, %199 : vector<8x128xf32>
    %201 = math.tanh %200 : vector<8x128xf32>
    %202 = arith.mulf %195, %201 : vector<8x128xf32>
    %203 = arith.truncf %202 : vector<8x128xf32> to vector<8x128xbf16>
    %204 = arith.index_cast %179 : i32 to index
    %c0_58 = arith.constant 0 : index
    %205 = vector.load %arg9[%204, %c0_58] : memref<64x128xbf16, #tpu.memory_space<vmem>>, vector<8x128xbf16>
    tpu.vector_store %arg9[%204, %c0_58], %203 {strides = array<i32>} : memref<64x128xbf16, #tpu.memory_space<vmem>>, vector<8x128xbf16>,
    %c7_i32 = arith.constant 7 : i32
    %c8_i32_59 = arith.constant 8 : i32
    %206 = arith.muli %c7_i32, %c8_i32_59 : i32
    %207 = tpu.assume_multiple %206, 8 : i32
    %208 = arith.index_cast %207 : i32 to index
    %c0_60 = arith.constant 0 : index
    %209 = vector.load %arg8[%208, %c0_60] : memref<64x512xf32, #tpu.memory_space<vmem>>, vector<8x512xf32>
    %210 = arith.truncf %202 : vector<8x128xf32> to vector<8x128xbf16>
    %cst_61 = arith.constant dense<0.000000e+00> : vector<8x512xf32>
    %211 = tpu.matmul %210, %7, %cst_61 {dimension_numbers = #tpu.dot_dimension_numbers<[1], [0], [0], [1], [0, 0, 1, 1], [], []>} : vector<8x128xbf16>, vector<128x512xbf16>, vector<8x512xf32> -> vector<8x512xf32>
    %212 = arith.addf %209, %211 : vector<8x512xf32>
    %213 = vector.extract_strided_slice %212 {offsets = [0, 0], sizes = [8, 384], strides = [1, 1]} : vector<8x512xf32> to vector<8x384xf32>
    %cst_62 = arith.constant 5.000000e-01 : f32
    %214 = vector.broadcast %cst_62 : f32 to vector<8x384xf32>
    %215 = arith.mulf %214, %213 : vector<8x384xf32>
    %216 = math.tanh %215 : vector<8x384xf32>
    %cst_63 = arith.constant 1.000000e+00 : f32
    %217 = vector.broadcast %cst_63 : f32 to vector<8x384xf32>
    %218 = arith.addf %216, %217 : vector<8x384xf32>
    %cst_64 = arith.constant 5.000000e-01 : f32
    %219 = vector.broadcast %cst_64 : f32 to vector<8x384xf32>
    %220 = arith.mulf %219, %218 : vector<8x384xf32>
    %221 = vector.extract_strided_slice %220 {offsets = [0, 0], sizes = [8, 128], strides = [1, 1]} : vector<8x384xf32> to vector<8x128xf32>
    %222 = vector.extract_strided_slice %220 {offsets = [0, 128], sizes = [8, 128], strides = [1, 1]} : vector<8x384xf32> to vector<8x128xf32>
    %223 = vector.extract_strided_slice %220 {offsets = [0, 256], sizes = [8, 128], strides = [1, 1]} : vector<8x384xf32> to vector<8x128xf32>
    %224 = vector.extract_strided_slice %212 {offsets = [0, 384], sizes = [8, 128], strides = [1, 1]} : vector<8x512xf32> to vector<8x128xf32>
    %225 = math.tanh %224 : vector<8x128xf32>
    %226 = arith.mulf %222, %200 : vector<8x128xf32>
    %227 = arith.mulf %221, %225 : vector<8x128xf32>
    %228 = arith.addf %226, %227 : vector<8x128xf32>
    %229 = math.tanh %228 : vector<8x128xf32>
    %230 = arith.mulf %223, %229 : vector<8x128xf32>
    %231 = arith.truncf %230 : vector<8x128xf32> to vector<8x128xbf16>
    %232 = arith.index_cast %207 : i32 to index
    %c0_65 = arith.constant 0 : index
    %233 = vector.load %arg9[%232, %c0_65] : memref<64x128xbf16, #tpu.memory_space<vmem>>, vector<8x128xbf16>
    tpu.vector_store %arg9[%232, %c0_65], %231 {strides = array<i32>} : memref<64x128xbf16, #tpu.memory_space<vmem>>, vector<8x128xbf16>,
    %c8_i32_66 = arith.constant 8 : i32
    %c0_67 = arith.constant 0 : index
    %c0_68 = arith.constant 0 : index
    %234 = vector.load %arg9[%c0_67, %c0_68] : memref<64x128xbf16, #tpu.memory_space<vmem>>, vector<64x128xbf16>
    %c0_69 = arith.constant 0 : index
    %c0_70 = arith.constant 0 : index
    %235 = vector.load %arg4[%c0_69, %c0_70] : memref<128x512xbf16, #tpu.memory_space<vmem>>, vector<128x512xbf16>
    %cst_71 = arith.constant dense<0.000000e+00> : vector<64x512xf32>
    %236 = tpu.matmul %234, %235, %cst_71 {dimension_numbers = #tpu.dot_dimension_numbers<[1], [0], [0], [1], [0, 0, 1, 1], [], []>} : vector<64x128xbf16>, vector<128x512xbf16>, vector<64x512xf32> -> vector<64x512xf32>
    %c0_72 = arith.constant 0 : index
    %c0_73 = arith.constant 0 : index
    %237 = vector.load %arg6[%c0_72, %c0_73] : memref<1x512xf32, #tpu.memory_space<vmem>>, vector<1x512xf32>
    %238 = vector.broadcast %237 : vector<1x512xf32> to vector<64x512xf32>
    %239 = arith.addf %236, %238 : vector<64x512xf32>
    %c0_74 = arith.constant 0 : index
    %c0_75 = arith.constant 0 : index
    %240 = vector.load %arg8[%c0_74, %c0_75] : memref<64x512xf32, #tpu.memory_space<vmem>>, vector<64x512xf32>
    tpu.vector_store %arg8[%c0_74, %c0_75], %239 {strides = array<i32>} : memref<64x512xf32, #tpu.memory_space<vmem>>, vector<64x512xf32>,
    %c0_76 = arith.constant 0 : index
    %c0_77 = arith.constant 0 : index
    %241 = vector.load %arg5[%c0_76, %c0_77] : memref<128x512xbf16, #tpu.memory_space<vmem>>, vector<128x512xbf16>
    %cst_78 = arith.constant 0.000000e+00 : f32
    %242 = vector.broadcast %cst_78 : f32 to vector<8x128xf32>
    %cst_79 = arith.constant 0.000000e+00 : f32
    %243 = vector.broadcast %cst_79 : f32 to vector<8x128xf32>
    %c0_i32_80 = arith.constant 0 : i32
    %c8_i32_81 = arith.constant 8 : i32
    %244 = arith.muli %c0_i32_80, %c8_i32_81 : i32
    %245 = tpu.assume_multiple %244, 8 : i32
    %246 = arith.index_cast %245 : i32 to index
    %c0_82 = arith.constant 0 : index
    %247 = vector.load %arg8[%246, %c0_82] : memref<64x512xf32, #tpu.memory_space<vmem>>, vector<8x512xf32>
    %248 = arith.truncf %242 : vector<8x128xf32> to vector<8x128xbf16>
    %cst_83 = arith.constant dense<0.000000e+00> : vector<8x512xf32>
    %249 = tpu.matmul %248, %241, %cst_83 {dimension_numbers = #tpu.dot_dimension_numbers<[1], [0], [0], [1], [0, 0, 1, 1], [], []>} : vector<8x128xbf16>, vector<128x512xbf16>, vector<8x512xf32> -> vector<8x512xf32>
    %250 = arith.addf %247, %249 : vector<8x512xf32>
    %251 = vector.extract_strided_slice %250 {offsets = [0, 0], sizes = [8, 384], strides = [1, 1]} : vector<8x512xf32> to vector<8x384xf32>
    %cst_84 = arith.constant 5.000000e-01 : f32
    %252 = vector.broadcast %cst_84 : f32 to vector<8x384xf32>
    %253 = arith.mulf %252, %251 : vector<8x384xf32>
    %254 = math.tanh %253 : vector<8x384xf32>
    %cst_85 = arith.constant 1.000000e+00 : f32
    %255 = vector.broadcast %cst_85 : f32 to vector<8x384xf32>
    %256 = arith.addf %254, %255 : vector<8x384xf32>
    %cst_86 = arith.constant 5.000000e-01 : f32
    %257 = vector.broadcast %cst_86 : f32 to vector<8x384xf32>
    %258 = arith.mulf %257, %256 : vector<8x384xf32>
    %259 = vector.extract_strided_slice %258 {offsets = [0, 0], sizes = [8, 128], strides = [1, 1]} : vector<8x384xf32> to vector<8x128xf32>
    %260 = vector.extract_strided_slice %258 {offsets = [0, 128], sizes = [8, 128], strides = [1, 1]} : vector<8x384xf32> to vector<8x128xf32>
    %261 = vector.extract_strided_slice %258 {offsets = [0, 256], sizes = [8, 128], strides = [1, 1]} : vector<8x384xf32> to vector<8x128xf32>
    %262 = vector.extract_strided_slice %250 {offsets = [0, 384], sizes = [8, 128], strides = [1, 1]} : vector<8x512xf32> to vector<8x128xf32>
    %263 = math.tanh %262 : vector<8x128xf32>
    %264 = arith.mulf %260, %243 : vector<8x128xf32>
    %265 = arith.mulf %259, %263 : vector<8x128xf32>
    %266 = arith.addf %264, %265 : vector<8x128xf32>
    %267 = math.tanh %266 : vector<8x128xf32>
    %268 = arith.mulf %261, %267 : vector<8x128xf32>
    %269 = arith.index_cast %245 : i32 to index
    %c0_87 = arith.constant 0 : index
    %270 = vector.load %arg7[%269, %c0_87] : memref<64x128xf32, #tpu.memory_space<vmem>>, vector<8x128xf32>
    tpu.vector_store %arg7[%269, %c0_87], %268 {strides = array<i32>} : memref<64x128xf32, #tpu.memory_space<vmem>>, vector<8x128xf32>,
    %c1_i32_88 = arith.constant 1 : i32
    %c8_i32_89 = arith.constant 8 : i32
    %271 = arith.muli %c1_i32_88, %c8_i32_89 : i32
    %272 = tpu.assume_multiple %271, 8 : i32
    %273 = arith.index_cast %272 : i32 to index
    %c0_90 = arith.constant 0 : index
    %274 = vector.load %arg8[%273, %c0_90] : memref<64x512xf32, #tpu.memory_space<vmem>>, vector<8x512xf32>
    %275 = arith.truncf %268 : vector<8x128xf32> to vector<8x128xbf16>
    %cst_91 = arith.constant dense<0.000000e+00> : vector<8x512xf32>
    %276 = tpu.matmul %275, %241, %cst_91 {dimension_numbers = #tpu.dot_dimension_numbers<[1], [0], [0], [1], [0, 0, 1, 1], [], []>} : vector<8x128xbf16>, vector<128x512xbf16>, vector<8x512xf32> -> vector<8x512xf32>
    %277 = arith.addf %274, %276 : vector<8x512xf32>
    %278 = vector.extract_strided_slice %277 {offsets = [0, 0], sizes = [8, 384], strides = [1, 1]} : vector<8x512xf32> to vector<8x384xf32>
    %cst_92 = arith.constant 5.000000e-01 : f32
    %279 = vector.broadcast %cst_92 : f32 to vector<8x384xf32>
    %280 = arith.mulf %279, %278 : vector<8x384xf32>
    %281 = math.tanh %280 : vector<8x384xf32>
    %cst_93 = arith.constant 1.000000e+00 : f32
    %282 = vector.broadcast %cst_93 : f32 to vector<8x384xf32>
    %283 = arith.addf %281, %282 : vector<8x384xf32>
    %cst_94 = arith.constant 5.000000e-01 : f32
    %284 = vector.broadcast %cst_94 : f32 to vector<8x384xf32>
    %285 = arith.mulf %284, %283 : vector<8x384xf32>
    %286 = vector.extract_strided_slice %285 {offsets = [0, 0], sizes = [8, 128], strides = [1, 1]} : vector<8x384xf32> to vector<8x128xf32>
    %287 = vector.extract_strided_slice %285 {offsets = [0, 128], sizes = [8, 128], strides = [1, 1]} : vector<8x384xf32> to vector<8x128xf32>
    %288 = vector.extract_strided_slice %285 {offsets = [0, 256], sizes = [8, 128], strides = [1, 1]} : vector<8x384xf32> to vector<8x128xf32>
    %289 = vector.extract_strided_slice %277 {offsets = [0, 384], sizes = [8, 128], strides = [1, 1]} : vector<8x512xf32> to vector<8x128xf32>
    %290 = math.tanh %289 : vector<8x128xf32>
    %291 = arith.mulf %287, %266 : vector<8x128xf32>
    %292 = arith.mulf %286, %290 : vector<8x128xf32>
    %293 = arith.addf %291, %292 : vector<8x128xf32>
    %294 = math.tanh %293 : vector<8x128xf32>
    %295 = arith.mulf %288, %294 : vector<8x128xf32>
    %296 = arith.index_cast %272 : i32 to index
    %c0_95 = arith.constant 0 : index
    %297 = vector.load %arg7[%296, %c0_95] : memref<64x128xf32, #tpu.memory_space<vmem>>, vector<8x128xf32>
    tpu.vector_store %arg7[%296, %c0_95], %295 {strides = array<i32>} : memref<64x128xf32, #tpu.memory_space<vmem>>, vector<8x128xf32>,
    %c2_i32_96 = arith.constant 2 : i32
    %c8_i32_97 = arith.constant 8 : i32
    %298 = arith.muli %c2_i32_96, %c8_i32_97 : i32
    %299 = tpu.assume_multiple %298, 8 : i32
    %300 = arith.index_cast %299 : i32 to index
    %c0_98 = arith.constant 0 : index
    %301 = vector.load %arg8[%300, %c0_98] : memref<64x512xf32, #tpu.memory_space<vmem>>, vector<8x512xf32>
    %302 = arith.truncf %295 : vector<8x128xf32> to vector<8x128xbf16>
    %cst_99 = arith.constant dense<0.000000e+00> : vector<8x512xf32>
    %303 = tpu.matmul %302, %241, %cst_99 {dimension_numbers = #tpu.dot_dimension_numbers<[1], [0], [0], [1], [0, 0, 1, 1], [], []>} : vector<8x128xbf16>, vector<128x512xbf16>, vector<8x512xf32> -> vector<8x512xf32>
    %304 = arith.addf %301, %303 : vector<8x512xf32>
    %305 = vector.extract_strided_slice %304 {offsets = [0, 0], sizes = [8, 384], strides = [1, 1]} : vector<8x512xf32> to vector<8x384xf32>
    %cst_100 = arith.constant 5.000000e-01 : f32
    %306 = vector.broadcast %cst_100 : f32 to vector<8x384xf32>
    %307 = arith.mulf %306, %305 : vector<8x384xf32>
    %308 = math.tanh %307 : vector<8x384xf32>
    %cst_101 = arith.constant 1.000000e+00 : f32
    %309 = vector.broadcast %cst_101 : f32 to vector<8x384xf32>
    %310 = arith.addf %308, %309 : vector<8x384xf32>
    %cst_102 = arith.constant 5.000000e-01 : f32
    %311 = vector.broadcast %cst_102 : f32 to vector<8x384xf32>
    %312 = arith.mulf %311, %310 : vector<8x384xf32>
    %313 = vector.extract_strided_slice %312 {offsets = [0, 0], sizes = [8, 128], strides = [1, 1]} : vector<8x384xf32> to vector<8x128xf32>
    %314 = vector.extract_strided_slice %312 {offsets = [0, 128], sizes = [8, 128], strides = [1, 1]} : vector<8x384xf32> to vector<8x128xf32>
    %315 = vector.extract_strided_slice %312 {offsets = [0, 256], sizes = [8, 128], strides = [1, 1]} : vector<8x384xf32> to vector<8x128xf32>
    %316 = vector.extract_strided_slice %304 {offsets = [0, 384], sizes = [8, 128], strides = [1, 1]} : vector<8x512xf32> to vector<8x128xf32>
    %317 = math.tanh %316 : vector<8x128xf32>
    %318 = arith.mulf %314, %293 : vector<8x128xf32>
    %319 = arith.mulf %313, %317 : vector<8x128xf32>
    %320 = arith.addf %318, %319 : vector<8x128xf32>
    %321 = math.tanh %320 : vector<8x128xf32>
    %322 = arith.mulf %315, %321 : vector<8x128xf32>
    %323 = arith.index_cast %299 : i32 to index
    %c0_103 = arith.constant 0 : index
    %324 = vector.load %arg7[%323, %c0_103] : memref<64x128xf32, #tpu.memory_space<vmem>>, vector<8x128xf32>
    tpu.vector_store %arg7[%323, %c0_103], %322 {strides = array<i32>} : memref<64x128xf32, #tpu.memory_space<vmem>>, vector<8x128xf32>,
    %c3_i32_104 = arith.constant 3 : i32
    %c8_i32_105 = arith.constant 8 : i32
    %325 = arith.muli %c3_i32_104, %c8_i32_105 : i32
    %326 = tpu.assume_multiple %325, 8 : i32
    %327 = arith.index_cast %326 : i32 to index
    %c0_106 = arith.constant 0 : index
    %328 = vector.load %arg8[%327, %c0_106] : memref<64x512xf32, #tpu.memory_space<vmem>>, vector<8x512xf32>
    %329 = arith.truncf %322 : vector<8x128xf32> to vector<8x128xbf16>
    %cst_107 = arith.constant dense<0.000000e+00> : vector<8x512xf32>
    %330 = tpu.matmul %329, %241, %cst_107 {dimension_numbers = #tpu.dot_dimension_numbers<[1], [0], [0], [1], [0, 0, 1, 1], [], []>} : vector<8x128xbf16>, vector<128x512xbf16>, vector<8x512xf32> -> vector<8x512xf32>
    %331 = arith.addf %328, %330 : vector<8x512xf32>
    %332 = vector.extract_strided_slice %331 {offsets = [0, 0], sizes = [8, 384], strides = [1, 1]} : vector<8x512xf32> to vector<8x384xf32>
    %cst_108 = arith.constant 5.000000e-01 : f32
    %333 = vector.broadcast %cst_108 : f32 to vector<8x384xf32>
    %334 = arith.mulf %333, %332 : vector<8x384xf32>
    %335 = math.tanh %334 : vector<8x384xf32>
    %cst_109 = arith.constant 1.000000e+00 : f32
    %336 = vector.broadcast %cst_109 : f32 to vector<8x384xf32>
    %337 = arith.addf %335, %336 : vector<8x384xf32>
    %cst_110 = arith.constant 5.000000e-01 : f32
    %338 = vector.broadcast %cst_110 : f32 to vector<8x384xf32>
    %339 = arith.mulf %338, %337 : vector<8x384xf32>
    %340 = vector.extract_strided_slice %339 {offsets = [0, 0], sizes = [8, 128], strides = [1, 1]} : vector<8x384xf32> to vector<8x128xf32>
    %341 = vector.extract_strided_slice %339 {offsets = [0, 128], sizes = [8, 128], strides = [1, 1]} : vector<8x384xf32> to vector<8x128xf32>
    %342 = vector.extract_strided_slice %339 {offsets = [0, 256], sizes = [8, 128], strides = [1, 1]} : vector<8x384xf32> to vector<8x128xf32>
    %343 = vector.extract_strided_slice %331 {offsets = [0, 384], sizes = [8, 128], strides = [1, 1]} : vector<8x512xf32> to vector<8x128xf32>
    %344 = math.tanh %343 : vector<8x128xf32>
    %345 = arith.mulf %341, %320 : vector<8x128xf32>
    %346 = arith.mulf %340, %344 : vector<8x128xf32>
    %347 = arith.addf %345, %346 : vector<8x128xf32>
    %348 = math.tanh %347 : vector<8x128xf32>
    %349 = arith.mulf %342, %348 : vector<8x128xf32>
    %350 = arith.index_cast %326 : i32 to index
    %c0_111 = arith.constant 0 : index
    %351 = vector.load %arg7[%350, %c0_111] : memref<64x128xf32, #tpu.memory_space<vmem>>, vector<8x128xf32>
    tpu.vector_store %arg7[%350, %c0_111], %349 {strides = array<i32>} : memref<64x128xf32, #tpu.memory_space<vmem>>, vector<8x128xf32>,
    %c4_i32_112 = arith.constant 4 : i32
    %c8_i32_113 = arith.constant 8 : i32
    %352 = arith.muli %c4_i32_112, %c8_i32_113 : i32
    %353 = tpu.assume_multiple %352, 8 : i32
    %354 = arith.index_cast %353 : i32 to index
    %c0_114 = arith.constant 0 : index
    %355 = vector.load %arg8[%354, %c0_114] : memref<64x512xf32, #tpu.memory_space<vmem>>, vector<8x512xf32>
    %356 = arith.truncf %349 : vector<8x128xf32> to vector<8x128xbf16>
    %cst_115 = arith.constant dense<0.000000e+00> : vector<8x512xf32>
    %357 = tpu.matmul %356, %241, %cst_115 {dimension_numbers = #tpu.dot_dimension_numbers<[1], [0], [0], [1], [0, 0, 1, 1], [], []>} : vector<8x128xbf16>, vector<128x512xbf16>, vector<8x512xf32> -> vector<8x512xf32>
    %358 = arith.addf %355, %357 : vector<8x512xf32>
    %359 = vector.extract_strided_slice %358 {offsets = [0, 0], sizes = [8, 384], strides = [1, 1]} : vector<8x512xf32> to vector<8x384xf32>
    %cst_116 = arith.constant 5.000000e-01 : f32
    %360 = vector.broadcast %cst_116 : f32 to vector<8x384xf32>
    %361 = arith.mulf %360, %359 : vector<8x384xf32>
    %362 = math.tanh %361 : vector<8x384xf32>
    %cst_117 = arith.constant 1.000000e+00 : f32
    %363 = vector.broadcast %cst_117 : f32 to vector<8x384xf32>
    %364 = arith.addf %362, %363 : vector<8x384xf32>
    %cst_118 = arith.constant 5.000000e-01 : f32
    %365 = vector.broadcast %cst_118 : f32 to vector<8x384xf32>
    %366 = arith.mulf %365, %364 : vector<8x384xf32>
    %367 = vector.extract_strided_slice %366 {offsets = [0, 0], sizes = [8, 128], strides = [1, 1]} : vector<8x384xf32> to vector<8x128xf32>
    %368 = vector.extract_strided_slice %366 {offsets = [0, 128], sizes = [8, 128], strides = [1, 1]} : vector<8x384xf32> to vector<8x128xf32>
    %369 = vector.extract_strided_slice %366 {offsets = [0, 256], sizes = [8, 128], strides = [1, 1]} : vector<8x384xf32> to vector<8x128xf32>
    %370 = vector.extract_strided_slice %358 {offsets = [0, 384], sizes = [8, 128], strides = [1, 1]} : vector<8x512xf32> to vector<8x128xf32>
    %371 = math.tanh %370 : vector<8x128xf32>
    %372 = arith.mulf %368, %347 : vector<8x128xf32>
    %373 = arith.mulf %367, %371 : vector<8x128xf32>
    %374 = arith.addf %372, %373 : vector<8x128xf32>
    %375 = math.tanh %374 : vector<8x128xf32>
    %376 = arith.mulf %369, %375 : vector<8x128xf32>
    %377 = arith.index_cast %353 : i32 to index
    %c0_119 = arith.constant 0 : index
    %378 = vector.load %arg7[%377, %c0_119] : memref<64x128xf32, #tpu.memory_space<vmem>>, vector<8x128xf32>
    tpu.vector_store %arg7[%377, %c0_119], %376 {strides = array<i32>} : memref<64x128xf32, #tpu.memory_space<vmem>>, vector<8x128xf32>,
    %c5_i32_120 = arith.constant 5 : i32
    %c8_i32_121 = arith.constant 8 : i32
    %379 = arith.muli %c5_i32_120, %c8_i32_121 : i32
    %380 = tpu.assume_multiple %379, 8 : i32
    %381 = arith.index_cast %380 : i32 to index
    %c0_122 = arith.constant 0 : index
    %382 = vector.load %arg8[%381, %c0_122] : memref<64x512xf32, #tpu.memory_space<vmem>>, vector<8x512xf32>
    %383 = arith.truncf %376 : vector<8x128xf32> to vector<8x128xbf16>
    %cst_123 = arith.constant dense<0.000000e+00> : vector<8x512xf32>
    %384 = tpu.matmul %383, %241, %cst_123 {dimension_numbers = #tpu.dot_dimension_numbers<[1], [0], [0], [1], [0, 0, 1, 1], [], []>} : vector<8x128xbf16>, vector<128x512xbf16>, vector<8x512xf32> -> vector<8x512xf32>
    %385 = arith.addf %382, %384 : vector<8x512xf32>
    %386 = vector.extract_strided_slice %385 {offsets = [0, 0], sizes = [8, 384], strides = [1, 1]} : vector<8x512xf32> to vector<8x384xf32>
    %cst_124 = arith.constant 5.000000e-01 : f32
    %387 = vector.broadcast %cst_124 : f32 to vector<8x384xf32>
    %388 = arith.mulf %387, %386 : vector<8x384xf32>
    %389 = math.tanh %388 : vector<8x384xf32>
    %cst_125 = arith.constant 1.000000e+00 : f32
    %390 = vector.broadcast %cst_125 : f32 to vector<8x384xf32>
    %391 = arith.addf %389, %390 : vector<8x384xf32>
    %cst_126 = arith.constant 5.000000e-01 : f32
    %392 = vector.broadcast %cst_126 : f32 to vector<8x384xf32>
    %393 = arith.mulf %392, %391 : vector<8x384xf32>
    %394 = vector.extract_strided_slice %393 {offsets = [0, 0], sizes = [8, 128], strides = [1, 1]} : vector<8x384xf32> to vector<8x128xf32>
    %395 = vector.extract_strided_slice %393 {offsets = [0, 128], sizes = [8, 128], strides = [1, 1]} : vector<8x384xf32> to vector<8x128xf32>
    %396 = vector.extract_strided_slice %393 {offsets = [0, 256], sizes = [8, 128], strides = [1, 1]} : vector<8x384xf32> to vector<8x128xf32>
    %397 = vector.extract_strided_slice %385 {offsets = [0, 384], sizes = [8, 128], strides = [1, 1]} : vector<8x512xf32> to vector<8x128xf32>
    %398 = math.tanh %397 : vector<8x128xf32>
    %399 = arith.mulf %395, %374 : vector<8x128xf32>
    %400 = arith.mulf %394, %398 : vector<8x128xf32>
    %401 = arith.addf %399, %400 : vector<8x128xf32>
    %402 = math.tanh %401 : vector<8x128xf32>
    %403 = arith.mulf %396, %402 : vector<8x128xf32>
    %404 = arith.index_cast %380 : i32 to index
    %c0_127 = arith.constant 0 : index
    %405 = vector.load %arg7[%404, %c0_127] : memref<64x128xf32, #tpu.memory_space<vmem>>, vector<8x128xf32>
    tpu.vector_store %arg7[%404, %c0_127], %403 {strides = array<i32>} : memref<64x128xf32, #tpu.memory_space<vmem>>, vector<8x128xf32>,
    %c6_i32_128 = arith.constant 6 : i32
    %c8_i32_129 = arith.constant 8 : i32
    %406 = arith.muli %c6_i32_128, %c8_i32_129 : i32
    %407 = tpu.assume_multiple %406, 8 : i32
    %408 = arith.index_cast %407 : i32 to index
    %c0_130 = arith.constant 0 : index
    %409 = vector.load %arg8[%408, %c0_130] : memref<64x512xf32, #tpu.memory_space<vmem>>, vector<8x512xf32>
    %410 = arith.truncf %403 : vector<8x128xf32> to vector<8x128xbf16>
    %cst_131 = arith.constant dense<0.000000e+00> : vector<8x512xf32>
    %411 = tpu.matmul %410, %241, %cst_131 {dimension_numbers = #tpu.dot_dimension_numbers<[1], [0], [0], [1], [0, 0, 1, 1], [], []>} : vector<8x128xbf16>, vector<128x512xbf16>, vector<8x512xf32> -> vector<8x512xf32>
    %412 = arith.addf %409, %411 : vector<8x512xf32>
    %413 = vector.extract_strided_slice %412 {offsets = [0, 0], sizes = [8, 384], strides = [1, 1]} : vector<8x512xf32> to vector<8x384xf32>
    %cst_132 = arith.constant 5.000000e-01 : f32
    %414 = vector.broadcast %cst_132 : f32 to vector<8x384xf32>
    %415 = arith.mulf %414, %413 : vector<8x384xf32>
    %416 = math.tanh %415 : vector<8x384xf32>
    %cst_133 = arith.constant 1.000000e+00 : f32
    %417 = vector.broadcast %cst_133 : f32 to vector<8x384xf32>
    %418 = arith.addf %416, %417 : vector<8x384xf32>
    %cst_134 = arith.constant 5.000000e-01 : f32
    %419 = vector.broadcast %cst_134 : f32 to vector<8x384xf32>
    %420 = arith.mulf %419, %418 : vector<8x384xf32>
    %421 = vector.extract_strided_slice %420 {offsets = [0, 0], sizes = [8, 128], strides = [1, 1]} : vector<8x384xf32> to vector<8x128xf32>
    %422 = vector.extract_strided_slice %420 {offsets = [0, 128], sizes = [8, 128], strides = [1, 1]} : vector<8x384xf32> to vector<8x128xf32>
    %423 = vector.extract_strided_slice %420 {offsets = [0, 256], sizes = [8, 128], strides = [1, 1]} : vector<8x384xf32> to vector<8x128xf32>
    %424 = vector.extract_strided_slice %412 {offsets = [0, 384], sizes = [8, 128], strides = [1, 1]} : vector<8x512xf32> to vector<8x128xf32>
    %425 = math.tanh %424 : vector<8x128xf32>
    %426 = arith.mulf %422, %401 : vector<8x128xf32>
    %427 = arith.mulf %421, %425 : vector<8x128xf32>
    %428 = arith.addf %426, %427 : vector<8x128xf32>
    %429 = math.tanh %428 : vector<8x128xf32>
    %430 = arith.mulf %423, %429 : vector<8x128xf32>
    %431 = arith.index_cast %407 : i32 to index
    %c0_135 = arith.constant 0 : index
    %432 = vector.load %arg7[%431, %c0_135] : memref<64x128xf32, #tpu.memory_space<vmem>>, vector<8x128xf32>
    tpu.vector_store %arg7[%431, %c0_135], %430 {strides = array<i32>} : memref<64x128xf32, #tpu.memory_space<vmem>>, vector<8x128xf32>,
    %c7_i32_136 = arith.constant 7 : i32
    %c8_i32_137 = arith.constant 8 : i32
    %433 = arith.muli %c7_i32_136, %c8_i32_137 : i32
    %434 = tpu.assume_multiple %433, 8 : i32
    %435 = arith.index_cast %434 : i32 to index
    %c0_138 = arith.constant 0 : index
    %436 = vector.load %arg8[%435, %c0_138] : memref<64x512xf32, #tpu.memory_space<vmem>>, vector<8x512xf32>
    %437 = arith.truncf %430 : vector<8x128xf32> to vector<8x128xbf16>
    %cst_139 = arith.constant dense<0.000000e+00> : vector<8x512xf32>
    %438 = tpu.matmul %437, %241, %cst_139 {dimension_numbers = #tpu.dot_dimension_numbers<[1], [0], [0], [1], [0, 0, 1, 1], [], []>} : vector<8x128xbf16>, vector<128x512xbf16>, vector<8x512xf32> -> vector<8x512xf32>
    %439 = arith.addf %436, %438 : vector<8x512xf32>
    %440 = vector.extract_strided_slice %439 {offsets = [0, 0], sizes = [8, 384], strides = [1, 1]} : vector<8x512xf32> to vector<8x384xf32>
    %cst_140 = arith.constant 5.000000e-01 : f32
    %441 = vector.broadcast %cst_140 : f32 to vector<8x384xf32>
    %442 = arith.mulf %441, %440 : vector<8x384xf32>
    %443 = math.tanh %442 : vector<8x384xf32>
    %cst_141 = arith.constant 1.000000e+00 : f32
    %444 = vector.broadcast %cst_141 : f32 to vector<8x384xf32>
    %445 = arith.addf %443, %444 : vector<8x384xf32>
    %cst_142 = arith.constant 5.000000e-01 : f32
    %446 = vector.broadcast %cst_142 : f32 to vector<8x384xf32>
    %447 = arith.mulf %446, %445 : vector<8x384xf32>
    %448 = vector.extract_strided_slice %447 {offsets = [0, 0], sizes = [8, 128], strides = [1, 1]} : vector<8x384xf32> to vector<8x128xf32>
    %449 = vector.extract_strided_slice %447 {offsets = [0, 128], sizes = [8, 128], strides = [1, 1]} : vector<8x384xf32> to vector<8x128xf32>
    %450 = vector.extract_strided_slice %447 {offsets = [0, 256], sizes = [8, 128], strides = [1, 1]} : vector<8x384xf32> to vector<8x128xf32>
    %451 = vector.extract_strided_slice %439 {offsets = [0, 384], sizes = [8, 128], strides = [1, 1]} : vector<8x512xf32> to vector<8x128xf32>
    %452 = math.tanh %451 : vector<8x128xf32>
    %453 = arith.mulf %449, %428 : vector<8x128xf32>
    %454 = arith.mulf %448, %452 : vector<8x128xf32>
    %455 = arith.addf %453, %454 : vector<8x128xf32>
    %456 = math.tanh %455 : vector<8x128xf32>
    %457 = arith.mulf %450, %456 : vector<8x128xf32>
    %458 = arith.index_cast %434 : i32 to index
    %c0_143 = arith.constant 0 : index
    %459 = vector.load %arg7[%458, %c0_143] : memref<64x128xf32, #tpu.memory_space<vmem>>, vector<8x128xf32>
    tpu.vector_store %arg7[%458, %c0_143], %457 {strides = array<i32>} : memref<64x128xf32, #tpu.memory_space<vmem>>, vector<8x128xf32>,
    %c8_i32_144 = arith.constant 8 : i32
    return
  }
}

</mosaic_0001>

<bundles_post_ra>
// kernel: _fused_lstm.1
= control target key start
LH: loop header
LB: loop body
LE: loop exit
PB: predicated region body
PF: predicated region fallthrough
CT: control target
= control target key end

     0   :  { %12 = vsyncpa [#allocation5], 0  ;;  %s5015_s0 = inlined_call_operand.vmem [shape: bf16[64,128], index: 0, kind: input, shape index: {}]   ;;  %s5016_s1 = inlined_call_operand.hbm [shape: bf16[128,512], index: 1, kind: input, shape index: {}]   ;;  %s5017_s2 = inlined_call_operand.hbm [shape: bf16[128,512], index: 2, kind: input, shape index: {}]   ;;  %s5018_s3 = inlined_call_operand.vmem [shape: f32[1,512], index: 3, kind: input, shape index: {}]   ;;  %s5019_s4 = inlined_call_operand.hbm [shape: bf16[128,512], index: 4, kind: input, shape index: {}]   ;;  %s5020_s5 = inlined_call_operand.hbm [shape: bf16[128,512], index: 5, kind: input, shape index: {}]   ;;  %s5021_s6 = inlined_call_operand.vmem [shape: f32[1,512], index: 6, kind: input, shape index: {}]   ;;  %s5022_s7 = inlined_call_operand.hbm [shape: f32[64,128], index: 7, kind: output, shape index: {}]  }
   0x1   :  { %13 = vsyncpa [#allocation8], 0 }
   0x2   :  { %14 = vsyncpa [#allocation11], 0 }
   0x3   :  { %15 = vsyncpa [#allocation6], 0  ;;  %s3816_s24 = smov [#allocation7]   ;;  %s3817_s26 = smov [#allocation4]  }
   0x4   :  { %s35_s25 = sshll.u32 %s3816_s24, 4  ;;  %s23_s27 = sshll.u32 %s3817_s26, 4  ;;  %s36_s25 = int_to_ptr.vmem [resolvable:$true] %s35_s25  ;;  %s24_s27 = int_to_ptr.vmem [resolvable:$true] %s23_s27 }
   0x5   :  { %s3716_s28 = scalar_lea.vmem %s36_s25, 4096  ;;  %p3721_p1 = scmp.lt.s32.totalorder %s36_s25, %s36_s25 }
   0x6   :  { %p3717_p0 = scmp.ne.s32.totalorder %s36_s25, %s3716_s28  ;;  %p3722_p2 = scmp.lt.s32.totalorder %s3716_s28, %s3716_s28 }
   0x8   :  { %p3723_p3 = por %p3722_p2, %p3721_p1 }
   0xa   :  { %p3724_p4 = pnand %p3723_p3, %p3717_p0 }
   0xc   :  { %3727 = shalt.err (!%p3724_p4)
}
   0xd   :  { %s3818_s29 = smov 256   ;;  %s3819_s30 = smov 16  }
   0xe   :  { %41 = dma.hbm_to_vmem [thread:$0]  %s5017_s2, 4096, %s36_s25, [#allocation8], %s3818_s29, %s3818_s29, %s3819_s30  }
   0xf   :  { %s3736_s10 = scalar_lea.vmem %s24_s27, 4096  ;;  %p3741_p6 = scmp.lt.s32.totalorder %s24_s27, %s24_s27 }
  0x10   :  { %p3737_p5 = scmp.ne.s32.totalorder %s24_s27, %s3736_s10  ;;  %p3742_p7 = scmp.lt.s32.totalorder %s3736_s10, %s3736_s10 }
  0x12   :  { %p3743_p8 = por %p3742_p7, %p3741_p6 }
  0x14   :  { %p3744_p9 = pnand %p3743_p8, %p3737_p5 }
  0x16   :  { %3747 = shalt.err (!%p3744_p9)
}
  0x17   :  { %29 = dma.hbm_to_vmem [thread:$0]  %s5016_s1, 4096, %s24_s27, [#allocation5], %s3818_s29, %s3818_s29, %s3819_s30  }
  0x18   :  { %s3820_s13 = smov [#allocation9]   ;;  %s3821_s15 = smov [#allocation10]  }
  0x19   :  { %s49_s14 = sshll.u32 %s3820_s13, 4  ;;  %s61_s16 = sshll.u32 %s3821_s15, 4  ;;  %s50_s14 = int_to_ptr.vmem [resolvable:$true] %s49_s14  ;;  %s62_s16 = int_to_ptr.vmem [resolvable:$true] %s61_s16 }
  0x1a   :  { %s3756_s2 = scalar_lea.vmem %s50_s14, 4096  ;;  %p3761_p11 = scmp.lt.s32.totalorder %s50_s14, %s50_s14 }
  0x1b   :  { %p3757_p10 = scmp.ne.s32.totalorder %s50_s14, %s3756_s2  ;;  %p3762_p12 = scmp.lt.s32.totalorder %s3756_s2, %s3756_s2 }
  0x1d   :  { %p3763_p13 = por %p3762_p12, %p3761_p11 }
  0x1f   :  { %p3764_p0 = pnand %p3763_p13, %p3757_p10 }
  0x21   :  { %3767 = shalt.err (!%p3764_p0)
}
  0x22   :  { %55 = dma.hbm_to_vmem [thread:$0]  %s5019_s4, 4096, %s50_s14, [#allocation8], %s3818_s29, %s3818_s29, %s3819_s30  }
  0x23   :  { %s3776_s1 = scalar_lea.vmem %s62_s16, 4096  ;;  %p3781_p2 = scmp.lt.s32.totalorder %s62_s16, %s62_s16 }
  0x24   :  { %p3777_p1 = scmp.ne.s32.totalorder %s62_s16, %s3776_s1  ;;  %p3782_p3 = scmp.lt.s32.totalorder %s3776_s1, %s3776_s1 }
  0x26   :  { %p3783_p4 = por %p3782_p3, %p3781_p2 }
  0x28   :  { %p3784_p5 = pnand %p3783_p4, %p3777_p1 }
  0x2a   :  { %3787 = shalt.err (!%p3784_p5)
}
  0x2b   :  { %67 = dma.hbm_to_vmem [thread:$0]  %s5020_s5, 4096, %s62_s16, [#allocation11], %s3818_s29, %s3818_s29, %s3819_s30  }
  0x2c   :  { %3808 = dma.done.wait [#allocation5], 4096  }
  0x2d   :  { %3809 = vsyncadd [#allocation5], 4294963200 }
  0x2e   :  { %3810 = dma.done.wait [#allocation8], 8192  }
  0x2f   :  { %3811 = vsyncadd [#allocation8], 4294959104 }
  0x30   :  { %3812 = dma.done.wait [#allocation11], 4096  }
  0x31   :  { %3813 = vsyncadd [#allocation11], 4294963200  ;;  %v5027_v0 = vmov 0   ;;  %v3284_v1 = vld [vmem:[#allocation4 + $0xe4] ss:$16 sps:$4 sm:$0xff]   ;;  %v3345_v44 = vld [vmem:[%s5015_s0 + $0x8] sm:$0xff]  }
  0x32   :  { %361 = vmatprep.mubr.bf16.mxu0 %v5027_v0  ;;  %434 = vmatprep.mubr.bf16.mxu1 %v5027_v0  ;;  %v3286_v2 = vld [vmem:[#allocation4 + $0xec] ss:$16 sps:$4 sm:$0xff]   ;;  %v3288_v3 = vld [vmem:[#allocation4 + $0xe0] ss:$16 sps:$4 sm:$0xff]   ;;  %v3289_v4 = vld [vmem:[#allocation4 + $0xe8] ss:$16 sps:$4 sm:$0xff]  }
  0x33   :  { %329 = vmatprep.subr.bf16.mxu0 %v3284_v1  ;;  %402 = vmatprep.subr.bf16.mxu1 %v3286_v2  ;;  %v3290_v5 = vld [vmem:[#allocation4 + $0xc4] ss:$16 sps:$4 sm:$0xff]   ;;  %v3292_v6 = vld [vmem:[#allocation4 + $0xcc] ss:$16 sps:$4 sm:$0xff]   ;;  %v3294_v7 = vld [vmem:[#allocation4 + $0xc0] ss:$16 sps:$4 sm:$0xff]  }
  0x34   :  { %330 = vmatpush1.bf16.msra.mxu0 %v3288_v3  ;;  %403 = vmatpush1.bf16.msra.mxu1 %v3289_v4  ;;  %v3295_v8 = vld [vmem:[#allocation4 + $0xc8] ss:$16 sps:$4 sm:$0xff]   ;;  %v3296_v9 = vld [vmem:[#allocation4 + $0xa4] ss:$16 sps:$4 sm:$0xff]   ;;  %v3298_v10 = vld [vmem:[#allocation4 + $0xac] ss:$16 sps:$4 sm:$0xff]  }
  0x35   :  { %331 = vmatprep.subr.bf16.mxu0 %v3290_v5  ;;  %404 = vmatprep.subr.bf16.mxu1 %v3292_v6  ;;  %v3300_v11 = vld [vmem:[#allocation4 + $0xa0] ss:$16 sps:$4 sm:$0xff]   ;;  %v3301_v12 = vld [vmem:[#allocation4 + $0xa8] ss:$16 sps:$4 sm:$0xff]   ;;  %v3302_v13 = vld [vmem:[#allocation4 + $0x84] ss:$16 sps:$4 sm:$0xff]   ;;  %v125_v6 = vlaneseq }
  0x36   :  { %v3304_v14 = vld [vmem:[#allocation4 + $0x8c] ss:$16 sps:$4 sm:$0xff]   ;;  %v3306_v15 = vld [vmem:[#allocation4 + $0x80] ss:$16 sps:$4 sm:$0xff]   ;;  %v3307_v16 = vld [vmem:[#allocation4 + $0x88] ss:$16 sps:$4 sm:$0xff]  }
  0x37   :  { %v3308_v17 = vld [vmem:[#allocation4 + $0x64] ss:$16 sps:$4 sm:$0xff]   ;;  %v3310_v18 = vld [vmem:[#allocation4 + $0x6c] ss:$16 sps:$4 sm:$0xff]   ;;  %v3312_v19 = vld [vmem:[#allocation4 + $0x60] ss:$16 sps:$4 sm:$0xff]  }
  0x38   :  { %332 = vmatpush1.bf16.msra.mxu0 %v3294_v7  ;;  %405 = vmatpush1.bf16.msra.mxu1 %v3295_v8  ;;  %v3313_v20 = vld [vmem:[#allocation4 + $0x68] ss:$16 sps:$4 sm:$0xff]   ;;  %v3314_v21 = vld [vmem:[#allocation4 + $0x44] ss:$16 sps:$4 sm:$0xff]   ;;  %v3316_v22 = vld [vmem:[#allocation4 + $0x4c] ss:$16 sps:$4 sm:$0xff]  }
  0x39   :  { %333 = vmatprep.subr.bf16.mxu0 %v3296_v9  ;;  %406 = vmatprep.subr.bf16.mxu1 %v3298_v10  ;;  %v3318_v23 = vld [vmem:[#allocation4 + $0x40] ss:$16 sps:$4 sm:$0xff]   ;;  %v3319_v24 = vld [vmem:[#allocation4 + $0x48] ss:$16 sps:$4 sm:$0xff]   ;;  %v3320_v25 = vld [vmem:[#allocation4 + $0x24] ss:$16 sps:$4 sm:$0xff]  }
  0x3a   :  { %v3322_v26 = vld [vmem:[#allocation4 + $0x2c] ss:$16 sps:$4 sm:$0xff]   ;;  %v3324_v27 = vld [vmem:[#allocation4 + $0x20] ss:$16 sps:$4 sm:$0xff]   ;;  %v3325_v28 = vld [vmem:[#allocation4 + $0x28] ss:$16 sps:$4 sm:$0xff]  }
  0x3b   :  { %v3326_v29 = vld [vmem:[#allocation4 + $0x4] ss:$16 sps:$4 sm:$0xff]   ;;  %v3328_v30 = vld [vmem:[#allocation4 + $0xc] ss:$16 sps:$4 sm:$0xff]   ;;  %v3330_v31 = vld [vmem:[#allocation4] ss:$16 sps:$4 sm:$0xff]  }
  0x3c   :  { %334 = vmatpush1.bf16.msra.mxu0 %v3300_v11  ;;  %407 = vmatpush1.bf16.msra.mxu1 %v3301_v12  ;;  %v3331_v32 = vld [vmem:[#allocation4 + $0x8] ss:$16 sps:$4 sm:$0xff]   ;;  %v3892_v33 = vld [vmem:[#allocation7 + $0xe4] ss:$16 sps:$4 sm:$0xff]   ;;  %v3894_v34 = vld [vmem:[#allocation7 + $0xec] ss:$16 sps:$4 sm:$0xff]  }
  0x3d   :  { %335 = vmatprep.subr.bf16.mxu0 %v3302_v13  ;;  %408 = vmatprep.subr.bf16.mxu1 %v3304_v14  ;;  %v3332_v35 = vld [vmem:[%s5015_s0] sm:$0xff]   ;;  %v3901_v37 = vld [vmem:[#allocation7 + $0xe8] ss:$16 sps:$4 sm:$0xff]   ;;  %v3907_v39 = vld [vmem:[#allocation7 + $0xcc] ss:$16 sps:$4 sm:$0xff]   ;;  %v4046_v7 = vshrl.u32 %v125_v6, 7 }
  0x3e   :  { %v3899_v36 = vld [vmem:[#allocation7 + $0xe0] ss:$16 sps:$4 sm:$0xff]   ;;  %v3905_v38 = vld [vmem:[#allocation7 + $0xc4] ss:$16 sps:$4 sm:$0xff]   ;;  %v3913_v41 = vld [vmem:[#allocation7 + $0xc8] ss:$16 sps:$4 sm:$0xff]  }
  0x3f   :  { %v3909_v40 = vld [vmem:[#allocation7 + $0xc0] ss:$16 sps:$4 sm:$0xff]   ;;  %v3917_v42 = vld [vmem:[#allocation7 + $0xa4] ss:$16 sps:$4 sm:$0xff]   ;;  %v3919_v43 = vld [vmem:[#allocation7 + $0xac] ss:$16 sps:$4 sm:$0xff]  }
  0x40   :  { %336 = vmatpush1.bf16.msra.mxu0 %v3306_v15  ;;  %409 = vmatpush1.bf16.msra.mxu1 %v3307_v16  ;;  %v3926_v45 = vld [vmem:[#allocation7 + $0xa0] ss:$16 sps:$4 sm:$0xff]   ;;  %v3928_v46 = vld [vmem:[#allocation7 + $0xa8] ss:$16 sps:$4 sm:$0xff]   ;;  %v3932_v47 = vld [vmem:[#allocation7 + $0x84] ss:$16 sps:$4 sm:$0xff]  }
  0x41   :  { %337 = vmatprep.subr.bf16.mxu0 %v3308_v17  ;;  %410 = vmatprep.subr.bf16.mxu1 %v3310_v18  ;;  %v3936_v48 = vld [vmem:[#allocation7 + $0x8c] ss:$16 sps:$4 sm:$0xff]   ;;  %v3938_v49 = vld [vmem:[#allocation7 + $0x80] ss:$16 sps:$4 sm:$0xff]   ;;  %v3940_v50 = vld [vmem:[#allocation7 + $0x88] ss:$16 sps:$4 sm:$0xff]  }
  0x42   :  { %v3944_v51 = vld [vmem:[#allocation7 + $0x64] ss:$16 sps:$4 sm:$0xff]   ;;  %v3948_v52 = vld [vmem:[#allocation7 + $0x6c] ss:$16 sps:$4 sm:$0xff]   ;;  %v3955_v54 = vld [vmem:[#allocation7 + $0x60] ss:$16 sps:$4 sm:$0xff]  }
  0x43   :  { %v3358_v53 = vld [vmem:[%s5015_s0 + $0x10] sm:$0xff]   ;;  %v3957_v55 = vld [vmem:[#allocation7 + $0x68] ss:$16 sps:$4 sm:$0xff]   ;;  %v3961_v57 = vld [vmem:[#allocation7 + $0x4c] ss:$16 sps:$4 sm:$0xff]   ;;  %5031 = vst [vmem:[#allocation17_spill] sm:$0xff] %v4046_v7 }
  0x44   :  { %338 = vmatpush1.bf16.msra.mxu0 %v3312_v19  ;;  %411 = vmatpush1.bf16.msra.mxu1 %v3313_v20  ;;  %v3959_v56 = vld [vmem:[#allocation7 + $0x44] ss:$16 sps:$4 sm:$0xff]   ;;  %v3967_v58 = vld [vmem:[#allocation7 + $0x40] ss:$16 sps:$4 sm:$0xff]   ;;  %v3969_v59 = vld [vmem:[#allocation7 + $0x48] ss:$16 sps:$4 sm:$0xff]  }
  0x45   :  { %339 = vmatprep.subr.bf16.mxu0 %v3314_v21  ;;  %412 = vmatprep.subr.bf16.mxu1 %v3316_v22  ;;  %v3971_v60 = vld [vmem:[#allocation7 + $0x24] ss:$16 sps:$4 sm:$0xff]   ;;  %v3973_v61 = vld [vmem:[#allocation7 + $0x2c] ss:$16 sps:$4 sm:$0xff]   ;;  %v3984_v63 = vld [vmem:[#allocation7 + $0x20] ss:$16 sps:$4 sm:$0xff]  }
  0x46   :  { %v3371_v62 = vld [vmem:[%s5015_s0 + $0x18] sm:$0xff]   ;;  %v3988_v2 = vld [vmem:[#allocation7 + $0x4] ss:$16 sps:$4 sm:$0xff]   ;;  %v3996_v4 = vld [vmem:[#allocation7] ss:$16 sps:$4 sm:$0xff]   ;;  %v5023_v8 = vsub.s32 2, %v4046_v7 }
  0x47   :  { %v3986_v1 = vld [vmem:[#allocation7 + $0x28] ss:$16 sps:$4 sm:$0xff]   ;;  %v3990_v3 = vld [vmem:[#allocation7 + $0xc] ss:$16 sps:$4 sm:$0xff]   ;;  %v5026_v9 = vsub.s32 0, %v4046_v7  ;;  %v5024_v10 = vsub.s32 3, %v4046_v7 }
  0x48   :  { %340 = vmatpush1.bf16.msra.mxu0 %v3318_v23  ;;  %413 = vmatpush1.bf16.msra.mxu1 %v3319_v24  ;;  %v3998_v5 = vld [vmem:[#allocation7 + $0x8] ss:$16 sps:$4 sm:$0xff]   ;;  %v123_v11 = vld [vmem:[%s5018_s3] sm:$0xf]  ;;  %v5025_v15 = vsub.s32 1, %v4046_v7 }
  0x49   :  { %341 = vmatprep.subr.bf16.mxu0 %v3320_v25  ;;  %414 = vmatprep.subr.bf16.mxu1 %v3322_v26  ;;  %v4060_v14 = vrot.slane %v123_v11, %v5023_v8  ;;  %v128_v18 = vrot.slane %v123_v11, %v5026_v9  ;;  %v4071_v19 = vrot.slane %v123_v11, %v5024_v10 }
  0x4a   :  { %v132_v22 = vrot.slane %v123_v11, %v5025_v15 }
  0x4c   :  { %342 = vmatpush1.bf16.msra.mxu0 %v3324_v27  ;;  %415 = vmatpush1.bf16.msra.mxu1 %v3325_v28 }
  0x4d   :  { %343 = vmatprep.subr.bf16.mxu0 %v3326_v29  ;;  %416 = vmatprep.subr.bf16.mxu1 %v3328_v30 }
  0x50   :  { %344 = vmatpush1.bf16.msra.mxu0 %v3330_v31  ;;  %417 = vmatpush1.bf16.msra.mxu1 %v3331_v32 }
  0x51   :  { %706 = vmatprep.subr.bf16.mxu0 %v3892_v33  ;;  %747 = vmatprep.subr.bf16.mxu1 %v3894_v34 }
  0x53   :  { %362 = vmatmul.mubr.bf16.vlgmr.msra.gmra.mxu0 %v3332_v35  ;;  %435 = vmatmul.mubr.bf16.vlgmr.msra.gmra.mxu1 %v3332_v35 }
  0x54   :  { %707 = vmatpush1.bf16.msra.mxu0 %v3899_v36  ;;  %748 = vmatpush1.bf16.msra.mxu1 %v3901_v37 }
  0x55   :  { %708 = vmatprep.subr.bf16.mxu0 %v3905_v38  ;;  %749 = vmatprep.subr.bf16.mxu1 %v3907_v39 }
  0x56   :  { %371 = vmatprep.mubr.bf16.mxu0 %v5027_v0  ;;  %444 = vmatprep.mubr.bf16.mxu1 %v5027_v0 }
  0x58   :  { %709 = vmatpush1.bf16.msra.mxu0 %v3909_v40  ;;  %750 = vmatpush1.bf16.msra.mxu1 %v3913_v41 }
  0x59   :  { %710 = vmatprep.subr.bf16.mxu0 %v3917_v42  ;;  %751 = vmatprep.subr.bf16.mxu1 %v3919_v43 }
  0x5b   :  { %372 = vmatmul.mubr.bf16.gmra.mxu0 %v3345_v44  ;;  %445 = vmatmul.mubr.bf16.gmra.mxu1 %v3345_v44 }
  0x5c   :  { %711 = vmatpush1.bf16.msra.mxu0 %v3926_v45  ;;  %752 = vmatpush1.bf16.msra.mxu1 %v3928_v46 }
  0x5d   :  { %712 = vmatprep.subr.bf16.mxu0 %v3932_v47  ;;  %753 = vmatprep.subr.bf16.mxu1 %v3936_v48 }
  0x5e   :  { %381 = vmatprep.mubr.bf16.mxu0 %v5027_v0  ;;  %454 = vmatprep.mubr.bf16.mxu1 %v5027_v0 }
  0x60   :  { %713 = vmatpush1.bf16.msra.mxu0 %v3938_v49  ;;  %754 = vmatpush1.bf16.msra.mxu1 %v3940_v50 }
  0x61   :  { %714 = vmatprep.subr.bf16.mxu0 %v3944_v51  ;;  %755 = vmatprep.subr.bf16.mxu1 %v3948_v52 }
  0x63   :  { %382 = vmatmul.mubr.bf16.gmra.mxu0 %v3358_v53  ;;  %455 = vmatmul.mubr.bf16.gmra.mxu1 %v3358_v53 }
  0x64   :  { %715 = vmatpush1.bf16.msra.mxu0 %v3955_v54  ;;  %756 = vmatpush1.bf16.msra.mxu1 %v3957_v55 }
  0x65   :  { %716 = vmatprep.subr.bf16.mxu0 %v3959_v56  ;;  %757 = vmatprep.subr.bf16.mxu1 %v3961_v57 }
  0x66   :  { %391 = vmatprep.mubr.bf16.mxu0 %v5027_v0  ;;  %464 = vmatprep.mubr.bf16.mxu1 %v5027_v0 }
  0x68   :  { %717 = vmatpush1.bf16.msra.mxu0 %v3967_v58  ;;  %758 = vmatpush1.bf16.msra.mxu1 %v3969_v59 }
  0x69   :  { %718 = vmatprep.subr.bf16.mxu0 %v3971_v60  ;;  %759 = vmatprep.subr.bf16.mxu1 %v3973_v61 }
  0x6b   :  { %392 = vmatmul.mubr.bf16.gmra.mxu0 %v3371_v62  ;;  %465 = vmatmul.mubr.bf16.gmra.mxu1 %v3371_v62 }
  0x6c   :  { %719 = vmatpush1.bf16.msra.mxu0 %v3984_v63  ;;  %760 = vmatpush1.bf16.msra.mxu1 %v3986_v1 }
  0x6d   :  { %720 = vmatprep.subr.bf16.mxu0 %v3988_v2  ;;  %761 = vmatprep.subr.bf16.mxu1 %v3990_v3 }
  0x6e   :  { %738 = vmatprep.mubr.bf16.mxu0 %v5027_v0  ;;  %779 = vmatprep.mubr.bf16.mxu1 %v5027_v0 }
  0x70   :  { %721 = vmatpush1.bf16.msra.mxu0 %v3996_v4  ;;  %762 = vmatpush1.bf16.msra.mxu1 %v3998_v5 }
  0x71   :  { %819 = vmatprep.subr.bf16.mxu0 %v3892_v33  ;;  %860 = vmatprep.subr.bf16.mxu1 %v3894_v34 }
  0x73   :  { %739 = vmatmul.mubr.bf16.vlgmr.msra.gmra.mxu0 %v5027_v0  ;;  %780 = vmatmul.mubr.bf16.vlgmr.msra.gmra.mxu1 %v5027_v0 }
  0x74   :  { %820 = vmatpush1.bf16.msra.mxu0 %v3899_v36  ;;  %861 = vmatpush1.bf16.msra.mxu1 %v3901_v37 }
  0x75   :  { %821 = vmatprep.subr.bf16.mxu0 %v3905_v38  ;;  %862 = vmatprep.subr.bf16.mxu1 %v3907_v39 }
  0x76   :  { %851 = vmatprep.mubr.bf16.mxu0 %v5027_v0  ;;  %892 = vmatprep.mubr.bf16.mxu1 %v5027_v0 }
  0x78   :  { %822 = vmatpush1.bf16.msra.mxu0 %v3909_v40  ;;  %863 = vmatpush1.bf16.msra.mxu1 %v3913_v41 }
  0x79   :  { %823 = vmatprep.subr.bf16.mxu0 %v3917_v42  ;;  %864 = vmatprep.subr.bf16.mxu1 %v3919_v43 }
  0x7c   :  { %824 = vmatpush1.bf16.msra.mxu0 %v3926_v45  ;;  %865 = vmatpush1.bf16.msra.mxu1 %v3928_v46 }
  0x7d   :  { %825 = vmatprep.subr.bf16.mxu0 %v3932_v47  ;;  %866 = vmatprep.subr.bf16.mxu1 %v3936_v48 }
  0x80   :  { %826 = vmatpush1.bf16.msra.mxu0 %v3938_v49  ;;  %867 = vmatpush1.bf16.msra.mxu1 %v3940_v50 }
  0x81   :  { %827 = vmatprep.subr.bf16.mxu0 %v3944_v51  ;;  %868 = vmatprep.subr.bf16.mxu1 %v3948_v52 }
  0x84   :  { %828 = vmatpush1.bf16.msra.mxu0 %v3955_v54  ;;  %869 = vmatpush1.bf16.msra.mxu1 %v3957_v55 }
  0x85   :  { %829 = vmatprep.subr.bf16.mxu0 %v3959_v56  ;;  %870 = vmatprep.subr.bf16.mxu1 %v3961_v57 }
  0x88   :  { %830 = vmatpush1.bf16.msra.mxu0 %v3967_v58  ;;  %871 = vmatpush1.bf16.msra.mxu1 %v3969_v59 }
  0x89   :  { %831 = vmatprep.subr.bf16.mxu0 %v3971_v60  ;;  %872 = vmatprep.subr.bf16.mxu1 %v3973_v61 }
  0x8c   :  { %832 = vmatpush1.bf16.msra.mxu0 %v3984_v63  ;;  %873 = vmatpush1.bf16.msra.mxu1 %v3986_v1 }
  0x8d   :  { %833 = vmatprep.subr.bf16.mxu0 %v3988_v2  ;;  %874 = vmatprep.subr.bf16.mxu1 %v3990_v3 }
  0x90   :  { %834 = vmatpush1.bf16.msra.mxu0 %v3996_v4  ;;  %875 = vmatpush1.bf16.msra.mxu1 %v3998_v5 }
  0x91   :  { %933 = vmatprep.subr.bf16.mxu0 %v3892_v33  ;;  %974 = vmatprep.subr.bf16.mxu1 %v3894_v34 }
 0x113   :  { %v4054_v12 = vpop.f32.mrf.mxu0  ;;  %v4056_v13 = vpop.f32.mrf.mxu1 }
 0x115   :  { %v4063_v16 = vpop.f32.mrf.mxu0  ;;  %v4065_v17 = vpop.f32.mrf.mxu1 }
 0x117   :  { %v367_v20 = vpop.f32.mrf.mxu0  ;;  %v440_v21 = vpop.f32.mrf.mxu1 }
 0x118   :  { %v4075_v23 = vadd.f32 %v367_v20, %v128_v18  ;;  %v4078_v24 = vadd.f32 %v440_v21, %v4060_v14 }
 0x119   :  { %v369_v25 = vpop.f32.mrf.mxu0  ;;  %v442_v26 = vpop.f32.mrf.mxu1 }
 0x11a   :  { %v4080_v27 = vadd.f32 %v369_v25, %v132_v22  ;;  %v4083_v28 = vadd.f32 %v442_v26, %v4071_v19 }
 0x11b   :  { %v373_v29 = vpop.f32.mrf.mxu0  ;;  %v446_v30 = vpop.f32.mrf.mxu1 }
 0x11c   :  { %v4085_v31 = vadd.f32 %v373_v29, %v128_v18  ;;  %v4088_v32 = vadd.f32 %v446_v30, %v4060_v14 }
 0x11d   :  { %v375_v35 = vpop.f32.mrf.mxu0  ;;  %v448_v44 = vpop.f32.mrf.mxu1 }
 0x11e   :  { %v4090_v53 = vadd.f32 %v375_v35, %v132_v22  ;;  %v4093_v62 = vadd.f32 %v448_v44, %v4071_v19 }
 0x11f   :  { %v377_v6 = vpop.f32.mrf.mxu0  ;;  %v450_v11 = vpop.f32.mrf.mxu1 }
 0x120   :  { %v4095_v20 = vadd.f32 %v377_v6, %v128_v18  ;;  %v4098_v21 = vadd.f32 %v450_v11, %v4060_v14 }
 0x121   :  { %v379_v25 = vpop.f32.mrf.mxu0  ;;  %v452_v26 = vpop.f32.mrf.mxu1 }
 0x122   :  { %5032 = vst [vmem:[#allocation18_spill] sm:$0xff] %v4095_v20  ;;  %5033 = vst [vmem:[#allocation19_spill] sm:$0xff] %v4098_v21  ;;  %v4100_v29 = vadd.f32 %v379_v25, %v132_v22  ;;  %v4103_v30 = vadd.f32 %v452_v26, %v4071_v19  ;;  %v439_v20 = vadd.f32 %v4065_v17, %v4071_v19 }
 0x123   :  { %v383_v8 = vpop.f32.mrf.mxu0  ;;  %v456_v35 = vpop.f32.mrf.mxu1 }
 0x124   :  { %5034 = vst [vmem:[#allocation20_spill] sm:$0xff] %v4100_v29  ;;  %5035 = vst [vmem:[#allocation21_spill] sm:$0xff] %v4103_v30  ;;  %v4105_v10 = vadd.f32 %v383_v8, %v128_v18  ;;  %v4108_v44 = vadd.f32 %v456_v35, %v4060_v14 }
 0x125   :  { %v385_v15 = vpop.f32.mrf.mxu0  ;;  %v458_v6 = vpop.f32.mrf.mxu1 }
 0x126   :  { %5036 = vst [vmem:[#allocation22_spill] sm:$0xff] %v4105_v10  ;;  %5037 = vst [vmem:[#allocation23_spill] sm:$0xff] %v4108_v44  ;;  %v4110_v9 = vadd.f32 %v385_v15, %v132_v22  ;;  %v4113_v11 = vadd.f32 %v458_v6, %v4071_v19 }
 0x127   :  { %v387_v0 = vpop.f32.mrf.mxu0  ;;  %v460_v25 = vpop.f32.mrf.mxu1 }
 0x128   :  { %5038 = vst [vmem:[#allocation24_spill] sm:$0xff] %v4110_v9  ;;  %5039 = vst [vmem:[#allocation25_spill] sm:$0xff] %v4113_v11  ;;  %v4115_v7 = vadd.f32 %v387_v0, %v128_v18  ;;  %v4118_v26 = vadd.f32 %v460_v25, %v4060_v14 }
 0x129   :  { %v389_v21 = vpop.f32.mrf.mxu0  ;;  %v462_v8 = vpop.f32.mrf.mxu1 }
 0x12a   :  { %5040 = vst [vmem:[#allocation26_spill] sm:$0xff] %v4115_v7  ;;  %5041 = vst [vmem:[#allocation27_spill] sm:$0xff] %v4118_v26  ;;  %v4120_v10 = vadd.f32 %v389_v21, %v132_v22  ;;  %v4123_v35 = vadd.f32 %v462_v8, %v4071_v19 }
 0x12b   :  { %v393_v44 = vpop.f32.mrf.mxu0  ;;  %v466_v15 = vpop.f32.mrf.mxu1 }
 0x12c   :  { %5042 = vst [vmem:[#allocation28_spill] sm:$0xff] %v4120_v10  ;;  %5043 = vst [vmem:[#allocation29_spill] sm:$0xff] %v4123_v35  ;;  %v4125_v9 = vadd.f32 %v393_v44, %v128_v18  ;;  %v4128_v6 = vadd.f32 %v466_v15, %v4060_v14 }
 0x12d   :  { %v395_v11 = vpop.f32.mrf.mxu0  ;;  %v468_v0 = vpop.f32.mrf.mxu1 }
 0x12e   :  { %5044 = vst [vmem:[#allocation30_spill] sm:$0xff] %v4125_v9  ;;  %5045 = vst [vmem:[#allocation31_spill] sm:$0xff] %v4128_v6  ;;  %v4130_v7 = vadd.f32 %v395_v11, %v132_v22  ;;  %v4133_v25 = vadd.f32 %v468_v0, %v4071_v19  ;;  %v364_v9 = vadd.f32 %v4054_v12, %v128_v18 }
 0x12f   :  { %v397_v26 = vpop.f32.mrf.mxu0  ;;  %v470_v21 = vpop.f32.mrf.mxu1  ;;  %v366_v0 = vadd.f32 %v4063_v16, %v132_v22 }
 0x130   :  { %5046 = vst [vmem:[#allocation32_spill] sm:$0xff] %v4130_v7  ;;  %5047 = vst [vmem:[#allocation33_spill] sm:$0xff] %v4133_v25  ;;  %v4135_v10 = vadd.f32 %v397_v26, %v128_v18  ;;  %v4138_v8 = vadd.f32 %v470_v21, %v4060_v14 }
 0x131   :  { %v399_v35 = vpop.f32.mrf.mxu0  ;;  %v472_v44 = vpop.f32.mrf.mxu1 }
 0x132   :  { %5048 = vst [vmem:[#allocation34_spill] sm:$0xff] %v4135_v10  ;;  %5049 = vst [vmem:[#allocation35_spill] sm:$0xff] %v4138_v8  ;;  %v4141_v15 = vadd.f32 %v399_v35, %v132_v22  ;;  %v4144_v6 = vadd.f32 %v472_v44, %v4071_v19 }
 0x133   :  { %v740_v11 = vpop.f32.mrf.mxu0  ;;  %v781_v7 = vpop.f32.mrf.mxu1 }
 0x134   :  { %5050 = vst [vmem:[#allocation36_spill] sm:$0xff] %v4144_v6  ;;  %v788_v25 = vadd.f32 %v740_v11, %v364_v9  ;;  %v437_v6 = vadd.f32 %v4056_v13, %v4060_v14 }
 0x135   :  { %v742_v30 = vpop.f32.mrf.mxu0  ;;  %v783_v26 = vpop.f32.mrf.mxu1 }
 0x136   :  { %v792_v10 = vmul.f32 0.5, %v788_v25  ;;  %v789_v29 = vadd.f32 %v742_v30, %v366_v0  ;;  %v791_v44 = vadd.f32 %v783_v26, %v439_v20  ;;  %v790_v9 = vadd.f32 %v781_v7, %v437_v6 }
 0x137   :  { %v744_v21 = vpop.f32.mrf.mxu0  ;;  %v785_v8 = vpop.f32.mrf.mxu1 }
 0x138   :  { %3484 = vtanh.f32 %v792_v10  ;;  %v793_v12 = vmul.f32 0.5, %v789_v29  ;;  %v794_v16 = vmul.f32 0.5, %v790_v9  ;;  %v5051_v21 = vmov 0  }
 0x139   :  { %v745_v18 = vpop.f32.mrf.mxu0  ;;  %v786_v35 = vpop.f32.mrf.mxu1 }
 0x13a   :  { %3486 = vtanh.f32 %v793_v12 }
 0x13b   :  { %3488 = vtanh.f32 %v791_v44 }
 0x13c   :  { %3490 = vtanh.f32 %v794_v16 }
 0x145   :  { %v3485_v22 = vpop.eup %3484 }
 0x146   :  { %v798_v25 = vadd.f32 1.0, %v3485_v22 }
 0x147   :  { %v3487_v30 = vpop.eup %3486 }
 0x148   :  { %v801_v11 = vmul.f32 0.5, %v798_v25  ;;  %v799_v8 = vadd.f32 1.0, %v3487_v30  ;;  %v3489_v17 = vpop.eup %3488 }
 0x149   :  { %v3491_v20 = vpop.eup %3490 }
 0x14a   :  { %v802_v0 = vmul.f32 0.5, %v799_v8  ;;  %v806_v19 = vmul.f32 %v3489_v17, %v801_v11  ;;  %v800_v26 = vadd.f32 1.0, %v3491_v20 }
 0x14c   :  { %v805_v10 = vmul.f32 0.0, %v802_v0  ;;  %v803_v13 = vmul.f32 0.5, %v800_v26 }
 0x14e   :  { %v4151_v29 = vadd.f32 %v806_v19, %v805_v10 }
 0x150   :  { %3492 = vtanh.f32 %v4151_v29 }
 0x15d   :  { %v3493_v14 = vpop.eup %3492 }
 0x15e   :  { %v809_v7 = vmul.f32 %v3493_v14, %v803_v13 }
 0x160   :  { %v810_v6 = vpack.c.bf16 %v809_v7, %v809_v7 }
 0x162   :  { %811 = vst [vmem:[#allocation3] sm:$0xf] %v810_v6  ;;  %852 = vmatmul.mubr.bf16.vlgmr.msra.gmra.mxu0 %v810_v6  ;;  %893 = vmatmul.mubr.bf16.vlgmr.msra.gmra.mxu1 %v810_v6 }
 0x163   :  { %934 = vmatpush1.bf16.msra.mxu0 %v3899_v36  ;;  %975 = vmatpush1.bf16.msra.mxu1 %v3901_v37 }
 0x164   :  { %935 = vmatprep.subr.bf16.mxu0 %v3905_v38  ;;  %976 = vmatprep.subr.bf16.mxu1 %v3907_v39 }
 0x165   :  { %965 = vmatprep.mubr.bf16.mxu0 %v5051_v21  ;;  %1006 = vmatprep.mubr.bf16.mxu1 %v5051_v21 }
 0x167   :  { %936 = vmatpush1.bf16.msra.mxu0 %v3909_v40  ;;  %977 = vmatpush1.bf16.msra.mxu1 %v3913_v41 }
 0x168   :  { %937 = vmatprep.subr.bf16.mxu0 %v3917_v42  ;;  %978 = vmatprep.subr.bf16.mxu1 %v3919_v43 }
 0x16b   :  { %938 = vmatpush1.bf16.msra.mxu0 %v3926_v45  ;;  %979 = vmatpush1.bf16.msra.mxu1 %v3928_v46 }
 0x16c   :  { %939 = vmatprep.subr.bf16.mxu0 %v3932_v47  ;;  %980 = vmatprep.subr.bf16.mxu1 %v3936_v48 }
 0x16f   :  { %940 = vmatpush1.bf16.msra.mxu0 %v3938_v49  ;;  %981 = vmatpush1.bf16.msra.mxu1 %v3940_v50 }
 0x170   :  { %941 = vmatprep.subr.bf16.mxu0 %v3944_v51  ;;  %982 = vmatprep.subr.bf16.mxu1 %v3948_v52 }
 0x173   :  { %942 = vmatpush1.bf16.msra.mxu0 %v3955_v54  ;;  %983 = vmatpush1.bf16.msra.mxu1 %v3957_v55 }
 0x174   :  { %943 = vmatprep.subr.bf16.mxu0 %v3959_v56  ;;  %984 = vmatprep.subr.bf16.mxu1 %v3961_v57 }
 0x177   :  { %944 = vmatpush1.bf16.msra.mxu0 %v3967_v58  ;;  %985 = vmatpush1.bf16.msra.mxu1 %v3969_v59 }
 0x178   :  { %945 = vmatprep.subr.bf16.mxu0 %v3971_v60  ;;  %986 = vmatprep.subr.bf16.mxu1 %v3973_v61 }
 0x17b   :  { %946 = vmatpush1.bf16.msra.mxu0 %v3984_v63  ;;  %987 = vmatpush1.bf16.msra.mxu1 %v3986_v1 }
 0x17c   :  { %947 = vmatprep.subr.bf16.mxu0 %v3988_v2  ;;  %988 = vmatprep.subr.bf16.mxu1 %v3990_v3 }
 0x17f   :  { %948 = vmatpush1.bf16.msra.mxu0 %v3996_v4  ;;  %989 = vmatpush1.bf16.msra.mxu1 %v3998_v5 }
 0x180   :  { %1047 = vmatprep.subr.bf16.mxu0 %v3892_v33  ;;  %1088 = vmatprep.subr.bf16.mxu1 %v3894_v34 }
 0x222   :  { %v853_v12 = vpop.f32.mrf.mxu0  ;;  %v894_v18 = vpop.f32.mrf.mxu1 }
 0x223   :  { %v901_v35 = vadd.f32 %v853_v12, %v4075_v23  ;;  %v903_v10 = vadd.f32 %v894_v18, %v4078_v24 }
 0x224   :  { %v855_v44 = vpop.f32.mrf.mxu0  ;;  %v896_v9 = vpop.f32.mrf.mxu1 }
 0x225   :  { %v905_v16 = vmul.f32 0.5, %v901_v35  ;;  %v902_v22 = vadd.f32 %v855_v44, %v4080_v27  ;;  %v904_v8 = vadd.f32 %v896_v9, %v4083_v28  ;;  %v907_v19 = vmul.f32 0.5, %v903_v10 }
 0x226   :  { %v857_v25 = vpop.f32.mrf.mxu0  ;;  %v898_v30 = vpop.f32.mrf.mxu1 }
 0x227   :  { %3494 = vtanh.f32 %v905_v16  ;;  %v906_v11 = vmul.f32 0.5, %v902_v22 }
 0x228   :  { %v858_v0 = vpop.f32.mrf.mxu0  ;;  %v899_v17 = vpop.f32.mrf.mxu1 }
 0x229   :  { %3496 = vtanh.f32 %v906_v11 }
 0x22a   :  { %3498 = vtanh.f32 %v904_v8 }
 0x22b   :  { %3500 = vtanh.f32 %v907_v19 }
 0x234   :  { %v3495_v20 = vpop.eup %3494 }
 0x235   :  { %v911_v23 = vadd.f32 1.0, %v3495_v20 }
 0x236   :  { %v3497_v26 = vpop.eup %3496 }
 0x237   :  { %v914_v13 = vmul.f32 0.5, %v911_v23  ;;  %v912_v14 = vadd.f32 1.0, %v3497_v26  ;;  %v3499_v27 = vpop.eup %3498 }
 0x238   :  { %v3501_v28 = vpop.eup %3500 }
 0x239   :  { %v915_v7 = vmul.f32 0.5, %v912_v14  ;;  %v919_v6 = vmul.f32 %v3499_v27, %v914_v13  ;;  %v913_v44 = vadd.f32 1.0, %v3501_v28 }
 0x23b   :  { %v918_v12 = vmul.f32 %v915_v7, %v4151_v29  ;;  %v916_v9 = vmul.f32 0.5, %v913_v44 }
 0x23d   :  { %v4193_v35 = vadd.f32 %v919_v6, %v918_v12 }
 0x23f   :  { %3502 = vtanh.f32 %v4193_v35 }
 0x24c   :  { %v3503_v24 = vpop.eup %3502 }
 0x24d   :  { %v922_v18 = vmul.f32 %v3503_v24, %v916_v9 }
 0x24f   :  { %v923_v16 = vpack.c.bf16 %v922_v18, %v922_v18 }
 0x251   :  { %925 = vst [vmem:[#allocation3 + $0x4] sm:$0xf] %v923_v16  ;;  %966 = vmatmul.mubr.bf16.vlgmr.msra.gmra.mxu0 %v923_v16  ;;  %1007 = vmatmul.mubr.bf16.vlgmr.msra.gmra.mxu1 %v923_v16 }
 0x252   :  { %1048 = vmatpush1.bf16.msra.mxu0 %v3899_v36  ;;  %1089 = vmatpush1.bf16.msra.mxu1 %v3901_v37 }
 0x253   :  { %1049 = vmatprep.subr.bf16.mxu0 %v3905_v38  ;;  %1090 = vmatprep.subr.bf16.mxu1 %v3907_v39 }
 0x254   :  { %1079 = vmatprep.mubr.bf16.mxu0 %v5051_v21  ;;  %1120 = vmatprep.mubr.bf16.mxu1 %v5051_v21 }
 0x256   :  { %1050 = vmatpush1.bf16.msra.mxu0 %v3909_v40  ;;  %1091 = vmatpush1.bf16.msra.mxu1 %v3913_v41 }
 0x257   :  { %1051 = vmatprep.subr.bf16.mxu0 %v3917_v42  ;;  %1092 = vmatprep.subr.bf16.mxu1 %v3919_v43 }
 0x25a   :  { %1052 = vmatpush1.bf16.msra.mxu0 %v3926_v45  ;;  %1093 = vmatpush1.bf16.msra.mxu1 %v3928_v46 }
 0x25b   :  { %1053 = vmatprep.subr.bf16.mxu0 %v3932_v47  ;;  %1094 = vmatprep.subr.bf16.mxu1 %v3936_v48 }
 0x25e   :  { %1054 = vmatpush1.bf16.msra.mxu0 %v3938_v49  ;;  %1095 = vmatpush1.bf16.msra.mxu1 %v3940_v50 }
 0x25f   :  { %1055 = vmatprep.subr.bf16.mxu0 %v3944_v51  ;;  %1096 = vmatprep.subr.bf16.mxu1 %v3948_v52 }
 0x262   :  { %1056 = vmatpush1.bf16.msra.mxu0 %v3955_v54  ;;  %1097 = vmatpush1.bf16.msra.mxu1 %v3957_v55 }
 0x263   :  { %1057 = vmatprep.subr.bf16.mxu0 %v3959_v56  ;;  %1098 = vmatprep.subr.bf16.mxu1 %v3961_v57 }
 0x266   :  { %1058 = vmatpush1.bf16.msra.mxu0 %v3967_v58  ;;  %1099 = vmatpush1.bf16.msra.mxu1 %v3969_v59 }
 0x267   :  { %1059 = vmatprep.subr.bf16.mxu0 %v3971_v60  ;;  %1100 = vmatprep.subr.bf16.mxu1 %v3973_v61 }
 0x26a   :  { %1060 = vmatpush1.bf16.msra.mxu0 %v3984_v63  ;;  %1101 = vmatpush1.bf16.msra.mxu1 %v3986_v1 }
 0x26b   :  { %1061 = vmatprep.subr.bf16.mxu0 %v3988_v2  ;;  %1102 = vmatprep.subr.bf16.mxu1 %v3990_v3 }
 0x26e   :  { %1062 = vmatpush1.bf16.msra.mxu0 %v3996_v4  ;;  %1103 = vmatpush1.bf16.msra.mxu1 %v3998_v5 }
 0x26f   :  { %1161 = vmatprep.subr.bf16.mxu0 %v3892_v33  ;;  %1202 = vmatprep.subr.bf16.mxu1 %v3894_v34 }
 0x311   :  { %v967_v29 = vpop.f32.mrf.mxu0  ;;  %v1008_v22 = vpop.f32.mrf.mxu1 }
 0x312   :  { %v1015_v25 = vadd.f32 %v967_v29, %v4085_v31  ;;  %v1017_v33 = vadd.f32 %v1008_v22, %v4088_v32  ;;  %v5054_v22 = vld [vmem:[#allocation21_spill] sm:$0xff] }
 0x313   :  { %v969_v30 = vpop.f32.mrf.mxu0  ;;  %v1010_v11 = vpop.f32.mrf.mxu1 }
 0x314   :  { %v1019_v8 = vmul.f32 0.5, %v1015_v25  ;;  %v1016_v0 = vadd.f32 %v969_v30, %v4090_v53  ;;  %v1018_v20 = vadd.f32 %v1010_v11, %v4093_v62  ;;  %v1021_v13 = vmul.f32 0.5, %v1017_v33 }
 0x315   :  { %v971_v17 = vpop.f32.mrf.mxu0  ;;  %v1012_v10 = vpop.f32.mrf.mxu1 }
 0x316   :  { %3504 = vtanh.f32 %v1019_v8  ;;  %v1020_v19 = vmul.f32 0.5, %v1016_v0 }
 0x317   :  { %v972_v23 = vpop.f32.mrf.mxu0  ;;  %v1013_v26 = vpop.f32.mrf.mxu1 }
 0x318   :  { %3506 = vtanh.f32 %v1020_v19 }
 0x319   :  { %3508 = vtanh.f32 %v1018_v20 }
 0x31a   :  { %3510 = vtanh.f32 %v1021_v13 }
 0x323   :  { %v3505_v14 = vpop.eup %3504 }
 0x324   :  { %v1025_v31 = vadd.f32 1.0, %v3505_v14 }
 0x325   :  { %v3507_v27 = vpop.eup %3506 }
 0x326   :  { %v1028_v7 = vmul.f32 0.5, %v1025_v31  ;;  %v1026_v6 = vadd.f32 1.0, %v3507_v27  ;;  %v3509_v53 = vpop.eup %3508 }
 0x327   :  { %v3511_v62 = vpop.eup %3510 }
 0x328   :  { %v1029_v12 = vmul.f32 0.5, %v1026_v6  ;;  %v1033_v28 = vmul.f32 %v3509_v53, %v1028_v7  ;;  %v1027_v24 = vadd.f32 1.0, %v3511_v62  ;;  %v4285_v62 = vld [vmem:[#allocation7 + $0xe8] ss:$16 sps:$4 sm:$0xff]  }
 0x32a   :  { %v1032_v44 = vmul.f32 %v1029_v12, %v4193_v35  ;;  %v1030_v18 = vmul.f32 0.5, %v1027_v24  ;;  %v4291_v24 = vld [vmem:[#allocation7 + $0xcc] ss:$16 sps:$4 sm:$0xff]  }
 0x32c   :  { %v4235_v9 = vadd.f32 %v1033_v28, %v1032_v44  ;;  %v4282_v44 = vld [vmem:[#allocation7 + $0xe0] ss:$16 sps:$4 sm:$0xff]  }
 0x32e   :  { %3512 = vtanh.f32 %v4235_v9 }
 0x33b   :  { %v3513_v32 = vpop.eup %3512 }
 0x33c   :  { %v1036_v16 = vmul.f32 %v3513_v32, %v1030_v18  ;;  %v4296_v18 = vld [vmem:[#allocation7 + $0xc0] ss:$16 sps:$4 sm:$0xff]   ;;  %v4299_v32 = vld [vmem:[#allocation7 + $0xc8] ss:$16 sps:$4 sm:$0xff]  }
 0x33e   :  { %v1037_v29 = vpack.c.bf16 %v1036_v16, %v1036_v16  ;;  %v4302_v16 = vld [vmem:[#allocation7 + $0xa4] ss:$16 sps:$4 sm:$0xff]  }
 0x340   :  { %1039 = vst [vmem:[#allocation3 + $0x8] sm:$0xf] %v1037_v29  ;;  %1080 = vmatmul.mubr.bf16.vlgmr.msra.gmra.mxu0 %v1037_v29  ;;  %1121 = vmatmul.mubr.bf16.vlgmr.msra.gmra.mxu1 %v1037_v29  ;;  %v4305_v29 = vld [vmem:[#allocation7 + $0xac] ss:$16 sps:$4 sm:$0xff]  }
 0x341   :  { %1162 = vmatpush1.bf16.msra.mxu0 %v3899_v36  ;;  %1203 = vmatpush1.bf16.msra.mxu1 %v3901_v37  ;;  %v4270_v36 = vld [vmem:[#allocation7 + $0xe4] ss:$16 sps:$4 sm:$0xff]  }
 0x342   :  { %1163 = vmatprep.subr.bf16.mxu0 %v3905_v38  ;;  %1204 = vmatprep.subr.bf16.mxu1 %v3907_v39  ;;  %v5052_v39 = vld [vmem:[#allocation18_spill] sm:$0xff] }
 0x343   :  { %1193 = vmatprep.mubr.bf16.mxu0 %v5051_v21  ;;  %1234 = vmatprep.mubr.bf16.mxu1 %v5051_v21 }
 0x345   :  { %1164 = vmatpush1.bf16.msra.mxu0 %v3909_v40  ;;  %1205 = vmatpush1.bf16.msra.mxu1 %v3913_v41 }
 0x346   :  { %1165 = vmatprep.subr.bf16.mxu0 %v3917_v42  ;;  %1206 = vmatprep.subr.bf16.mxu1 %v3919_v43 }
 0x349   :  { %1166 = vmatpush1.bf16.msra.mxu0 %v3926_v45  ;;  %1207 = vmatpush1.bf16.msra.mxu1 %v3928_v46  ;;  %v5053_v45 = vld [vmem:[#allocation20_spill] sm:$0xff] }
 0x34a   :  { %1167 = vmatprep.subr.bf16.mxu0 %v3932_v47  ;;  %1208 = vmatprep.subr.bf16.mxu1 %v3936_v48 }
 0x34d   :  { %1168 = vmatpush1.bf16.msra.mxu0 %v3938_v49  ;;  %1209 = vmatpush1.bf16.msra.mxu1 %v3940_v50 }
 0x34e   :  { %1169 = vmatprep.subr.bf16.mxu0 %v3944_v51  ;;  %1210 = vmatprep.subr.bf16.mxu1 %v3948_v52 }
 0x351   :  { %1170 = vmatpush1.bf16.msra.mxu0 %v3955_v54  ;;  %1211 = vmatpush1.bf16.msra.mxu1 %v3957_v55 }
 0x352   :  { %1171 = vmatprep.subr.bf16.mxu0 %v3959_v56  ;;  %1212 = vmatprep.subr.bf16.mxu1 %v3961_v57 }
 0x355   :  { %1172 = vmatpush1.bf16.msra.mxu0 %v3967_v58  ;;  %1213 = vmatpush1.bf16.msra.mxu1 %v3969_v59 }
 0x356   :  { %1173 = vmatprep.subr.bf16.mxu0 %v3971_v60  ;;  %1214 = vmatprep.subr.bf16.mxu1 %v3973_v61 }
 0x359   :  { %1174 = vmatpush1.bf16.msra.mxu0 %v3984_v63  ;;  %1215 = vmatpush1.bf16.msra.mxu1 %v3986_v1 }
 0x35a   :  { %1175 = vmatprep.subr.bf16.mxu0 %v3988_v2  ;;  %1216 = vmatprep.subr.bf16.mxu1 %v3990_v3 }
 0x35d   :  { %1176 = vmatpush1.bf16.msra.mxu0 %v3996_v4  ;;  %1217 = vmatpush1.bf16.msra.mxu1 %v3998_v5 }
 0x35e   :  { %1275 = vmatprep.subr.bf16.mxu0 %v4270_v36  ;;  %1316 = vmatprep.subr.bf16.mxu1 %v3894_v34  ;;  %v5055_v34 = vld [vmem:[#allocation19_spill] sm:$0xff] }
 0x400   :  { %v1081_v37 = vpop.f32.mrf.mxu0  ;;  %v1122_v38 = vpop.f32.mrf.mxu1 }
 0x401   :  { %v1129_v40 = vadd.f32 %v1081_v37, %v5052_v39  ;;  %v1131_v8 = vadd.f32 %v1122_v38, %v5055_v34  ;;  %v4308_v37 = vld [vmem:[#allocation7 + $0xa0] ss:$16 sps:$4 sm:$0xff]   ;;  %v4311_v38 = vld [vmem:[#allocation7 + $0xa8] ss:$16 sps:$4 sm:$0xff]   ;;  %v4314_v39 = vld [vmem:[#allocation7 + $0x84] ss:$16 sps:$4 sm:$0xff]  }
 0x402   :  { %v1083_v41 = vpop.f32.mrf.mxu0  ;;  %v1124_v42 = vpop.f32.mrf.mxu1 }
 0x403   :  { %v1133_v43 = vmul.f32 0.5, %v1129_v40  ;;  %v1130_v46 = vadd.f32 %v1083_v41, %v5053_v45  ;;  %v1132_v25 = vadd.f32 %v1124_v42, %v5054_v22  ;;  %v1135_v0 = vmul.f32 0.5, %v1131_v8  ;;  %v4317_v40 = vld [vmem:[#allocation7 + $0x8c] ss:$16 sps:$4 sm:$0xff]  }
 0x404   :  { %v1085_v47 = vpop.f32.mrf.mxu0  ;;  %v1126_v48 = vpop.f32.mrf.mxu1 }
 0x405   :  { %3514 = vtanh.f32 %v1133_v43  ;;  %v1134_v35 = vmul.f32 0.5, %v1130_v46 }
 0x406   :  { %v1086_v30 = vpop.f32.mrf.mxu0  ;;  %v1127_v11 = vpop.f32.mrf.mxu1 }
 0x407   :  { %3516 = vtanh.f32 %v1134_v35 }
 0x408   :  { %3518 = vtanh.f32 %v1132_v25 }
 0x409   :  { %3520 = vtanh.f32 %v1135_v0 }
 0x412   :  { %v3515_v17 = vpop.eup %3514 }
 0x413   :  { %v1139_v10 = vadd.f32 1.0, %v3515_v17 }
 0x414   :  { %v3517_v19 = vpop.eup %3516 }
 0x415   :  { %v1142_v20 = vmul.f32 0.5, %v1139_v10  ;;  %v1140_v23 = vadd.f32 1.0, %v3517_v19  ;;  %v3519_v26 = vpop.eup %3518 }
 0x416   :  { %v3521_v27 = vpop.eup %3520 }
 0x417   :  { %v1143_v33 = vmul.f32 0.5, %v1140_v23  ;;  %v1147_v13 = vmul.f32 %v3519_v26, %v1142_v20  ;;  %v1141_v7 = vadd.f32 1.0, %v3521_v27  ;;  %v4364_v20 = vld [vmem:[#allocation7 + $0x80] ss:$16 sps:$4 sm:$0xff]   ;;  %v4367_v23 = vld [vmem:[#allocation7 + $0x88] ss:$16 sps:$4 sm:$0xff]  }
 0x418   :  { %v4370_v26 = vld [vmem:[#allocation7 + $0x64] ss:$16 sps:$4 sm:$0xff]   ;;  %v4385_v27 = vld [vmem:[#allocation7 + $0x4c] ss:$16 sps:$4 sm:$0xff]  }
 0x419   :  { %v1146_v14 = vmul.f32 %v1143_v33, %v4235_v9  ;;  %v1144_v6 = vmul.f32 0.5, %v1141_v7  ;;  %v4288_v9 = vld [vmem:[#allocation7 + $0xc4] ss:$16 sps:$4 sm:$0xff]   ;;  %v4373_v33 = vld [vmem:[#allocation7 + $0x6c] ss:$16 sps:$4 sm:$0xff]  }
 0x41a   :  { %v4388_v7 = vld [vmem:[#allocation7 + $0x40] ss:$16 sps:$4 sm:$0xff]  }
 0x41b   :  { %v4279_v31 = vadd.f32 %v1147_v13, %v1146_v14  ;;  %v4376_v13 = vld [vmem:[#allocation7 + $0x60] ss:$16 sps:$4 sm:$0xff]   ;;  %v4379_v14 = vld [vmem:[#allocation7 + $0x68] ss:$16 sps:$4 sm:$0xff]  }
 0x41d   :  { %3522 = vtanh.f32 %v4279_v31 }
 0x42a   :  { %v3523_v53 = vpop.eup %3522 }
 0x42b   :  { %v1150_v12 = vmul.f32 %v3523_v53, %v1144_v6  ;;  %v4391_v6 = vld [vmem:[#allocation7 + $0x48] ss:$16 sps:$4 sm:$0xff]   ;;  %v4394_v53 = vld [vmem:[#allocation7 + $0x24] ss:$16 sps:$4 sm:$0xff]  }
 0x42d   :  { %v1151_v28 = vpack.c.bf16 %v1150_v12, %v1150_v12  ;;  %v4397_v12 = vld [vmem:[#allocation7 + $0x2c] ss:$16 sps:$4 sm:$0xff]  }
 0x42f   :  { %1153 = vst [vmem:[#allocation3 + $0xc] sm:$0xf] %v1151_v28  ;;  %1194 = vmatmul.mubr.bf16.vlgmr.msra.gmra.mxu0 %v1151_v28  ;;  %1235 = vmatmul.mubr.bf16.vlgmr.msra.gmra.mxu1 %v1151_v28  ;;  %v4400_v28 = vld [vmem:[#allocation7 + $0x20] ss:$16 sps:$4 sm:$0xff]  }
 0x430   :  { %1276 = vmatpush1.bf16.msra.mxu0 %v4282_v44  ;;  %1317 = vmatpush1.bf16.msra.mxu1 %v4285_v62 }
 0x431   :  { %1277 = vmatprep.subr.bf16.mxu0 %v4288_v9  ;;  %1318 = vmatprep.subr.bf16.mxu1 %v4291_v24 }
 0x432   :  { %1307 = vmatprep.mubr.bf16.mxu0 %v5051_v21  ;;  %1348 = vmatprep.mubr.bf16.mxu1 %v5051_v21 }
 0x434   :  { %1278 = vmatpush1.bf16.msra.mxu0 %v4296_v18  ;;  %1319 = vmatpush1.bf16.msra.mxu1 %v4299_v32 }
 0x435   :  { %1279 = vmatprep.subr.bf16.mxu0 %v4302_v16  ;;  %1320 = vmatprep.subr.bf16.mxu1 %v4305_v29 }
 0x438   :  { %1280 = vmatpush1.bf16.msra.mxu0 %v4308_v37  ;;  %1321 = vmatpush1.bf16.msra.mxu1 %v4311_v38 }
 0x439   :  { %1281 = vmatprep.subr.bf16.mxu0 %v4314_v39  ;;  %1322 = vmatprep.subr.bf16.mxu1 %v4317_v40 }
 0x43c   :  { %1282 = vmatpush1.bf16.msra.mxu0 %v3938_v49  ;;  %1323 = vmatpush1.bf16.msra.mxu1 %v3940_v50  ;;  %v4339_v49 = vld [vmem:[#allocation7 + $0xec] ss:$16 sps:$4 sm:$0xff]  }
 0x43d   :  { %1283 = vmatprep.subr.bf16.mxu0 %v3944_v51  ;;  %1324 = vmatprep.subr.bf16.mxu1 %v3948_v52  ;;  %v5056_v52 = vld [vmem:[#allocation22_spill] sm:$0xff] }
 0x440   :  { %1284 = vmatpush1.bf16.msra.mxu0 %v3955_v54  ;;  %1325 = vmatpush1.bf16.msra.mxu1 %v3957_v55 }
 0x441   :  { %1285 = vmatprep.subr.bf16.mxu0 %v3959_v56  ;;  %1326 = vmatprep.subr.bf16.mxu1 %v3961_v57 }
 0x444   :  { %1286 = vmatpush1.bf16.msra.mxu0 %v3967_v58  ;;  %1327 = vmatpush1.bf16.msra.mxu1 %v3969_v59  ;;  %v5057_v58 = vld [vmem:[#allocation24_spill] sm:$0xff] }
 0x445   :  { %1287 = vmatprep.subr.bf16.mxu0 %v3971_v60  ;;  %1328 = vmatprep.subr.bf16.mxu1 %v3973_v61 }
 0x448   :  { %1288 = vmatpush1.bf16.msra.mxu0 %v3984_v63  ;;  %1329 = vmatpush1.bf16.msra.mxu1 %v3986_v1  ;;  %v5058_v1 = vld [vmem:[#allocation25_spill] sm:$0xff] }
 0x449   :  { %1289 = vmatprep.subr.bf16.mxu0 %v3988_v2  ;;  %1330 = vmatprep.subr.bf16.mxu1 %v3990_v3 }
 0x44c   :  { %1290 = vmatpush1.bf16.msra.mxu0 %v3996_v4  ;;  %1331 = vmatpush1.bf16.msra.mxu1 %v3998_v5  ;;  %v5059_v5 = vld [vmem:[#allocation23_spill] sm:$0xff] }
 0x44d   :  { %1389 = vmatprep.subr.bf16.mxu0 %v4270_v36  ;;  %1430 = vmatprep.subr.bf16.mxu1 %v4339_v49 }
 0x4ef   :  { %v1195_v50 = vpop.f32.mrf.mxu0  ;;  %v1236_v51 = vpop.f32.mrf.mxu1 }
 0x4f0   :  { %v1243_v54 = vadd.f32 %v1195_v50, %v5056_v52  ;;  %v1245_v41 = vadd.f32 %v1236_v51, %v5059_v5  ;;  %v4403_v50 = vld [vmem:[#allocation7 + $0x28] ss:$16 sps:$4 sm:$0xff]   ;;  %v4406_v51 = vld [vmem:[#allocation7 + $0x4] ss:$16 sps:$4 sm:$0xff]   ;;  %v4409_v52 = vld [vmem:[#allocation7 + $0xc] ss:$16 sps:$4 sm:$0xff]  }
 0x4f1   :  { %v1197_v55 = vpop.f32.mrf.mxu0  ;;  %v1238_v56 = vpop.f32.mrf.mxu1 }
 0x4f2   :  { %v1247_v57 = vmul.f32 0.5, %v1243_v54  ;;  %v1244_v59 = vadd.f32 %v1197_v55, %v5057_v58  ;;  %v1246_v2 = vadd.f32 %v1238_v56, %v5058_v1  ;;  %v1249_v42 = vmul.f32 0.5, %v1245_v41  ;;  %v4412_v54 = vld [vmem:[#allocation7] ss:$16 sps:$4 sm:$0xff]   ;;  %v4415_v55 = vld [vmem:[#allocation7 + $0x8] ss:$16 sps:$4 sm:$0xff]  }
 0x4f3   :  { %v1199_v60 = vpop.f32.mrf.mxu0  ;;  %v1240_v61 = vpop.f32.mrf.mxu1  ;;  %v5060_v58 = vld [vmem:[#allocation26_spill] sm:$0xff]  ;;  %v5061_v1 = vld [vmem:[#allocation28_spill] sm:$0xff]  ;;  %v5062_v41 = vld [vmem:[#allocation29_spill] sm:$0xff] }
 0x4f4   :  { %3524 = vtanh.f32 %v1247_v57  ;;  %v1248_v63 = vmul.f32 0.5, %v1244_v59 }
 0x4f5   :  { %v1200_v3 = vpop.f32.mrf.mxu0  ;;  %v1241_v4 = vpop.f32.mrf.mxu1 }
 0x4f6   :  { %3526 = vtanh.f32 %v1248_v63 }
 0x4f7   :  { %3528 = vtanh.f32 %v1246_v2 }
 0x4f8   :  { %3530 = vtanh.f32 %v1249_v42 }
 0x501   :  { %v3525_v43 = vpop.eup %3524 }
 0x502   :  { %v1253_v45 = vadd.f32 1.0, %v3525_v43 }
 0x503   :  { %v3527_v46 = vpop.eup %3526 }
 0x504   :  { %v1256_v47 = vmul.f32 0.5, %v1253_v45  ;;  %v1254_v48 = vadd.f32 1.0, %v3527_v46  ;;  %v3529_v35 = vpop.eup %3528 }
 0x505   :  { %v3531_v34 = vpop.eup %3530 }
 0x506   :  { %v1257_v22 = vmul.f32 0.5, %v1254_v48  ;;  %v1261_v25 = vmul.f32 %v3529_v35, %v1256_v47  ;;  %v1255_v8 = vadd.f32 1.0, %v3531_v34 }
 0x508   :  { %v1260_v30 = vmul.f32 %v1257_v22, %v4279_v31  ;;  %v1258_v0 = vmul.f32 0.5, %v1255_v8  ;;  %v4382_v31 = vld [vmem:[#allocation7 + $0x44] ss:$16 sps:$4 sm:$0xff]  }
 0x50a   :  { %v4347_v11 = vadd.f32 %v1261_v25, %v1260_v30 }
 0x50c   :  { %3532 = vtanh.f32 %v4347_v11 }
 0x519   :  { %v3533_v17 = vpop.eup %3532 }
 0x51a   :  { %v1264_v10 = vmul.f32 %v3533_v17, %v1258_v0 }
 0x51c   :  { %v1265_v19 = vpack.c.bf16 %v1264_v10, %v1264_v10 }
 0x51e   :  { %1267 = vst [vmem:[#allocation3 + $0x10] sm:$0xf] %v1265_v19  ;;  %1308 = vmatmul.mubr.bf16.vlgmr.msra.gmra.mxu0 %v1265_v19  ;;  %1349 = vmatmul.mubr.bf16.vlgmr.msra.gmra.mxu1 %v1265_v19 }
 0x51f   :  { %1390 = vmatpush1.bf16.msra.mxu0 %v4282_v44  ;;  %1431 = vmatpush1.bf16.msra.mxu1 %v4285_v62 }
 0x520   :  { %1391 = vmatprep.subr.bf16.mxu0 %v4288_v9  ;;  %1432 = vmatprep.subr.bf16.mxu1 %v4291_v24 }
 0x521   :  { %1421 = vmatprep.mubr.bf16.mxu0 %v5051_v21  ;;  %1462 = vmatprep.mubr.bf16.mxu1 %v5051_v21 }
 0x523   :  { %1392 = vmatpush1.bf16.msra.mxu0 %v4296_v18  ;;  %1433 = vmatpush1.bf16.msra.mxu1 %v4299_v32 }
 0x524   :  { %1393 = vmatprep.subr.bf16.mxu0 %v4302_v16  ;;  %1434 = vmatprep.subr.bf16.mxu1 %v4305_v29 }
 0x527   :  { %1394 = vmatpush1.bf16.msra.mxu0 %v4308_v37  ;;  %1435 = vmatpush1.bf16.msra.mxu1 %v4311_v38 }
 0x528   :  { %1395 = vmatprep.subr.bf16.mxu0 %v4314_v39  ;;  %1436 = vmatprep.subr.bf16.mxu1 %v4317_v40 }
 0x52b   :  { %1396 = vmatpush1.bf16.msra.mxu0 %v4364_v20  ;;  %1437 = vmatpush1.bf16.msra.mxu1 %v4367_v23 }
 0x52c   :  { %1397 = vmatprep.subr.bf16.mxu0 %v4370_v26  ;;  %1438 = vmatprep.subr.bf16.mxu1 %v4373_v33 }
 0x52f   :  { %1398 = vmatpush1.bf16.msra.mxu0 %v4376_v13  ;;  %1439 = vmatpush1.bf16.msra.mxu1 %v4379_v14 }
 0x530   :  { %1399 = vmatprep.subr.bf16.mxu0 %v4382_v31  ;;  %1440 = vmatprep.subr.bf16.mxu1 %v4385_v27 }
 0x533   :  { %1400 = vmatpush1.bf16.msra.mxu0 %v4388_v7  ;;  %1441 = vmatpush1.bf16.msra.mxu1 %v4391_v6 }
 0x534   :  { %1401 = vmatprep.subr.bf16.mxu0 %v4394_v53  ;;  %1442 = vmatprep.subr.bf16.mxu1 %v4397_v12 }
 0x537   :  { %1402 = vmatpush1.bf16.msra.mxu0 %v4400_v28  ;;  %1443 = vmatpush1.bf16.msra.mxu1 %v4403_v50 }
 0x538   :  { %1403 = vmatprep.subr.bf16.mxu0 %v4406_v51  ;;  %1444 = vmatprep.subr.bf16.mxu1 %v4409_v52 }
 0x53b   :  { %1404 = vmatpush1.bf16.msra.mxu0 %v4412_v54  ;;  %1445 = vmatpush1.bf16.msra.mxu1 %v4415_v55 }
 0x53c   :  { %1503 = vmatprep.subr.bf16.mxu0 %v4270_v36  ;;  %1544 = vmatprep.subr.bf16.mxu1 %v4339_v49  ;;  %v5063_v36 = vld [vmem:[#allocation27_spill] sm:$0xff] }
 0x5de   :  { %v1309_v56 = vpop.f32.mrf.mxu0  ;;  %v1350_v57 = vpop.f32.mrf.mxu1 }
 0x5df   :  { %v1357_v59 = vadd.f32 %v1309_v56, %v5060_v58  ;;  %v1359_v49 = vadd.f32 %v1350_v57, %v5063_v36  ;;  %v3398_v36 = vld [vmem:[#allocation9 + $0xa4] ss:$16 sps:$4 sm:$0xff]  }
 0x5e0   :  { %v1311_v60 = vpop.f32.mrf.mxu0  ;;  %v1352_v61 = vpop.f32.mrf.mxu1 }
 0x5e1   :  { %v1361_v63 = vmul.f32 0.5, %v1357_v59  ;;  %v1358_v2 = vadd.f32 %v1311_v60, %v5061_v1  ;;  %v1360_v42 = vadd.f32 %v1352_v61, %v5062_v41  ;;  %v1363_v46 = vmul.f32 0.5, %v1359_v49  ;;  %v3392_v41 = vld [vmem:[#allocation9 + $0xc4] ss:$16 sps:$4 sm:$0xff]   ;;  %v3401_v49 = vld [vmem:[#allocation9 + $0xac] ss:$16 sps:$4 sm:$0xff]  }
 0x5e2   :  { %v1313_v3 = vpop.f32.mrf.mxu0  ;;  %v1354_v4 = vpop.f32.mrf.mxu1 }
 0x5e3   :  { %3534 = vtanh.f32 %v1361_v63  ;;  %v1362_v5 = vmul.f32 0.5, %v1358_v2  ;;  %v3384_v3 = vld [vmem:[#allocation9 + $0xe0] ss:$16 sps:$4 sm:$0xff]   ;;  %v3387_v4 = vld [vmem:[#allocation9 + $0xe8] ss:$16 sps:$4 sm:$0xff]  }
 0x5e4   :  { %v1314_v43 = vpop.f32.mrf.mxu0  ;;  %v1355_v45 = vpop.f32.mrf.mxu1 }
 0x5e5   :  { %3536 = vtanh.f32 %v1362_v5  ;;  %v3390_v43 = vld [vmem:[#allocation9 + $0xc0] ss:$16 sps:$4 sm:$0xff]   ;;  %v3393_v45 = vld [vmem:[#allocation9 + $0xc8] ss:$16 sps:$4 sm:$0xff]  }
 0x5e6   :  { %3538 = vtanh.f32 %v1360_v42  ;;  %v3395_v42 = vld [vmem:[#allocation9 + $0xcc] ss:$16 sps:$4 sm:$0xff]  }
 0x5e7   :  { %3540 = vtanh.f32 %v1363_v46  ;;  %v3396_v46 = vld [vmem:[#allocation9 + $0xa0] ss:$16 sps:$4 sm:$0xff]  }
 0x5f0   :  { %v3535_v47 = vpop.eup %3534 }
 0x5f1   :  { %v1367_v48 = vadd.f32 1.0, %v3535_v47  ;;  %v3399_v47 = vld [vmem:[#allocation9 + $0xa8] ss:$16 sps:$4 sm:$0xff]  }
 0x5f2   :  { %v3537_v35 = vpop.eup %3536 }
 0x5f3   :  { %v1370_v22 = vmul.f32 0.5, %v1367_v48  ;;  %v1368_v25 = vadd.f32 1.0, %v3537_v35  ;;  %v3539_v30 = vpop.eup %3538  ;;  %v3404_v48 = vld [vmem:[#allocation9 + $0x84] ss:$16 sps:$4 sm:$0xff]   ;;  %v3407_v35 = vld [vmem:[#allocation9 + $0x8c] ss:$16 sps:$4 sm:$0xff]  }
 0x5f4   :  { %v3541_v10 = vpop.eup %3540 }
 0x5f5   :  { %v1371_v34 = vmul.f32 0.5, %v1368_v25  ;;  %v1375_v8 = vmul.f32 %v3539_v30, %v1370_v22  ;;  %v1369_v19 = vadd.f32 1.0, %v3541_v10  ;;  %v3402_v22 = vld [vmem:[#allocation9 + $0x80] ss:$16 sps:$4 sm:$0xff]   ;;  %v3405_v25 = vld [vmem:[#allocation9 + $0x88] ss:$16 sps:$4 sm:$0xff]  }
 0x5f6   :  { %v3410_v30 = vld [vmem:[#allocation9 + $0x64] ss:$16 sps:$4 sm:$0xff]   ;;  %v3419_v10 = vld [vmem:[#allocation9 + $0x4c] ss:$16 sps:$4 sm:$0xff]  }
 0x5f7   :  { %v1374_v0 = vmul.f32 %v1371_v34, %v4347_v11  ;;  %v1372_v56 = vmul.f32 0.5, %v1369_v19  ;;  %v3413_v34 = vld [vmem:[#allocation9 + $0x6c] ss:$16 sps:$4 sm:$0xff]   ;;  %v3414_v19 = vld [vmem:[#allocation9 + $0x40] ss:$16 sps:$4 sm:$0xff]  }
 0x5f9   :  { %v4425_v17 = vadd.f32 %v1375_v8, %v1374_v0  ;;  %v3408_v8 = vld [vmem:[#allocation9 + $0x60] ss:$16 sps:$4 sm:$0xff]   ;;  %v3411_v0 = vld [vmem:[#allocation9 + $0x68] ss:$16 sps:$4 sm:$0xff]  }
 0x5fb   :  { %3542 = vtanh.f32 %v4425_v17 }
 0x608   :  { %v3543_v57 = vpop.eup %3542 }
 0x609   :  { %v1378_v58 = vmul.f32 %v3543_v57, %v1372_v56  ;;  %v3417_v56 = vld [vmem:[#allocation9 + $0x48] ss:$16 sps:$4 sm:$0xff]   ;;  %v3422_v57 = vld [vmem:[#allocation9 + $0x24] ss:$16 sps:$4 sm:$0xff]  }
 0x60b   :  { %v1379_v59 = vpack.c.bf16 %v1378_v58, %v1378_v58  ;;  %v3425_v58 = vld [vmem:[#allocation9 + $0x2c] ss:$16 sps:$4 sm:$0xff]  }
 0x60d   :  { %1381 = vst [vmem:[#allocation3 + $0x14] sm:$0xf] %v1379_v59  ;;  %1422 = vmatmul.mubr.bf16.vlgmr.msra.gmra.mxu0 %v1379_v59  ;;  %1463 = vmatmul.mubr.bf16.vlgmr.msra.gmra.mxu1 %v1379_v59  ;;  %v3420_v59 = vld [vmem:[#allocation9 + $0x20] ss:$16 sps:$4 sm:$0xff]  }
 0x60e   :  { %1504 = vmatpush1.bf16.msra.mxu0 %v4282_v44  ;;  %1545 = vmatpush1.bf16.msra.mxu1 %v4285_v62  ;;  %v3386_v44 = vld [vmem:[#allocation9 + $0xe4] ss:$16 sps:$4 sm:$0xff]   ;;  %v3389_v62 = vld [vmem:[#allocation9 + $0xec] ss:$16 sps:$4 sm:$0xff]  }
 0x60f   :  { %1505 = vmatprep.subr.bf16.mxu0 %v4288_v9  ;;  %1546 = vmatprep.subr.bf16.mxu1 %v4291_v24 }
 0x610   :  { %1535 = vmatprep.mubr.bf16.mxu0 %v5051_v21  ;;  %1576 = vmatprep.mubr.bf16.mxu1 %v5051_v21 }
 0x612   :  { %1506 = vmatpush1.bf16.msra.mxu0 %v4296_v18  ;;  %1547 = vmatpush1.bf16.msra.mxu1 %v4299_v32  ;;  %v5064_v18 = vld [vmem:[#allocation30_spill] sm:$0xff] }
 0x613   :  { %1507 = vmatprep.subr.bf16.mxu0 %v4302_v16  ;;  %1548 = vmatprep.subr.bf16.mxu1 %v4305_v29 }
 0x616   :  { %1508 = vmatpush1.bf16.msra.mxu0 %v4308_v37  ;;  %1549 = vmatpush1.bf16.msra.mxu1 %v4311_v38  ;;  %v5065_v38 = vld [vmem:[#allocation32_spill] sm:$0xff] }
 0x617   :  { %1509 = vmatprep.subr.bf16.mxu0 %v4314_v39  ;;  %1550 = vmatprep.subr.bf16.mxu1 %v4317_v40 }
 0x61a   :  { %1510 = vmatpush1.bf16.msra.mxu0 %v4364_v20  ;;  %1551 = vmatpush1.bf16.msra.mxu1 %v4367_v23  ;;  %v5066_v23 = vld [vmem:[#allocation33_spill] sm:$0xff] }
 0x61b   :  { %1511 = vmatprep.subr.bf16.mxu0 %v4370_v26  ;;  %1552 = vmatprep.subr.bf16.mxu1 %v4373_v33 }
 0x61e   :  { %1512 = vmatpush1.bf16.msra.mxu0 %v4376_v13  ;;  %1553 = vmatpush1.bf16.msra.mxu1 %v4379_v14  ;;  %v5067_v14 = vld [vmem:[#allocation31_spill] sm:$0xff] }
 0x61f   :  { %1513 = vmatprep.subr.bf16.mxu0 %v4382_v31  ;;  %1554 = vmatprep.subr.bf16.mxu1 %v4385_v27 }
 0x622   :  { %1514 = vmatpush1.bf16.msra.mxu0 %v4388_v7  ;;  %1555 = vmatpush1.bf16.msra.mxu1 %v4391_v6 }
 0x623   :  { %1515 = vmatprep.subr.bf16.mxu0 %v4394_v53  ;;  %1556 = vmatprep.subr.bf16.mxu1 %v4397_v12 }
 0x626   :  { %1516 = vmatpush1.bf16.msra.mxu0 %v4400_v28  ;;  %1557 = vmatpush1.bf16.msra.mxu1 %v4403_v50 }
 0x627   :  { %1517 = vmatprep.subr.bf16.mxu0 %v4406_v51  ;;  %1558 = vmatprep.subr.bf16.mxu1 %v4409_v52 }
 0x62a   :  { %1518 = vmatpush1.bf16.msra.mxu0 %v4412_v54  ;;  %1559 = vmatpush1.bf16.msra.mxu1 %v4415_v55 }
 0x62b   :  { %1856 = vmatprep.subr.bf16.mxu0 %v3386_v44  ;;  %1929 = vmatprep.subr.bf16.mxu1 %v3389_v62  ;;  %v3423_v44 = vld [vmem:[#allocation9 + $0x28] ss:$16 sps:$4 sm:$0xff]   ;;  %v3428_v62 = vld [vmem:[#allocation9 + $0x4] ss:$16 sps:$4 sm:$0xff]  }
 0x6cd   :  { %v1423_v9 = vpop.f32.mrf.mxu0  ;;  %v1464_v24 = vpop.f32.mrf.mxu1 }
 0x6ce   :  { %v1471_v32 = vadd.f32 %v1423_v9, %v5064_v18  ;;  %v1473_v31 = vadd.f32 %v1464_v24, %v5067_v14  ;;  %v3431_v9 = vld [vmem:[#allocation9 + $0xc] ss:$16 sps:$4 sm:$0xff]   ;;  %v3426_v24 = vld [vmem:[#allocation9] ss:$16 sps:$4 sm:$0xff]   ;;  %v3429_v18 = vld [vmem:[#allocation9 + $0x8] ss:$16 sps:$4 sm:$0xff]  }
 0x6cf   :  { %v1425_v16 = vpop.f32.mrf.mxu0  ;;  %v1466_v29 = vpop.f32.mrf.mxu1  ;;  %v4504_v14 = vld [vmem:[#allocation10 + $0xa0] ss:$16 sps:$4 sm:$0xff]  }
 0x6d0   :  { %v1475_v37 = vmul.f32 0.5, %v1471_v32  ;;  %v1472_v39 = vadd.f32 %v1425_v16, %v5065_v38  ;;  %v1474_v26 = vadd.f32 %v1466_v29, %v5066_v23  ;;  %v1477_v27 = vmul.f32 0.5, %v1473_v31  ;;  %v3432_v32 = vld [vmem:[#allocation3] sm:$0xff]   ;;  %v3433_v16 = vld [vmem:[#allocation3 + $0x8] sm:$0xff]   ;;  %v3434_v29 = vld [vmem:[#allocation3 + $0x10] sm:$0xff]  }
 0x6d1   :  { %v1427_v40 = vpop.f32.mrf.mxu0  ;;  %v1468_v11 = vpop.f32.mrf.mxu1  ;;  %v4478_v38 = vld [vmem:[#allocation10 + $0xec] ss:$16 sps:$4 sm:$0xff]   ;;  %v4492_v23 = vld [vmem:[#allocation10 + $0xc0] ss:$16 sps:$4 sm:$0xff]   ;;  %v4506_v31 = vld [vmem:[#allocation10 + $0xa8] ss:$16 sps:$4 sm:$0xff]  }
 0x6d2   :  { %3544 = vtanh.f32 %v1475_v37  ;;  %v1476_v20 = vmul.f32 0.5, %v1472_v39  ;;  %v4476_v37 = vld [vmem:[#allocation10 + $0xe4] ss:$16 sps:$4 sm:$0xff]   ;;  %v4480_v39 = vld [vmem:[#allocation10 + $0xe0] ss:$16 sps:$4 sm:$0xff]  }
 0x6d3   :  { %v1428_v33 = vpop.f32.mrf.mxu0  ;;  %v1469_v13 = vpop.f32.mrf.mxu1  ;;  %v4482_v40 = vld [vmem:[#allocation10 + $0xe8] ss:$16 sps:$4 sm:$0xff]   ;;  %v4488_v11 = vld [vmem:[#allocation10 + $0xc4] ss:$16 sps:$4 sm:$0xff]  }
 0x6d4   :  { %3546 = vtanh.f32 %v1476_v20  ;;  %v4490_v20 = vld [vmem:[#allocation10 + $0xcc] ss:$16 sps:$4 sm:$0xff]   ;;  %v4500_v33 = vld [vmem:[#allocation10 + $0xa4] ss:$16 sps:$4 sm:$0xff]  }
 0x6d5   :  { %3548 = vtanh.f32 %v1474_v26  ;;  %v4494_v26 = vld [vmem:[#allocation10 + $0xc8] ss:$16 sps:$4 sm:$0xff]   ;;  %v4502_v13 = vld [vmem:[#allocation10 + $0xac] ss:$16 sps:$4 sm:$0xff]  }
 0x6d6   :  { %3550 = vtanh.f32 %v1477_v27  ;;  %v4512_v27 = vld [vmem:[#allocation10 + $0x84] ss:$16 sps:$4 sm:$0xff]  }
 0x6df   :  { %v3545_v7 = vpop.eup %3544 }
 0x6e0   :  { %v1481_v6 = vadd.f32 1.0, %v3545_v7  ;;  %v4514_v7 = vld [vmem:[#allocation10 + $0x8c] ss:$16 sps:$4 sm:$0xff]  }
 0x6e1   :  { %v3547_v53 = vpop.eup %3546 }
 0x6e2   :  { %v1484_v12 = vmul.f32 0.5, %v1481_v6  ;;  %v1482_v28 = vadd.f32 1.0, %v3547_v53  ;;  %v3549_v50 = vpop.eup %3548  ;;  %v4516_v6 = vld [vmem:[#allocation10 + $0x80] ss:$16 sps:$4 sm:$0xff]   ;;  %v4518_v53 = vld [vmem:[#allocation10 + $0x88] ss:$16 sps:$4 sm:$0xff]  }
 0x6e3   :  { %v3551_v60 = vpop.eup %3550 }
 0x6e4   :  { %v1485_v51 = vmul.f32 0.5, %v1482_v28  ;;  %v1489_v52 = vmul.f32 %v3549_v50, %v1484_v12  ;;  %v1483_v61 = vadd.f32 1.0, %v3551_v60  ;;  %v4524_v12 = vld [vmem:[#allocation10 + $0x64] ss:$16 sps:$4 sm:$0xff]   ;;  %v4526_v28 = vld [vmem:[#allocation10 + $0x6c] ss:$16 sps:$4 sm:$0xff]  }
 0x6e5   :  { %v4528_v50 = vld [vmem:[#allocation10 + $0x60] ss:$16 sps:$4 sm:$0xff]  }
 0x6e6   :  { %v1488_v54 = vmul.f32 %v1485_v51, %v4425_v17  ;;  %v1486_v63 = vmul.f32 0.5, %v1483_v61  ;;  %v3416_v17 = vld [vmem:[#allocation9 + $0x44] ss:$16 sps:$4 sm:$0xff]   ;;  %v4530_v51 = vld [vmem:[#allocation10 + $0x68] ss:$16 sps:$4 sm:$0xff]  }
 0x6e7   :  { %v4540_v60 = vld [vmem:[#allocation10 + $0x40] ss:$16 sps:$4 sm:$0xff]   ;;  %v4542_v61 = vld [vmem:[#allocation10 + $0x48] ss:$16 sps:$4 sm:$0xff]  }
 0x6e8   :  { %v4465_v55 = vadd.f32 %v1489_v52, %v1488_v54  ;;  %v4536_v52 = vld [vmem:[#allocation10 + $0x44] ss:$16 sps:$4 sm:$0xff]   ;;  %v4538_v54 = vld [vmem:[#allocation10 + $0x4c] ss:$16 sps:$4 sm:$0xff]  }
 0x6ea   :  { %3552 = vtanh.f32 %v4465_v55 }
 0x6f7   :  { %v3553_v1 = vpop.eup %3552 }
 0x6f8   :  { %v1492_v2 = vmul.f32 %v3553_v1, %v1486_v63  ;;  %v4548_v63 = vld [vmem:[#allocation10 + $0x24] ss:$16 sps:$4 sm:$0xff]   ;;  %v4550_v1 = vld [vmem:[#allocation10 + $0x2c] ss:$16 sps:$4 sm:$0xff]  }
 0x6fa   :  { %v1493_v5 = vpack.c.bf16 %v1492_v2, %v1492_v2  ;;  %v4552_v2 = vld [vmem:[#allocation10 + $0x20] ss:$16 sps:$4 sm:$0xff]  }
 0x6fc   :  { %1495 = vst [vmem:[#allocation3 + $0x18] sm:$0xf] %v1493_v5  ;;  %1536 = vmatmul.mubr.bf16.vlgmr.msra.gmra.mxu0 %v1493_v5  ;;  %1577 = vmatmul.mubr.bf16.vlgmr.msra.gmra.mxu1 %v1493_v5  ;;  %v4558_v5 = vld [vmem:[#allocation10 + $0xc] ss:$16 sps:$4 sm:$0xff]  }
 0x6fd   :  { %1857 = vmatpush1.bf16.msra.mxu0 %v3384_v3  ;;  %1930 = vmatpush1.bf16.msra.mxu1 %v3387_v4  ;;  %v4554_v3 = vld [vmem:[#allocation10 + $0x28] ss:$16 sps:$4 sm:$0xff]   ;;  %v4556_v4 = vld [vmem:[#allocation10 + $0x4] ss:$16 sps:$4 sm:$0xff]  }
 0x6fe   :  { %1858 = vmatprep.subr.bf16.mxu0 %v3392_v41  ;;  %1931 = vmatprep.subr.bf16.mxu1 %v3395_v42  ;;  %v4564_v41 = vld [vmem:[#allocation10] ss:$16 sps:$4 sm:$0xff]   ;;  %v4566_v42 = vld [vmem:[#allocation10 + $0x8] ss:$16 sps:$4 sm:$0xff]  }
 0x6ff   :  { %1888 = vmatprep.mubr.bf16.mxu0 %v5051_v21  ;;  %1961 = vmatprep.mubr.bf16.mxu1 %v5051_v21 }
 0x701   :  { %1859 = vmatpush1.bf16.msra.mxu0 %v3390_v43  ;;  %1932 = vmatpush1.bf16.msra.mxu1 %v3393_v45 }
 0x702   :  { %1860 = vmatprep.subr.bf16.mxu0 %v3398_v36  ;;  %1933 = vmatprep.subr.bf16.mxu1 %v3401_v49  ;;  %v5068_v36 = vld [vmem:[#allocation34_spill] sm:$0xff] }
 0x705   :  { %1861 = vmatpush1.bf16.msra.mxu0 %v3396_v46  ;;  %1934 = vmatpush1.bf16.msra.mxu1 %v3399_v47 }
 0x706   :  { %1862 = vmatprep.subr.bf16.mxu0 %v3404_v48  ;;  %1935 = vmatprep.subr.bf16.mxu1 %v3407_v35 }
 0x709   :  { %1863 = vmatpush1.bf16.msra.mxu0 %v3402_v22  ;;  %1936 = vmatpush1.bf16.msra.mxu1 %v3405_v25 }
 0x70a   :  { %1864 = vmatprep.subr.bf16.mxu0 %v3410_v30  ;;  %1937 = vmatprep.subr.bf16.mxu1 %v3413_v34  ;;  %v5069_v34 = vld [vmem:[#allocation36_spill] sm:$0xff] }
 0x70d   :  { %1865 = vmatpush1.bf16.msra.mxu0 %v3408_v8  ;;  %1938 = vmatpush1.bf16.msra.mxu1 %v3411_v0 }
 0x70e   :  { %1866 = vmatprep.subr.bf16.mxu0 %v3416_v17  ;;  %1939 = vmatprep.subr.bf16.mxu1 %v3419_v10  ;;  %v5070_v10 = vld [vmem:[#allocation35_spill] sm:$0xff] }
 0x711   :  { %1867 = vmatpush1.bf16.msra.mxu0 %v3414_v19  ;;  %1940 = vmatpush1.bf16.msra.mxu1 %v3417_v56 }
 0x712   :  { %1868 = vmatprep.subr.bf16.mxu0 %v3422_v57  ;;  %1941 = vmatprep.subr.bf16.mxu1 %v3425_v58 }
 0x715   :  { %1869 = vmatpush1.bf16.msra.mxu0 %v3420_v59  ;;  %1942 = vmatpush1.bf16.msra.mxu1 %v3423_v44 }
 0x716   :  { %1870 = vmatprep.subr.bf16.mxu0 %v3428_v62  ;;  %1943 = vmatprep.subr.bf16.mxu1 %v3431_v9 }
 0x719   :  { %1871 = vmatpush1.bf16.msra.mxu0 %v3426_v24  ;;  %1944 = vmatpush1.bf16.msra.mxu1 %v3429_v18 }
 0x71a   :  { %2230 = vmatprep.subr.bf16.mxu0 %v4476_v37  ;;  %2271 = vmatprep.subr.bf16.mxu1 %v4478_v38 }
 0x71c   :  { %1889 = vmatmul.mubr.bf16.vlgmr.msra.gmra.mxu0 %v3432_v32  ;;  %1962 = vmatmul.mubr.bf16.vlgmr.msra.gmra.mxu1 %v3432_v32 }
 0x71d   :  { %1898 = vmatprep.mubr.bf16.mxu0 %v5051_v21  ;;  %1971 = vmatprep.mubr.bf16.mxu1 %v5051_v21 }
 0x71e   :  { %2231 = vmatpush1.bf16.msra.mxu0 %v4480_v39  ;;  %2272 = vmatpush1.bf16.msra.mxu1 %v4482_v40 }
 0x71f   :  { %2232 = vmatprep.subr.bf16.mxu0 %v4488_v11  ;;  %2273 = vmatprep.subr.bf16.mxu1 %v4490_v20 }
 0x722   :  { %2233 = vmatpush1.bf16.msra.mxu0 %v4492_v23  ;;  %2274 = vmatpush1.bf16.msra.mxu1 %v4494_v26 }
 0x723   :  { %2234 = vmatprep.subr.bf16.mxu0 %v4500_v33  ;;  %2275 = vmatprep.subr.bf16.mxu1 %v4502_v13 }
 0x724   :  { %1899 = vmatmul.mubr.bf16.gmra.mxu0 %v3433_v16  ;;  %1972 = vmatmul.mubr.bf16.gmra.mxu1 %v3433_v16 }
 0x725   :  { %1908 = vmatprep.mubr.bf16.mxu0 %v5051_v21  ;;  %1981 = vmatprep.mubr.bf16.mxu1 %v5051_v21 }
 0x726   :  { %2235 = vmatpush1.bf16.msra.mxu0 %v4504_v14  ;;  %2276 = vmatpush1.bf16.msra.mxu1 %v4506_v31 }
 0x727   :  { %2236 = vmatprep.subr.bf16.mxu0 %v4512_v27  ;;  %2277 = vmatprep.subr.bf16.mxu1 %v4514_v7 }
 0x72a   :  { %2237 = vmatpush1.bf16.msra.mxu0 %v4516_v6  ;;  %2278 = vmatpush1.bf16.msra.mxu1 %v4518_v53 }
 0x72b   :  { %2238 = vmatprep.subr.bf16.mxu0 %v4524_v12  ;;  %2279 = vmatprep.subr.bf16.mxu1 %v4526_v28 }
 0x72c   :  { %1909 = vmatmul.mubr.bf16.gmra.mxu0 %v3434_v29  ;;  %1982 = vmatmul.mubr.bf16.gmra.mxu1 %v3434_v29 }
 0x72d   :  { %1918 = vmatprep.mubr.bf16.mxu0 %v5051_v21  ;;  %1991 = vmatprep.mubr.bf16.mxu1 %v5051_v21 }
 0x72e   :  { %2239 = vmatpush1.bf16.msra.mxu0 %v4528_v50  ;;  %2280 = vmatpush1.bf16.msra.mxu1 %v4530_v51 }
 0x72f   :  { %2240 = vmatprep.subr.bf16.mxu0 %v4536_v52  ;;  %2281 = vmatprep.subr.bf16.mxu1 %v4538_v54 }
 0x732   :  { %2241 = vmatpush1.bf16.msra.mxu0 %v4540_v60  ;;  %2282 = vmatpush1.bf16.msra.mxu1 %v4542_v61 }
 0x733   :  { %2242 = vmatprep.subr.bf16.mxu0 %v4548_v63  ;;  %2283 = vmatprep.subr.bf16.mxu1 %v4550_v1 }
 0x736   :  { %2243 = vmatpush1.bf16.msra.mxu0 %v4552_v2  ;;  %2284 = vmatpush1.bf16.msra.mxu1 %v4554_v3 }
 0x737   :  { %2244 = vmatprep.subr.bf16.mxu0 %v4556_v4  ;;  %2285 = vmatprep.subr.bf16.mxu1 %v4558_v5 }
 0x73a   :  { %2245 = vmatpush1.bf16.msra.mxu0 %v4564_v41  ;;  %2286 = vmatpush1.bf16.msra.mxu1 %v4566_v42 }
 0x73b   :  { %2340 = vmatprep.subr.bf16.mxu0 %v4476_v37  ;;  %2381 = vmatprep.subr.bf16.mxu1 %v4478_v38 }
 0x7bc   :  { %v1537_v43 = vpop.f32.mrf.mxu0  ;;  %v1578_v45 = vpop.f32.mrf.mxu1 }
 0x7bd   :  { %v1585_v49 = vadd.f32 %v1537_v43, %v5068_v36  ;;  %v1587_v19 = vadd.f32 %v1578_v45, %v5070_v10 }
 0x7be   :  { %v1539_v46 = vpop.f32.mrf.mxu0  ;;  %v1580_v47 = vpop.f32.mrf.mxu1 }
 0x7bf   :  { %v1589_v48 = vmul.f32 0.5, %v1585_v49  ;;  %v1586_v35 = vadd.f32 %v1539_v46, %v4141_v15  ;;  %v1588_v8 = vadd.f32 %v1580_v47, %v5069_v34  ;;  %v1591_v56 = vmul.f32 0.5, %v1587_v19 }
 0x7c0   :  { %v1541_v22 = vpop.f32.mrf.mxu0  ;;  %v1582_v25 = vpop.f32.mrf.mxu1 }
 0x7c1   :  { %3554 = vtanh.f32 %v1589_v48  ;;  %v1590_v30 = vmul.f32 0.5, %v1586_v35 }
 0x7c2   :  { %v1542_v0 = vpop.f32.mrf.mxu0  ;;  %v1583_v17 = vpop.f32.mrf.mxu1 }
 0x7c3   :  { %3556 = vtanh.f32 %v1590_v30 }
 0x7c4   :  { %3558 = vtanh.f32 %v1588_v8 }
 0x7c5   :  { %3560 = vtanh.f32 %v1591_v56 }
 0x7ce   :  { %v3555_v57 = vpop.eup %3554 }
 0x7cf   :  { %v1595_v58 = vadd.f32 1.0, %v3555_v57 }
 0x7d0   :  { %v3557_v59 = vpop.eup %3556 }
 0x7d1   :  { %v1598_v44 = vmul.f32 0.5, %v1595_v58  ;;  %v1596_v62 = vadd.f32 1.0, %v3557_v59  ;;  %v3559_v15 = vpop.eup %3558 }
 0x7d2   :  { %v3561_v16 = vpop.eup %3560 }
 0x7d3   :  { %v1599_v9 = vmul.f32 0.5, %v1596_v62  ;;  %v1603_v24 = vmul.f32 %v3559_v15, %v1598_v44  ;;  %v1597_v29 = vadd.f32 1.0, %v3561_v16  ;;  %v1650_v16 = vld [vmem:[%s5021_s6] sm:$0xf]  ;;  %s3823_s6 = smov [#allocation12]  }
 0x7d4   :  { %s3117_s29 = sshll.u32 %s3823_s6, 4  ;;  %s3118_s29 = int_to_ptr.vmem [resolvable:$true] %s3117_s29 }
 0x7d5   :  { %v1602_v18 = vmul.f32 %v1599_v9, %v4465_v55  ;;  %v1600_v43 = vmul.f32 0.5, %v1597_v29  ;;  %s3788_s30 = scalar_lea.vmem %s3118_s29, 1024  ;;  %p3793_p7 = scmp.lt.s32.totalorder %s3118_s29, %s3118_s29 }
 0x7d6   :  { %p3789_p6 = scmp.ne.s32.totalorder %s3118_s29, %s3788_s30  ;;  %p3794_p8 = scmp.lt.s32.totalorder %s3788_s30, %s3788_s30 }
 0x7d7   :  { %v1604_v32 = vadd.f32 %v1603_v24, %v1602_v18 }
 0x7d8   :  { %p3795_p9 = por %p3794_p8, %p3793_p7 }
 0x7d9   :  { %3562 = vtanh.f32 %v1604_v32 }
 0x7da   :  { %p3796_p10 = pnand %p3795_p9, %p3789_p6 }
 0x7dc   :  { %v1890_v55 = vpop.f32.mrf.mxu0  ;;  %v1963_v47 = vpop.f32.mrf.mxu1 }
 0x7de   :  { %v1892_v48 = vpop.f32.mrf.mxu0  ;;  %v1965_v35 = vpop.f32.mrf.mxu1 }
 0x7e0   :  { %v4617_v22 = vpop.f32.mrf.mxu0  ;;  %v4619_v25 = vpop.f32.mrf.mxu1 }
 0x7e2   :  { %v4621_v30 = vpop.f32.mrf.mxu0  ;;  %v4623_v34 = vpop.f32.mrf.mxu1 }
 0x7e4   :  { %v4625_v8 = vpop.f32.mrf.mxu0  ;;  %v4627_v0 = vpop.f32.mrf.mxu1 }
 0x7e5   :  { %5071 = vst [vmem:[#allocation18_spill] sm:$0xff] %v4627_v0 }
 0x7e6   :  { %v3563_v36 = vpop.eup %3562  ;;  %v4629_v17 = vpop.f32.mrf.mxu0 }
 0x7e7   :  { %v1606_v49 = vmul.f32 %v3563_v36, %v1600_v43  ;;  %v4631_v10 = vpop.f32.mrf.mxu1 }
 0x7e8   :  { %5072 = vst [vmem:[#allocation20_spill] sm:$0xff] %v4631_v10  ;;  %v4633_v19 = vpop.f32.mrf.mxu0 }
 0x7e9   :  { %v1607_v45 = vpack.c.bf16 %v1606_v49, %v1606_v49  ;;  %5073 = vst [vmem:[#allocation21_spill] sm:$0xff] %v4633_v19  ;;  %v4635_v56 = vpop.f32.mrf.mxu1 }
 0x7ea   :  { %5074 = vst [vmem:[#allocation19_spill] sm:$0xff] %v4635_v56  ;;  %v4637_v57 = vpop.f32.mrf.mxu0 }
 0x7eb   :  { %1609 = vst [vmem:[#allocation3 + $0x1c] sm:$0xf] %v1607_v45  ;;  %5075 = vst [vmem:[#allocation22_spill] sm:$0xff] %v4637_v57  ;;  %v4639_v58 = vpop.f32.mrf.mxu1  ;;  %v5089_v45 = vld [vmem:[#allocation17_spill] sm:$0xff] }
 0x7ec   :  { %5076 = vst [vmem:[#allocation24_spill] sm:$0xff] %v4639_v58  ;;  %v4641_v59 = vpop.f32.mrf.mxu0  ;;  %v5097_v10 = vsub.s32 2, %v5089_v45 }
 0x7ed   :  { %5077 = vst [vmem:[#allocation25_spill] sm:$0xff] %v4641_v59  ;;  %v4643_v44 = vpop.f32.mrf.mxu1 }
 0x7ee   :  { %5078 = vst [vmem:[#allocation23_spill] sm:$0xff] %v4643_v44  ;;  %v4645_v62 = vpop.f32.mrf.mxu0 }
 0x7ef   :  { %5079 = vst [vmem:[#allocation26_spill] sm:$0xff] %v4645_v62  ;;  %v4647_v15 = vpop.f32.mrf.mxu1 }
 0x7f0   :  { %5080 = vst [vmem:[#allocation28_spill] sm:$0xff] %v4647_v15  ;;  %v4649_v9 = vpop.f32.mrf.mxu0 }
 0x7f1   :  { %5081 = vst [vmem:[#allocation29_spill] sm:$0xff] %v4649_v9  ;;  %v4651_v24 = vpop.f32.mrf.mxu1 }
 0x7f2   :  { %v3471_v46 = vld [vmem:[#allocation3 + $0x18] sm:$0xff]   ;;  %5082 = vst [vmem:[#allocation27_spill] sm:$0xff] %v4651_v24  ;;  %v4653_v18 = vpop.f32.mrf.mxu0 }
 0x7f3   :  { %1919 = vmatmul.mubr.bf16.gmra.mxu0 %v3471_v46  ;;  %1992 = vmatmul.mubr.bf16.gmra.mxu1 %v3471_v46  ;;  %5083 = vst [vmem:[#allocation30_spill] sm:$0xff] %v4653_v18  ;;  %v4655_v32 = vpop.f32.mrf.mxu1  ;;  %v5090_v46 = vsub.s32 0, %v5089_v45 }
 0x7f4   :  { %2262 = vmatprep.mubr.bf16.mxu0 %v5051_v21  ;;  %2303 = vmatprep.mubr.bf16.mxu1 %v5051_v21  ;;  %5084 = vst [vmem:[#allocation32_spill] sm:$0xff] %v4655_v32  ;;  %v5093_v32 = vsub.s32 1, %v5089_v45 }
 0x7f5   :  { %v4670_v9 = vrot.slane %v1650_v16, %v5090_v46  ;;  %v5096_v46 = vsub.s32 3, %v5089_v45 }
 0x7f6   :  { %v4678_v44 = vrot.slane %v1650_v16, %v5093_v32 }
 0x7f7   :  { %v4688_v59 = vrot.slane %v1650_v16, %v5096_v46 }
 0x7f8   :  { %v1893_v62 = vadd.f32 %v1892_v48, %v4678_v44  ;;  %v4693_v48 = vrot.slane %v1650_v16, %v5097_v10 }
 0x7fb   :  { %2263 = vmatmul.mubr.bf16.vlgmr.msra.gmra.mxu0 %v5051_v21  ;;  %2304 = vmatmul.mubr.bf16.vlgmr.msra.gmra.mxu1 %v5051_v21 }
 0x7fc   :  { %2341 = vmatpush1.bf16.msra.mxu0 %v4480_v39  ;;  %2382 = vmatpush1.bf16.msra.mxu1 %v4482_v40 }
 0x7fd   :  { %2342 = vmatprep.subr.bf16.mxu0 %v4488_v11  ;;  %2383 = vmatprep.subr.bf16.mxu1 %v4490_v20 }
 0x7fe   :  { %2372 = vmatprep.mubr.bf16.mxu0 %v5051_v21  ;;  %2413 = vmatprep.mubr.bf16.mxu1 %v5051_v21 }
 0x800   :  { %2343 = vmatpush1.bf16.msra.mxu0 %v4492_v23  ;;  %2384 = vmatpush1.bf16.msra.mxu1 %v4494_v26 }
 0x801   :  { %2344 = vmatprep.subr.bf16.mxu0 %v4500_v33  ;;  %2385 = vmatprep.subr.bf16.mxu1 %v4502_v13 }
 0x804   :  { %2345 = vmatpush1.bf16.msra.mxu0 %v4504_v14  ;;  %2386 = vmatpush1.bf16.msra.mxu1 %v4506_v31 }
 0x805   :  { %2346 = vmatprep.subr.bf16.mxu0 %v4512_v27  ;;  %2387 = vmatprep.subr.bf16.mxu1 %v4514_v7 }
 0x808   :  { %2347 = vmatpush1.bf16.msra.mxu0 %v4516_v6  ;;  %2388 = vmatpush1.bf16.msra.mxu1 %v4518_v53 }
 0x809   :  { %2348 = vmatprep.subr.bf16.mxu0 %v4524_v12  ;;  %2389 = vmatprep.subr.bf16.mxu1 %v4526_v28 }
 0x80c   :  { %2349 = vmatpush1.bf16.msra.mxu0 %v4528_v50  ;;  %2390 = vmatpush1.bf16.msra.mxu1 %v4530_v51 }
 0x80d   :  { %2350 = vmatprep.subr.bf16.mxu0 %v4536_v52  ;;  %2391 = vmatprep.subr.bf16.mxu1 %v4538_v54 }
 0x810   :  { %2351 = vmatpush1.bf16.msra.mxu0 %v4540_v60  ;;  %2392 = vmatpush1.bf16.msra.mxu1 %v4542_v61 }
 0x811   :  { %2352 = vmatprep.subr.bf16.mxu0 %v4548_v63  ;;  %2393 = vmatprep.subr.bf16.mxu1 %v4550_v1 }
 0x814   :  { %2353 = vmatpush1.bf16.msra.mxu0 %v4552_v2  ;;  %2394 = vmatpush1.bf16.msra.mxu1 %v4554_v3 }
 0x815   :  { %2354 = vmatprep.subr.bf16.mxu0 %v4556_v4  ;;  %2395 = vmatprep.subr.bf16.mxu1 %v4558_v5 }
 0x818   :  { %2355 = vmatpush1.bf16.msra.mxu0 %v4564_v41  ;;  %2396 = vmatpush1.bf16.msra.mxu1 %v4566_v42 }
 0x819   :  { %2451 = vmatprep.subr.bf16.mxu0 %v4476_v37  ;;  %2492 = vmatprep.subr.bf16.mxu1 %v4478_v38 }
 0x8b3   :  { %v4660_v29 = vpop.f32.mrf.mxu0  ;;  %v4662_v43 = vpop.f32.mrf.mxu1 }
 0x8b4   :  { %5085 = vst [vmem:[#allocation33_spill] sm:$0xff] %v4660_v29  ;;  %5086 = vst [vmem:[#allocation31_spill] sm:$0xff] %v4662_v43  ;;  %v1891_v43 = vadd.f32 %v1890_v55, %v4670_v9 }
 0x8b5   :  { %v4664_v36 = vpop.f32.mrf.mxu0  ;;  %v4666_v49 = vpop.f32.mrf.mxu1 }
 0x8b6   :  { %5087 = vst [vmem:[#allocation34_spill] sm:$0xff] %v4664_v36  ;;  %5088 = vst [vmem:[#allocation36_spill] sm:$0xff] %v4666_v49 }
 0x8b7   :  { %v4672_v24 = vpop.f32.mrf.mxu0  ;;  %v4674_v18 = vpop.f32.mrf.mxu1 }
 0x8b8   :  { %5091 = vst [vmem:[#allocation35_spill] sm:$0xff] %v4672_v24  ;;  %5092 = vst [vmem:[#allocation17_spill] sm:$0xff] %v4674_v18 }
 0x8b9   :  { %v4680_v15 = vpop.f32.mrf.mxu0  ;;  %v4682_v29 = vpop.f32.mrf.mxu1 }
 0x8ba   :  { %5094 = vst [vmem:[#allocation37_spill] sm:$0xff] %v4680_v15  ;;  %5095 = vst [vmem:[#allocation38_spill] sm:$0xff] %v4682_v29  ;;  %v1966_v15 = vadd.f32 %v1965_v35, %v4688_v59 }
 0x8bb   :  { %v2264_v36 = vpop.f32.mrf.mxu0  ;;  %v2305_v49 = vpop.f32.mrf.mxu1 }
 0x8bc   :  { %v2312_v24 = vadd.f32 %v2264_v36, %v1891_v43  ;;  %v1964_v43 = vadd.f32 %v1963_v47, %v4693_v48 }
 0x8bd   :  { %v2266_v18 = vpop.f32.mrf.mxu0  ;;  %v2307_v56 = vpop.f32.mrf.mxu1 }
 0x8be   :  { %v2316_v58 = vmul.f32 0.5, %v2312_v24  ;;  %v2313_v32 = vadd.f32 %v2266_v18, %v1893_v62  ;;  %v2315_v46 = vadd.f32 %v2307_v56, %v1966_v15  ;;  %v2314_v36 = vadd.f32 %v2305_v49, %v1964_v43 }
 0x8bf   :  { %v2268_v57 = vpop.f32.mrf.mxu0  ;;  %v2309_v19 = vpop.f32.mrf.mxu1  ;;  %v1895_v49 = vadd.f32 %v4617_v22, %v4670_v9 }
 0x8c0   :  { %3564 = vtanh.f32 %v2316_v58  ;;  %v2317_v29 = vmul.f32 0.5, %v2313_v32  ;;  %v2318_v24 = vmul.f32 0.5, %v2314_v36  ;;  %v1897_v36 = vadd.f32 %v4621_v30, %v4678_v44 }
 0x8c1   :  { %v2269_v55 = vpop.f32.mrf.mxu0  ;;  %v2310_v0 = vpop.f32.mrf.mxu1  ;;  %v1968_v30 = vadd.f32 %v4619_v25, %v4693_v48 }
 0x8c2   :  { %3566 = vtanh.f32 %v2317_v29 }
 0x8c3   :  { %3568 = vtanh.f32 %v2315_v46 }
 0x8c4   :  { %3570 = vtanh.f32 %v2318_v24 }
 0x8cd   :  { %v3565_v62 = vpop.eup %3564 }
 0x8ce   :  { %v2322_v57 = vadd.f32 1.0, %v3565_v62 }
 0x8cf   :  { %v3567_v19 = vpop.eup %3566 }
 0x8d0   :  { %v2325_v18 = vmul.f32 0.5, %v2322_v57  ;;  %v2323_v35 = vadd.f32 1.0, %v3567_v19  ;;  %v3569_v32 = vpop.eup %3568  ;;  %v1970_v19 = vadd.f32 %v4623_v34, %v4688_v59 }
 0x8d1   :  { %v3571_v10 = vpop.eup %3570 }
 0x8d2   :  { %v2326_v58 = vmul.f32 0.5, %v2323_v35  ;;  %v2330_v55 = vmul.f32 %v3569_v32, %v2325_v18  ;;  %v2324_v56 = vadd.f32 1.0, %v3571_v10 }
 0x8d4   :  { %v2329_v0 = vmul.f32 0.0, %v2326_v58  ;;  %v2327_v47 = vmul.f32 0.5, %v2324_v56 }
 0x8d6   :  { %v4696_v45 = vadd.f32 %v2330_v55, %v2329_v0 }
 0x8d8   :  { %3572 = vtanh.f32 %v4696_v45 }
 0x8e5   :  { %v3573_v15 = vpop.eup %3572 }
 0x8e6   :  { %v2333_v16 = vmul.f32 %v3573_v15, %v2327_v47 }
 0x8e8   :  { %2334 = vst [vmem:[#allocation12] sm:$0xff] %v2333_v16  ;;  %v2339_v29 = vpack.c.bf16 %v2333_v16, %v2333_v16 }
 0x8ea   :  { %2373 = vmatmul.mubr.bf16.vlgmr.msra.gmra.mxu0 %v2339_v29  ;;  %2414 = vmatmul.mubr.bf16.vlgmr.msra.gmra.mxu1 %v2339_v29 }
 0x8eb   :  { %2452 = vmatpush1.bf16.msra.mxu0 %v4480_v39  ;;  %2493 = vmatpush1.bf16.msra.mxu1 %v4482_v40 }
 0x8ec   :  { %2453 = vmatprep.subr.bf16.mxu0 %v4488_v11  ;;  %2494 = vmatprep.subr.bf16.mxu1 %v4490_v20 }
 0x8ed   :  { %2483 = vmatprep.mubr.bf16.mxu0 %v5051_v21  ;;  %2524 = vmatprep.mubr.bf16.mxu1 %v5051_v21 }
 0x8ef   :  { %2454 = vmatpush1.bf16.msra.mxu0 %v4492_v23  ;;  %2495 = vmatpush1.bf16.msra.mxu1 %v4494_v26 }
 0x8f0   :  { %2455 = vmatprep.subr.bf16.mxu0 %v4500_v33  ;;  %2496 = vmatprep.subr.bf16.mxu1 %v4502_v13 }
 0x8f3   :  { %2456 = vmatpush1.bf16.msra.mxu0 %v4504_v14  ;;  %2497 = vmatpush1.bf16.msra.mxu1 %v4506_v31 }
 0x8f4   :  { %2457 = vmatprep.subr.bf16.mxu0 %v4512_v27  ;;  %2498 = vmatprep.subr.bf16.mxu1 %v4514_v7 }
 0x8f7   :  { %2458 = vmatpush1.bf16.msra.mxu0 %v4516_v6  ;;  %2499 = vmatpush1.bf16.msra.mxu1 %v4518_v53 }
 0x8f8   :  { %2459 = vmatprep.subr.bf16.mxu0 %v4524_v12  ;;  %2500 = vmatprep.subr.bf16.mxu1 %v4526_v28 }
 0x8fb   :  { %2460 = vmatpush1.bf16.msra.mxu0 %v4528_v50  ;;  %2501 = vmatpush1.bf16.msra.mxu1 %v4530_v51 }
 0x8fc   :  { %2461 = vmatprep.subr.bf16.mxu0 %v4536_v52  ;;  %2502 = vmatprep.subr.bf16.mxu1 %v4538_v54 }
 0x8ff   :  { %2462 = vmatpush1.bf16.msra.mxu0 %v4540_v60  ;;  %2503 = vmatpush1.bf16.msra.mxu1 %v4542_v61 }
 0x900   :  { %2463 = vmatprep.subr.bf16.mxu0 %v4548_v63  ;;  %2504 = vmatprep.subr.bf16.mxu1 %v4550_v1 }
 0x903   :  { %2464 = vmatpush1.bf16.msra.mxu0 %v4552_v2  ;;  %2505 = vmatpush1.bf16.msra.mxu1 %v4554_v3 }
 0x904   :  { %2465 = vmatprep.subr.bf16.mxu0 %v4556_v4  ;;  %2506 = vmatprep.subr.bf16.mxu1 %v4558_v5 }
 0x907   :  { %2466 = vmatpush1.bf16.msra.mxu0 %v4564_v41  ;;  %2507 = vmatpush1.bf16.msra.mxu1 %v4566_v42 }
 0x908   :  { %2562 = vmatprep.subr.bf16.mxu0 %v4476_v37  ;;  %2603 = vmatprep.subr.bf16.mxu1 %v4478_v38 }
 0x9aa   :  { %v2374_v46 = vpop.f32.mrf.mxu0  ;;  %v2415_v43 = vpop.f32.mrf.mxu1 }
 0x9ab   :  { %v2422_v24 = vadd.f32 %v2374_v46, %v1895_v49  ;;  %v2424_v56 = vadd.f32 %v2415_v43, %v1968_v30 }
 0x9ac   :  { %v2376_v62 = vpop.f32.mrf.mxu0  ;;  %v2417_v57 = vpop.f32.mrf.mxu1 }
 0x9ad   :  { %v2426_v18 = vmul.f32 0.5, %v2422_v24  ;;  %v2423_v35 = vadd.f32 %v2376_v62, %v1897_v36  ;;  %v2425_v55 = vadd.f32 %v2417_v57, %v1970_v19  ;;  %v2428_v47 = vmul.f32 0.5, %v2424_v56  ;;  %v5098_v56 = vld [vmem:[#allocation20_spill] sm:$0xff] }
 0x9ae   :  { %v2378_v58 = vpop.f32.mrf.mxu0  ;;  %v2419_v32 = vpop.f32.mrf.mxu1 }
 0x9af   :  { %3574 = vtanh.f32 %v2426_v18  ;;  %v2427_v0 = vmul.f32 0.5, %v2423_v35 }
 0x9b0   :  { %v2379_v10 = vpop.f32.mrf.mxu0  ;;  %v2420_v22 = vpop.f32.mrf.mxu1 }
 0x9b1   :  { %3576 = vtanh.f32 %v2427_v0 }
 0x9b2   :  { %3578 = vtanh.f32 %v2425_v55  ;;  %v1903_v55 = vadd.f32 %v4629_v17, %v4678_v44 }
 0x9b3   :  { %3580 = vtanh.f32 %v2428_v47  ;;  %v1976_v47 = vadd.f32 %v5098_v56, %v4688_v59 }
 0x9bc   :  { %v3575_v15 = vpop.eup %3574 }
 0x9bd   :  { %v2432_v16 = vadd.f32 1.0, %v3575_v15 }
 0x9be   :  { %v3577_v29 = vpop.eup %3576 }
 0x9bf   :  { %v2435_v34 = vmul.f32 0.5, %v2432_v16  ;;  %v2433_v49 = vadd.f32 1.0, %v3577_v29  ;;  %v3579_v46 = vpop.eup %3578 }
 0x9c0   :  { %v3581_v19 = vpop.eup %3580 }
 0x9c1   :  { %v2436_v36 = vmul.f32 0.5, %v2433_v49  ;;  %v2440_v24 = vmul.f32 %v3579_v46, %v2435_v34  ;;  %v2434_v18 = vadd.f32 1.0, %v3581_v19 }
 0x9c3   :  { %v2439_v62 = vmul.f32 %v2436_v36, %v4696_v45  ;;  %v2437_v25 = vmul.f32 0.5, %v2434_v18  ;;  %v1901_v45 = vadd.f32 %v4625_v8, %v4670_v9 }
 0x9c5   :  { %v4742_v57 = vadd.f32 %v2440_v24, %v2439_v62  ;;  %v5099_v24 = vld [vmem:[#allocation18_spill] sm:$0xff] }
 0x9c6   :  { %v1974_v17 = vadd.f32 %v5099_v24, %v4693_v48 }
 0x9c7   :  { %3582 = vtanh.f32 %v4742_v57 }
 0x9d4   :  { %v3583_v43 = vpop.eup %3582 }
 0x9d5   :  { %v2443_v35 = vmul.f32 %v3583_v43, %v2437_v25 }
 0x9d7   :  { %2445 = vst [vmem:[#allocation12 + $0x8] sm:$0xff] %v2443_v35  ;;  %v2450_v58 = vpack.c.bf16 %v2443_v35, %v2443_v35 }
 0x9d9   :  { %2484 = vmatmul.mubr.bf16.vlgmr.msra.gmra.mxu0 %v2450_v58  ;;  %2525 = vmatmul.mubr.bf16.vlgmr.msra.gmra.mxu1 %v2450_v58 }
 0x9da   :  { %2563 = vmatpush1.bf16.msra.mxu0 %v4480_v39  ;;  %2604 = vmatpush1.bf16.msra.mxu1 %v4482_v40 }
 0x9db   :  { %2564 = vmatprep.subr.bf16.mxu0 %v4488_v11  ;;  %2605 = vmatprep.subr.bf16.mxu1 %v4490_v20 }
 0x9dc   :  { %2594 = vmatprep.mubr.bf16.mxu0 %v5051_v21  ;;  %2635 = vmatprep.mubr.bf16.mxu1 %v5051_v21 }
 0x9de   :  { %2565 = vmatpush1.bf16.msra.mxu0 %v4492_v23  ;;  %2606 = vmatpush1.bf16.msra.mxu1 %v4494_v26 }
 0x9df   :  { %2566 = vmatprep.subr.bf16.mxu0 %v4500_v33  ;;  %2607 = vmatprep.subr.bf16.mxu1 %v4502_v13 }
 0x9e2   :  { %2567 = vmatpush1.bf16.msra.mxu0 %v4504_v14  ;;  %2608 = vmatpush1.bf16.msra.mxu1 %v4506_v31 }
 0x9e3   :  { %2568 = vmatprep.subr.bf16.mxu0 %v4512_v27  ;;  %2609 = vmatprep.subr.bf16.mxu1 %v4514_v7 }
 0x9e6   :  { %2569 = vmatpush1.bf16.msra.mxu0 %v4516_v6  ;;  %2610 = vmatpush1.bf16.msra.mxu1 %v4518_v53 }
 0x9e7   :  { %2570 = vmatprep.subr.bf16.mxu0 %v4524_v12  ;;  %2611 = vmatprep.subr.bf16.mxu1 %v4526_v28 }
 0x9ea   :  { %2571 = vmatpush1.bf16.msra.mxu0 %v4528_v50  ;;  %2612 = vmatpush1.bf16.msra.mxu1 %v4530_v51 }
 0x9eb   :  { %2572 = vmatprep.subr.bf16.mxu0 %v4536_v52  ;;  %2613 = vmatprep.subr.bf16.mxu1 %v4538_v54 }
 0x9ee   :  { %2573 = vmatpush1.bf16.msra.mxu0 %v4540_v60  ;;  %2614 = vmatpush1.bf16.msra.mxu1 %v4542_v61 }
 0x9ef   :  { %2574 = vmatprep.subr.bf16.mxu0 %v4548_v63  ;;  %2615 = vmatprep.subr.bf16.mxu1 %v4550_v1 }
 0x9f2   :  { %2575 = vmatpush1.bf16.msra.mxu0 %v4552_v2  ;;  %2616 = vmatpush1.bf16.msra.mxu1 %v4554_v3 }
 0x9f3   :  { %2576 = vmatprep.subr.bf16.mxu0 %v4556_v4  ;;  %2617 = vmatprep.subr.bf16.mxu1 %v4558_v5 }
 0x9f6   :  { %2577 = vmatpush1.bf16.msra.mxu0 %v4564_v41  ;;  %2618 = vmatpush1.bf16.msra.mxu1 %v4566_v42 }
 0x9f7   :  { %2673 = vmatprep.subr.bf16.mxu0 %v4476_v37  ;;  %2714 = vmatprep.subr.bf16.mxu1 %v4478_v38 }
 0xa99   :  { %v2485_v32 = vpop.f32.mrf.mxu0  ;;  %v2526_v0 = vpop.f32.mrf.mxu1 }
 0xa9a   :  { %v2533_v10 = vadd.f32 %v2485_v32, %v1901_v45  ;;  %v2535_v62 = vadd.f32 %v2526_v0, %v1974_v17 }
 0xa9b   :  { %v2487_v22 = vpop.f32.mrf.mxu0  ;;  %v2528_v30 = vpop.f32.mrf.mxu1 }
 0xa9c   :  { %v2537_v15 = vmul.f32 0.5, %v2533_v10  ;;  %v2534_v16 = vadd.f32 %v2487_v22, %v1903_v55  ;;  %v2536_v46 = vadd.f32 %v2528_v30, %v1976_v47  ;;  %v2539_v19 = vmul.f32 0.5, %v2535_v62  ;;  %v5102_v62 = vld [vmem:[#allocation24_spill] sm:$0xff] }
 0xa9d   :  { %v2489_v29 = vpop.f32.mrf.mxu0  ;;  %v2530_v34 = vpop.f32.mrf.mxu1 }
 0xa9e   :  { %3584 = vtanh.f32 %v2537_v15  ;;  %v2538_v49 = vmul.f32 0.5, %v2534_v16 }
 0xa9f   :  { %v2490_v36 = vpop.f32.mrf.mxu0  ;;  %v2531_v8 = vpop.f32.mrf.mxu1 }
 0xaa0   :  { %3586 = vtanh.f32 %v2538_v49 }
 0xaa1   :  { %3588 = vtanh.f32 %v2536_v46  ;;  %v5101_v46 = vld [vmem:[#allocation22_spill] sm:$0xff] }
 0xaa2   :  { %3590 = vtanh.f32 %v2539_v19  ;;  %v1907_v36 = vadd.f32 %v5101_v46, %v4678_v44  ;;  %v1980_v19 = vadd.f32 %v5102_v62, %v4688_v59 }
 0xaab   :  { %v3585_v18 = vpop.eup %3584 }
 0xaac   :  { %v2543_v25 = vadd.f32 1.0, %v3585_v18 }
 0xaad   :  { %v3587_v43 = vpop.eup %3586 }
 0xaae   :  { %v2546_v35 = vmul.f32 0.5, %v2543_v25  ;;  %v2544_v58 = vadd.f32 1.0, %v3587_v43  ;;  %v3589_v45 = vpop.eup %3588 }
 0xaaf   :  { %v3591_v30 = vpop.eup %3590 }
 0xab0   :  { %v2547_v32 = vmul.f32 0.5, %v2544_v58  ;;  %v2551_v55 = vmul.f32 %v3589_v45, %v2546_v35  ;;  %v2545_v56 = vadd.f32 1.0, %v3591_v30 }
 0xab2   :  { %v2550_v10 = vmul.f32 %v2547_v32, %v4742_v57  ;;  %v2548_v47 = vmul.f32 0.5, %v2545_v56  ;;  %v5100_v57 = vld [vmem:[#allocation21_spill] sm:$0xff] }
 0xab3   :  { %v1905_v29 = vadd.f32 %v5100_v57, %v4670_v9 }
 0xab4   :  { %v4788_v22 = vadd.f32 %v2551_v55, %v2550_v10  ;;  %v5103_v10 = vld [vmem:[#allocation19_spill] sm:$0xff] }
 0xab5   :  { %v1978_v30 = vadd.f32 %v5103_v10, %v4693_v48 }
 0xab6   :  { %3592 = vtanh.f32 %v4788_v22 }
 0xac3   :  { %v3593_v0 = vpop.eup %3592 }
 0xac4   :  { %v2554_v15 = vmul.f32 %v3593_v0, %v2548_v47 }
 0xac6   :  { %2556 = vst [vmem:[#allocation12 + $0x10] sm:$0xff] %v2554_v15  ;;  %v2561_v16 = vpack.c.bf16 %v2554_v15, %v2554_v15 }
 0xac8   :  { %2595 = vmatmul.mubr.bf16.vlgmr.msra.gmra.mxu0 %v2561_v16  ;;  %2636 = vmatmul.mubr.bf16.vlgmr.msra.gmra.mxu1 %v2561_v16 }
 0xac9   :  { %2674 = vmatpush1.bf16.msra.mxu0 %v4480_v39  ;;  %2715 = vmatpush1.bf16.msra.mxu1 %v4482_v40 }
 0xaca   :  { %2675 = vmatprep.subr.bf16.mxu0 %v4488_v11  ;;  %2716 = vmatprep.subr.bf16.mxu1 %v4490_v20 }
 0xacb   :  { %2705 = vmatprep.mubr.bf16.mxu0 %v5051_v21  ;;  %2746 = vmatprep.mubr.bf16.mxu1 %v5051_v21 }
 0xacd   :  { %2676 = vmatpush1.bf16.msra.mxu0 %v4492_v23  ;;  %2717 = vmatpush1.bf16.msra.mxu1 %v4494_v26 }
 0xace   :  { %2677 = vmatprep.subr.bf16.mxu0 %v4500_v33  ;;  %2718 = vmatprep.subr.bf16.mxu1 %v4502_v13 }
 0xad1   :  { %2678 = vmatpush1.bf16.msra.mxu0 %v4504_v14  ;;  %2719 = vmatpush1.bf16.msra.mxu1 %v4506_v31 }
 0xad2   :  { %2679 = vmatprep.subr.bf16.mxu0 %v4512_v27  ;;  %2720 = vmatprep.subr.bf16.mxu1 %v4514_v7 }
 0xad5   :  { %2680 = vmatpush1.bf16.msra.mxu0 %v4516_v6  ;;  %2721 = vmatpush1.bf16.msra.mxu1 %v4518_v53 }
 0xad6   :  { %2681 = vmatprep.subr.bf16.mxu0 %v4524_v12  ;;  %2722 = vmatprep.subr.bf16.mxu1 %v4526_v28 }
 0xad9   :  { %2682 = vmatpush1.bf16.msra.mxu0 %v4528_v50  ;;  %2723 = vmatpush1.bf16.msra.mxu1 %v4530_v51 }
 0xada   :  { %2683 = vmatprep.subr.bf16.mxu0 %v4536_v52  ;;  %2724 = vmatprep.subr.bf16.mxu1 %v4538_v54 }
 0xadd   :  { %2684 = vmatpush1.bf16.msra.mxu0 %v4540_v60  ;;  %2725 = vmatpush1.bf16.msra.mxu1 %v4542_v61 }
 0xade   :  { %2685 = vmatprep.subr.bf16.mxu0 %v4548_v63  ;;  %2726 = vmatprep.subr.bf16.mxu1 %v4550_v1 }
 0xae1   :  { %2686 = vmatpush1.bf16.msra.mxu0 %v4552_v2  ;;  %2727 = vmatpush1.bf16.msra.mxu1 %v4554_v3 }
 0xae2   :  { %2687 = vmatprep.subr.bf16.mxu0 %v4556_v4  ;;  %2728 = vmatprep.subr.bf16.mxu1 %v4558_v5 }
 0xae5   :  { %2688 = vmatpush1.bf16.msra.mxu0 %v4564_v41  ;;  %2729 = vmatpush1.bf16.msra.mxu1 %v4566_v42 }
 0xae6   :  { %2784 = vmatprep.subr.bf16.mxu0 %v4476_v37  ;;  %2825 = vmatprep.subr.bf16.mxu1 %v4478_v38 }
 0xb88   :  { %v2596_v34 = vpop.f32.mrf.mxu0  ;;  %v2637_v49 = vpop.f32.mrf.mxu1 }
 0xb89   :  { %v2644_v8 = vadd.f32 %v2596_v34, %v1905_v29  ;;  %v2646_v56 = vadd.f32 %v2637_v49, %v1978_v30 }
 0xb8a   :  { %v2598_v24 = vpop.f32.mrf.mxu0  ;;  %v2639_v17 = vpop.f32.mrf.mxu1 }
 0xb8b   :  { %v2648_v18 = vmul.f32 0.5, %v2644_v8  ;;  %v2645_v25 = vadd.f32 %v2598_v24, %v1907_v36  ;;  %v2647_v45 = vadd.f32 %v2639_v17, %v1980_v19  ;;  %v2650_v47 = vmul.f32 0.5, %v2646_v56 }
 0xb8c   :  { %v2600_v43 = vpop.f32.mrf.mxu0  ;;  %v2641_v35 = vpop.f32.mrf.mxu1 }
 0xb8d   :  { %3594 = vtanh.f32 %v2648_v18  ;;  %v2649_v58 = vmul.f32 0.5, %v2645_v25 }
 0xb8e   :  { %v2601_v32 = vpop.f32.mrf.mxu0  ;;  %v2642_v55 = vpop.f32.mrf.mxu1 }
 0xb8f   :  { %3596 = vtanh.f32 %v2649_v58 }
 0xb90   :  { %3598 = vtanh.f32 %v2647_v45 }
 0xb91   :  { %3600 = vtanh.f32 %v2650_v47 }
 0xb9a   :  { %v3595_v0 = vpop.eup %3594 }
 0xb9b   :  { %v2654_v15 = vadd.f32 1.0, %v3595_v0 }
 0xb9c   :  { %v3597_v16 = vpop.eup %3596 }
 0xb9d   :  { %v2657_v57 = vmul.f32 0.5, %v2654_v15  ;;  %v2655_v29 = vadd.f32 1.0, %v3597_v16  ;;  %v3599_v34 = vpop.eup %3598 }
 0xb9e   :  { %v3601_v17 = vpop.eup %3600 }
 0xb9f   :  { %v2658_v46 = vmul.f32 0.5, %v2655_v29  ;;  %v2662_v36 = vmul.f32 %v3599_v34, %v2657_v57  ;;  %v2656_v62 = vadd.f32 1.0, %v3601_v17  ;;  %v4883_v29 = vld [vmem:[#allocation10 + $0xe0] ss:$16 sps:$4 sm:$0xff]   ;;  %v4886_v34 = vld [vmem:[#allocation10 + $0xe8] ss:$16 sps:$4 sm:$0xff]  }
 0xba0   :  { %v4903_v17 = vld [vmem:[#allocation10 + $0xa4] ss:$16 sps:$4 sm:$0xff]  }
 0xba1   :  { %v2661_v8 = vmul.f32 %v2658_v46, %v4788_v22  ;;  %v2659_v19 = vmul.f32 0.5, %v2656_v62  ;;  %v4889_v46 = vld [vmem:[#allocation10 + $0xc4] ss:$16 sps:$4 sm:$0xff]   ;;  %v4906_v62 = vld [vmem:[#allocation10 + $0xac] ss:$16 sps:$4 sm:$0xff]  }
 0xba3   :  { %v4834_v24 = vadd.f32 %v2662_v36, %v2661_v8  ;;  %v4892_v36 = vld [vmem:[#allocation10 + $0xcc] ss:$16 sps:$4 sm:$0xff]   ;;  %v4897_v8 = vld [vmem:[#allocation10 + $0xc0] ss:$16 sps:$4 sm:$0xff]  }
 0xba5   :  { %3602 = vtanh.f32 %v4834_v24 }
 0xbb2   :  { %v3603_v49 = vpop.eup %3602 }
 0xbb3   :  { %v2665_v18 = vmul.f32 %v3603_v49, %v2659_v19  ;;  %v4909_v19 = vld [vmem:[#allocation10 + $0xa0] ss:$16 sps:$4 sm:$0xff]   ;;  %v4912_v49 = vld [vmem:[#allocation10 + $0xa8] ss:$16 sps:$4 sm:$0xff]  }
 0xbb5   :  { %2667 = vst [vmem:[#allocation12 + $0x18] sm:$0xff] %v2665_v18  ;;  %v2672_v25 = vpack.c.bf16 %v2665_v18, %v2665_v18  ;;  %v4915_v18 = vld [vmem:[#allocation10 + $0x84] ss:$16 sps:$4 sm:$0xff]  }
 0xbb7   :  { %2706 = vmatmul.mubr.bf16.vlgmr.msra.gmra.mxu0 %v2672_v25  ;;  %2747 = vmatmul.mubr.bf16.vlgmr.msra.gmra.mxu1 %v2672_v25  ;;  %v4918_v25 = vld [vmem:[#allocation10 + $0x8c] ss:$16 sps:$4 sm:$0xff]  }
 0xbb8   :  { %2785 = vmatpush1.bf16.msra.mxu0 %v4480_v39  ;;  %2826 = vmatpush1.bf16.msra.mxu1 %v4482_v40  ;;  %v5104_v39 = vld [vmem:[#allocation25_spill] sm:$0xff] }
 0xbb9   :  { %2786 = vmatprep.subr.bf16.mxu0 %v4488_v11  ;;  %2827 = vmatprep.subr.bf16.mxu1 %v4490_v20  ;;  %v1911_v40 = vadd.f32 %v5104_v39, %v4670_v9  ;;  %v4921_v39 = vld [vmem:[#allocation10 + $0x80] ss:$16 sps:$4 sm:$0xff]  }
 0xbba   :  { %2816 = vmatprep.mubr.bf16.mxu0 %v5051_v21  ;;  %2857 = vmatprep.mubr.bf16.mxu1 %v5051_v21 }
 0xbbc   :  { %2787 = vmatpush1.bf16.msra.mxu0 %v4492_v23  ;;  %2828 = vmatpush1.bf16.msra.mxu1 %v4494_v26  ;;  %v5105_v23 = vld [vmem:[#allocation26_spill] sm:$0xff] }
 0xbbd   :  { %2788 = vmatprep.subr.bf16.mxu0 %v4500_v33  ;;  %2829 = vmatprep.subr.bf16.mxu1 %v4502_v13  ;;  %v1913_v26 = vadd.f32 %v5105_v23, %v4678_v44  ;;  %v4933_v23 = vld [vmem:[#allocation10 + $0x60] ss:$16 sps:$4 sm:$0xff]  }
 0xbc0   :  { %2789 = vmatpush1.bf16.msra.mxu0 %v4504_v14  ;;  %2830 = vmatpush1.bf16.msra.mxu1 %v4506_v31  ;;  %v5106_v31 = vld [vmem:[#allocation28_spill] sm:$0xff] }
 0xbc1   :  { %2790 = vmatprep.subr.bf16.mxu0 %v4512_v27  ;;  %2831 = vmatprep.subr.bf16.mxu1 %v4514_v7  ;;  %v1986_v27 = vadd.f32 %v5106_v31, %v4688_v59  ;;  %v4948_v31 = vld [vmem:[#allocation10 + $0x48] ss:$16 sps:$4 sm:$0xff]  }
 0xbc4   :  { %2791 = vmatpush1.bf16.msra.mxu0 %v4516_v6  ;;  %2832 = vmatpush1.bf16.msra.mxu1 %v4518_v53 }
 0xbc5   :  { %2792 = vmatprep.subr.bf16.mxu0 %v4524_v12  ;;  %2833 = vmatprep.subr.bf16.mxu1 %v4526_v28 }
 0xbc8   :  { %2793 = vmatpush1.bf16.msra.mxu0 %v4528_v50  ;;  %2834 = vmatpush1.bf16.msra.mxu1 %v4530_v51  ;;  %v5107_v51 = vld [vmem:[#allocation23_spill] sm:$0xff] }
 0xbc9   :  { %2794 = vmatprep.subr.bf16.mxu0 %v4536_v52  ;;  %2835 = vmatprep.subr.bf16.mxu1 %v4538_v54  ;;  %v1984_v52 = vadd.f32 %v5107_v51, %v4693_v48 }
 0xbcc   :  { %2795 = vmatpush1.bf16.msra.mxu0 %v4540_v60  ;;  %2836 = vmatpush1.bf16.msra.mxu1 %v4542_v61 }
 0xbcd   :  { %2796 = vmatprep.subr.bf16.mxu0 %v4548_v63  ;;  %2837 = vmatprep.subr.bf16.mxu1 %v4550_v1 }
 0xbd0   :  { %2797 = vmatpush1.bf16.msra.mxu0 %v4552_v2  ;;  %2838 = vmatpush1.bf16.msra.mxu1 %v4554_v3 }
 0xbd1   :  { %2798 = vmatprep.subr.bf16.mxu0 %v4556_v4  ;;  %2839 = vmatprep.subr.bf16.mxu1 %v4558_v5 }
 0xbd4   :  { %2799 = vmatpush1.bf16.msra.mxu0 %v4564_v41  ;;  %2840 = vmatpush1.bf16.msra.mxu1 %v4566_v42 }
 0xbd5   :  { %2895 = vmatprep.subr.bf16.mxu0 %v4476_v37  ;;  %2936 = vmatprep.subr.bf16.mxu1 %v4478_v38 }
 0xc77   :  { %v2707_v11 = vpop.f32.mrf.mxu0  ;;  %v2748_v20 = vpop.f32.mrf.mxu1 }
 0xc78   :  { %v2755_v33 = vadd.f32 %v2707_v11, %v1911_v40  ;;  %v2757_v54 = vadd.f32 %v2748_v20, %v1984_v52  ;;  %v4924_v40 = vld [vmem:[#allocation10 + $0x88] ss:$16 sps:$4 sm:$0xff]   ;;  %v4927_v11 = vld [vmem:[#allocation10 + $0x64] ss:$16 sps:$4 sm:$0xff]   ;;  %v4930_v20 = vld [vmem:[#allocation10 + $0x6c] ss:$16 sps:$4 sm:$0xff]  }
 0xc79   :  { %v2709_v13 = vpop.f32.mrf.mxu0  ;;  %v2750_v14 = vpop.f32.mrf.mxu1 }
 0xc7a   :  { %v2759_v7 = vmul.f32 0.5, %v2755_v33  ;;  %v2756_v6 = vadd.f32 %v2709_v13, %v1913_v26  ;;  %v2758_v12 = vadd.f32 %v2750_v14, %v1986_v27  ;;  %v2761_v60 = vmul.f32 0.5, %v2757_v54  ;;  %v4936_v26 = vld [vmem:[#allocation10 + $0x68] ss:$16 sps:$4 sm:$0xff]   ;;  %v4939_v33 = vld [vmem:[#allocation10 + $0x44] ss:$16 sps:$4 sm:$0xff]  }
 0xc7b   :  { %v2711_v53 = vpop.f32.mrf.mxu0  ;;  %v2752_v37 = vpop.f32.mrf.mxu1  ;;  %v4942_v13 = vld [vmem:[#allocation10 + $0x4c] ss:$16 sps:$4 sm:$0xff]   ;;  %v4945_v14 = vld [vmem:[#allocation10 + $0x40] ss:$16 sps:$4 sm:$0xff]   ;;  %v3698_v27 = vld [vmem:[#allocation10 + $0xe4] ss:$16 sps:$4 sm:$0xff]  }
 0xc7c   :  { %3604 = vtanh.f32 %v2759_v7  ;;  %v2760_v38 = vmul.f32 0.5, %v2756_v6  ;;  %v3699_v7 = vld [vmem:[#allocation10 + $0xec] ss:$16 sps:$4 sm:$0xff]  }
 0xc7d   :  { %v2712_v28 = vpop.f32.mrf.mxu0  ;;  %v2753_v50 = vpop.f32.mrf.mxu1 }
 0xc7e   :  { %3606 = vtanh.f32 %v2760_v38 }
 0xc7f   :  { %3608 = vtanh.f32 %v2758_v12 }
 0xc80   :  { %3610 = vtanh.f32 %v2761_v60 }
 0xc89   :  { %v3605_v61 = vpop.eup %3604 }
 0xc8a   :  { %v2765_v22 = vadd.f32 1.0, %v3605_v61  ;;  %v5111_v61 = vld [vmem:[#allocation27_spill] sm:$0xff] }
 0xc8b   :  { %v3607_v43 = vpop.eup %3606 }
 0xc8c   :  { %v2768_v35 = vmul.f32 0.5, %v2765_v22  ;;  %v2766_v58 = vadd.f32 1.0, %v3607_v43  ;;  %v3609_v45 = vpop.eup %3608  ;;  %v1988_v22 = vadd.f32 %v5111_v61, %v4693_v48 }
 0xc8d   :  { %v3611_v56 = vpop.eup %3610 }
 0xc8e   :  { %v2769_v32 = vmul.f32 0.5, %v2766_v58  ;;  %v2773_v55 = vmul.f32 %v3609_v45, %v2768_v35  ;;  %v2767_v47 = vadd.f32 1.0, %v3611_v56 }
 0xc90   :  { %v2772_v10 = vmul.f32 %v2769_v32, %v4834_v24  ;;  %v2770_v0 = vmul.f32 0.5, %v2767_v47  ;;  %v4900_v24 = vld [vmem:[#allocation10 + $0xc8] ss:$16 sps:$4 sm:$0xff]  }
 0xc92   :  { %v4880_v30 = vadd.f32 %v2773_v55, %v2772_v10 }
 0xc94   :  { %3612 = vtanh.f32 %v4880_v30 }
 0xca1   :  { %v3613_v15 = vpop.eup %3612 }
 0xca2   :  { %v2776_v16 = vmul.f32 %v3613_v15, %v2770_v0 }
 0xca4   :  { %2778 = vst [vmem:[#allocation12 + $0x20] sm:$0xff] %v2776_v16  ;;  %v2783_v57 = vpack.c.bf16 %v2776_v16, %v2776_v16 }
 0xca6   :  { %2817 = vmatmul.mubr.bf16.vlgmr.msra.gmra.mxu0 %v2783_v57  ;;  %2858 = vmatmul.mubr.bf16.vlgmr.msra.gmra.mxu1 %v2783_v57 }
 0xca7   :  { %2896 = vmatpush1.bf16.msra.mxu0 %v4883_v29  ;;  %2937 = vmatpush1.bf16.msra.mxu1 %v4886_v34 }
 0xca8   :  { %2897 = vmatprep.subr.bf16.mxu0 %v4889_v46  ;;  %2938 = vmatprep.subr.bf16.mxu1 %v4892_v36 }
 0xca9   :  { %2927 = vmatprep.mubr.bf16.mxu0 %v5051_v21  ;;  %2968 = vmatprep.mubr.bf16.mxu1 %v5051_v21 }
 0xcab   :  { %2898 = vmatpush1.bf16.msra.mxu0 %v4897_v8  ;;  %2939 = vmatpush1.bf16.msra.mxu1 %v4900_v24 }
 0xcac   :  { %2899 = vmatprep.subr.bf16.mxu0 %v4903_v17  ;;  %2940 = vmatprep.subr.bf16.mxu1 %v4906_v62 }
 0xcaf   :  { %2900 = vmatpush1.bf16.msra.mxu0 %v4909_v19  ;;  %2941 = vmatpush1.bf16.msra.mxu1 %v4912_v49 }
 0xcb0   :  { %2901 = vmatprep.subr.bf16.mxu0 %v4915_v18  ;;  %2942 = vmatprep.subr.bf16.mxu1 %v4918_v25 }
 0xcb3   :  { %2902 = vmatpush1.bf16.msra.mxu0 %v4921_v39  ;;  %2943 = vmatpush1.bf16.msra.mxu1 %v4924_v40 }
 0xcb4   :  { %2903 = vmatprep.subr.bf16.mxu0 %v4927_v11  ;;  %2944 = vmatprep.subr.bf16.mxu1 %v4930_v20 }
 0xcb7   :  { %2904 = vmatpush1.bf16.msra.mxu0 %v4933_v23  ;;  %2945 = vmatpush1.bf16.msra.mxu1 %v4936_v26 }
 0xcb8   :  { %2905 = vmatprep.subr.bf16.mxu0 %v4939_v33  ;;  %2946 = vmatprep.subr.bf16.mxu1 %v4942_v13 }
 0xcbb   :  { %2906 = vmatpush1.bf16.msra.mxu0 %v4945_v14  ;;  %2947 = vmatpush1.bf16.msra.mxu1 %v4948_v31 }
 0xcbc   :  { %2907 = vmatprep.subr.bf16.mxu0 %v4548_v63  ;;  %2948 = vmatprep.subr.bf16.mxu1 %v4550_v1  ;;  %v5108_v63 = vld [vmem:[#allocation29_spill] sm:$0xff] }
 0xcbd   :  { %v1915_v6 = vadd.f32 %v5108_v63, %v4670_v9 }
 0xcbf   :  { %2908 = vmatpush1.bf16.msra.mxu0 %v4552_v2  ;;  %2949 = vmatpush1.bf16.msra.mxu1 %v4554_v3  ;;  %v5109_v2 = vld [vmem:[#allocation30_spill] sm:$0xff] }
 0xcc0   :  { %2909 = vmatprep.subr.bf16.mxu0 %v4556_v4  ;;  %2950 = vmatprep.subr.bf16.mxu1 %v4558_v5  ;;  %v1917_v3 = vadd.f32 %v5109_v2, %v4678_v44 }
 0xcc3   :  { %2910 = vmatpush1.bf16.msra.mxu0 %v4564_v41  ;;  %2951 = vmatpush1.bf16.msra.mxu1 %v4566_v42  ;;  %v5110_v42 = vld [vmem:[#allocation32_spill] sm:$0xff] }
 0xcc4   :  { %3006 = vmatprep.subr.bf16.mxu0 %v3698_v27  ;;  %3047 = vmatprep.subr.bf16.mxu1 %v3699_v7  ;;  %v1990_v50 = vadd.f32 %v5110_v42, %v4688_v59 }
 0xd66   :  { %v2818_v1 = vpop.f32.mrf.mxu0  ;;  %v2859_v53 = vpop.f32.mrf.mxu1 }
 0xd67   :  { %v2866_v37 = vadd.f32 %v2818_v1, %v1915_v6  ;;  %v2868_v43 = vadd.f32 %v2859_v53, %v1988_v22 }
 0xd68   :  { %v2820_v4 = vpop.f32.mrf.mxu0  ;;  %v2861_v38 = vpop.f32.mrf.mxu1 }
 0xd69   :  { %v2870_v5 = vmul.f32 0.5, %v2866_v37  ;;  %v2867_v12 = vadd.f32 %v2820_v4, %v1917_v3  ;;  %v2869_v60 = vadd.f32 %v2861_v38, %v1990_v50  ;;  %v2872_v35 = vmul.f32 0.5, %v2868_v43  ;;  %v5115_v37 = vld [vmem:[#allocation31_spill] sm:$0xff] }
 0xd6a   :  { %v2822_v41 = vpop.f32.mrf.mxu0  ;;  %v2863_v28 = vpop.f32.mrf.mxu1  ;;  %v1994_v4 = vadd.f32 %v5115_v37, %v4693_v48 }
 0xd6b   :  { %3614 = vtanh.f32 %v2870_v5  ;;  %v2871_v51 = vmul.f32 0.5, %v2867_v12 }
 0xd6c   :  { %v2823_v52 = vpop.f32.mrf.mxu0  ;;  %v2864_v54 = vpop.f32.mrf.mxu1 }
 0xd6d   :  { %3616 = vtanh.f32 %v2871_v51 }
 0xd6e   :  { %3618 = vtanh.f32 %v2869_v60 }
 0xd6f   :  { %3620 = vtanh.f32 %v2872_v35 }
 0xd78   :  { %v3615_v58 = vpop.eup %3614 }
 0xd79   :  { %v2876_v45 = vadd.f32 1.0, %v3615_v58 }
 0xd7a   :  { %v3617_v32 = vpop.eup %3616 }
 0xd7b   :  { %v2879_v55 = vmul.f32 0.5, %v2876_v45  ;;  %v2877_v10 = vadd.f32 1.0, %v3617_v32  ;;  %v3619_v47 = vpop.eup %3618 }
 0xd7c   :  { %v3621_v57 = vpop.eup %3620 }
 0xd7d   :  { %v2880_v56 = vmul.f32 0.5, %v2877_v10  ;;  %v2884_v15 = vmul.f32 %v3619_v47, %v2879_v55  ;;  %v2878_v27 = vadd.f32 1.0, %v3621_v57  ;;  %v5116_v55 = vld [vmem:[#allocation35_spill] sm:$0xff] }
 0xd7e   :  { %v1925_v10 = vadd.f32 %v5116_v55, %v4670_v9 }
 0xd7f   :  { %v2883_v0 = vmul.f32 %v2880_v56, %v4880_v30  ;;  %v2881_v7 = vmul.f32 0.5, %v2878_v27  ;;  %v3701_v30 = vld [vmem:[#allocation10 + $0x2c] ss:$16 sps:$4 sm:$0xff]  }
 0xd81   :  { %v4968_v16 = vadd.f32 %v2884_v15, %v2883_v0  ;;  %v5117_v0 = vld [vmem:[#allocation37_spill] sm:$0xff] }
 0xd82   :  { %v1927_v15 = vadd.f32 %v5117_v0, %v4678_v44 }
 0xd83   :  { %3622 = vtanh.f32 %v4968_v16 }
 0xd90   :  { %v3623_v63 = vpop.eup %3622 }
 0xd91   :  { %v2887_v6 = vmul.f32 %v3623_v63, %v2881_v7  ;;  %v5118_v7 = vld [vmem:[#allocation38_spill] sm:$0xff] }
 0xd92   :  { %v2000_v63 = vadd.f32 %v5118_v7, %v4688_v59 }
 0xd93   :  { %2889 = vst [vmem:[#allocation12 + $0x28] sm:$0xff] %v2887_v6  ;;  %v2894_v1 = vpack.c.bf16 %v2887_v6, %v2887_v6 }
 0xd95   :  { %2928 = vmatmul.mubr.bf16.vlgmr.msra.gmra.mxu0 %v2894_v1  ;;  %2969 = vmatmul.mubr.bf16.vlgmr.msra.gmra.mxu1 %v2894_v1 }
 0xd96   :  { %3007 = vmatpush1.bf16.msra.mxu0 %v4883_v29  ;;  %3048 = vmatpush1.bf16.msra.mxu1 %v4886_v34  ;;  %v3702_v29 = vld [vmem:[#allocation10 + $0x20] ss:$16 sps:$4 sm:$0xff]   ;;  %v3703_v34 = vld [vmem:[#allocation10 + $0x28] ss:$16 sps:$4 sm:$0xff]  }
 0xd97   :  { %3008 = vmatprep.subr.bf16.mxu0 %v4889_v46  ;;  %3049 = vmatprep.subr.bf16.mxu1 %v4892_v36  ;;  %v3704_v46 = vld [vmem:[#allocation10 + $0x4] ss:$16 sps:$4 sm:$0xff]   ;;  %v3705_v36 = vld [vmem:[#allocation10 + $0xc] ss:$16 sps:$4 sm:$0xff]  }
 0xd98   :  { %3038 = vmatprep.mubr.bf16.mxu0 %v5051_v21  ;;  %3079 = vmatprep.mubr.bf16.mxu1 %v5051_v21  ;;  %v3700_v21 = vld [vmem:[#allocation10 + $0x24] ss:$16 sps:$4 sm:$0xff]  }
 0xd9a   :  { %3009 = vmatpush1.bf16.msra.mxu0 %v4897_v8  ;;  %3050 = vmatpush1.bf16.msra.mxu1 %v4900_v24  ;;  %v3706_v8 = vld [vmem:[#allocation10] ss:$16 sps:$4 sm:$0xff]   ;;  %v3707_v24 = vld [vmem:[#allocation10 + $0x8] ss:$16 sps:$4 sm:$0xff]  }
 0xd9b   :  { %3010 = vmatprep.subr.bf16.mxu0 %v4903_v17  ;;  %3051 = vmatprep.subr.bf16.mxu1 %v4906_v62  ;;  %v5112_v17 = vld [vmem:[#allocation33_spill] sm:$0xff] }
 0xd9c   :  { %v1921_v62 = vadd.f32 %v5112_v17, %v4670_v9 }
 0xd9e   :  { %3011 = vmatpush1.bf16.msra.mxu0 %v4909_v19  ;;  %3052 = vmatpush1.bf16.msra.mxu1 %v4912_v49 }
 0xd9f   :  { %3012 = vmatprep.subr.bf16.mxu0 %v4915_v18  ;;  %3053 = vmatprep.subr.bf16.mxu1 %v4918_v25  ;;  %v5113_v18 = vld [vmem:[#allocation34_spill] sm:$0xff] }
 0xda0   :  { %v1923_v25 = vadd.f32 %v5113_v18, %v4678_v44 }
 0xda2   :  { %3013 = vmatpush1.bf16.msra.mxu0 %v4921_v39  ;;  %3054 = vmatpush1.bf16.msra.mxu1 %v4924_v40 }
 0xda3   :  { %3014 = vmatprep.subr.bf16.mxu0 %v4927_v11  ;;  %3055 = vmatprep.subr.bf16.mxu1 %v4930_v20  ;;  %v5114_v20 = vld [vmem:[#allocation36_spill] sm:$0xff] }
 0xda6   :  { %3015 = vmatpush1.bf16.msra.mxu0 %v4933_v23  ;;  %3056 = vmatpush1.bf16.msra.mxu1 %v4936_v26  ;;  %v1996_v23 = vadd.f32 %v5114_v20, %v4688_v59 }
 0xda7   :  { %3016 = vmatprep.subr.bf16.mxu0 %v4939_v33  ;;  %3057 = vmatprep.subr.bf16.mxu1 %v4942_v13 }
 0xdaa   :  { %3017 = vmatpush1.bf16.msra.mxu0 %v4945_v14  ;;  %3058 = vmatpush1.bf16.msra.mxu1 %v4948_v31 }
 0xdab   :  { %3018 = vmatprep.subr.bf16.mxu0 %v3700_v21  ;;  %3059 = vmatprep.subr.bf16.mxu1 %v3701_v30 }
 0xdae   :  { %3019 = vmatpush1.bf16.msra.mxu0 %v3702_v29  ;;  %3060 = vmatpush1.bf16.msra.mxu1 %v3703_v34 }
 0xdaf   :  { %3020 = vmatprep.subr.bf16.mxu0 %v3704_v46  ;;  %3061 = vmatprep.subr.bf16.mxu1 %v3705_v36  ;;  %v5119_v36 = vld [vmem:[#allocation17_spill] sm:$0xff] }
 0xdb0   :  { %v1998_v44 = vadd.f32 %v5119_v36, %v4693_v48 }
 0xdb2   :  { %3021 = vmatpush1.bf16.msra.mxu0 %v3706_v8  ;;  %3062 = vmatpush1.bf16.msra.mxu1 %v3707_v24 }
 0xe55   :  { %v2929_v19 = vpop.f32.mrf.mxu0  ;;  %v2970_v49 = vpop.f32.mrf.mxu1 }
 0xe56   :  { %v2977_v39 = vadd.f32 %v2929_v19, %v1921_v62  ;;  %v2979_v38 = vadd.f32 %v2970_v49, %v1994_v4 }
 0xe57   :  { %v2931_v40 = vpop.f32.mrf.mxu0  ;;  %v2972_v11 = vpop.f32.mrf.mxu1 }
 0xe58   :  { %v2981_v26 = vmul.f32 0.5, %v2977_v39  ;;  %v2978_v33 = vadd.f32 %v2931_v40, %v1923_v25  ;;  %v2980_v53 = vadd.f32 %v2972_v11, %v1996_v23  ;;  %v2983_v5 = vmul.f32 0.5, %v2979_v38 }
 0xe59   :  { %v2933_v13 = vpop.f32.mrf.mxu0  ;;  %v2974_v14 = vpop.f32.mrf.mxu1 }
 0xe5a   :  { %3624 = vtanh.f32 %v2981_v26  ;;  %v2982_v31 = vmul.f32 0.5, %v2978_v33 }
 0xe5b   :  { %v2934_v2 = vpop.f32.mrf.mxu0  ;;  %v2975_v3 = vpop.f32.mrf.mxu1 }
 0xe5c   :  { %3626 = vtanh.f32 %v2982_v31 }
 0xe5d   :  { %3628 = vtanh.f32 %v2980_v53 }
 0xe5e   :  { %3630 = vtanh.f32 %v2983_v5 }
 0xe67   :  { %v3625_v12 = vpop.eup %3624 }
 0xe68   :  { %v2987_v41 = vadd.f32 1.0, %v3625_v12 }
 0xe69   :  { %v3627_v28 = vpop.eup %3626 }
 0xe6a   :  { %v2990_v42 = vmul.f32 0.5, %v2987_v41  ;;  %v2988_v50 = vadd.f32 1.0, %v3627_v28  ;;  %v3629_v51 = vpop.eup %3628 }
 0xe6b   :  { %v3631_v22 = vpop.eup %3630 }
 0xe6c   :  { %v2991_v52 = vmul.f32 0.5, %v2988_v50  ;;  %v2995_v54 = vmul.f32 %v3629_v51, %v2990_v42  ;;  %v2989_v43 = vadd.f32 1.0, %v3631_v22 }
 0xe6e   :  { %v2994_v60 = vmul.f32 %v2991_v52, %v4968_v16  ;;  %v2992_v35 = vmul.f32 0.5, %v2989_v43 }
 0xe70   :  { %v2996_v61 = vadd.f32 %v2995_v54, %v2994_v60 }
 0xe72   :  { %3632 = vtanh.f32 %v2996_v61 }
 0xe7f   :  { %v3633_v58 = vpop.eup %3632 }
 0xe80   :  { %v2998_v45 = vmul.f32 %v3633_v58, %v2992_v35 }
 0xe82   :  { %3000 = vst [vmem:[#allocation12 + $0x30] sm:$0xff] %v2998_v45  ;;  %v3005_v32 = vpack.c.bf16 %v2998_v45, %v2998_v45 }
 0xe84   :  { %3039 = vmatmul.mubr.bf16.vlgmr.msra.gmra.mxu0 %v3005_v32  ;;  %3080 = vmatmul.mubr.bf16.vlgmr.msra.gmra.mxu1 %v3005_v32 }
 0xf44   :  { %v3040_v56 = vpop.f32.mrf.mxu0  ;;  %v3081_v47 = vpop.f32.mrf.mxu1 }
 0xf45   :  { %v3088_v16 = vadd.f32 %v3040_v56, %v1925_v10  ;;  %v3090_v8 = vadd.f32 %v3081_v47, %v1998_v44 }
 0xf46   :  { %v3042_v57 = vpop.f32.mrf.mxu0  ;;  %v3083_v27 = vpop.f32.mrf.mxu1 }
 0xf47   :  { %v3092_v6 = vmul.f32 0.5, %v3088_v16  ;;  %v3089_v1 = vadd.f32 %v3042_v57, %v1927_v15  ;;  %v3091_v34 = vadd.f32 %v3083_v27, %v2000_v63  ;;  %v3094_v24 = vmul.f32 0.5, %v3090_v8 }
 0xf48   :  { %v3044_v21 = vpop.f32.mrf.mxu0  ;;  %v3085_v30 = vpop.f32.mrf.mxu1 }
 0xf49   :  { %3634 = vtanh.f32 %v3092_v6  ;;  %v3093_v29 = vmul.f32 0.5, %v3089_v1 }
 0xf4a   :  { %v3045_v46 = vpop.f32.mrf.mxu0  ;;  %v3086_v9 = vpop.f32.mrf.mxu1 }
 0xf4b   :  { %3636 = vtanh.f32 %v3093_v29 }
 0xf4c   :  { %3638 = vtanh.f32 %v3091_v34 }
 0xf4d   :  { %3640 = vtanh.f32 %v3094_v24 }
 0xf56   :  { %v3635_v17 = vpop.eup %3634 }
 0xf57   :  { %v3098_v62 = vadd.f32 1.0, %v3635_v17 }
 0xf58   :  { %v3637_v19 = vpop.eup %3636 }
 0xf59   :  { %v3101_v59 = vmul.f32 0.5, %v3098_v62  ;;  %v3099_v49 = vadd.f32 1.0, %v3637_v19  ;;  %v3639_v18 = vpop.eup %3638 }
 0xf5a   :  { %v3641_v20 = vpop.eup %3640 }
 0xf5b   :  { %v3102_v25 = vmul.f32 0.5, %v3099_v49  ;;  %v3106_v39 = vmul.f32 %v3639_v18, %v3101_v59  ;;  %v3100_v23 = vadd.f32 1.0, %v3641_v20 }
 0xf5d   :  { %v3105_v40 = vmul.f32 %v3102_v25, %v2996_v61  ;;  %v3103_v26 = vmul.f32 0.5, %v3100_v23 }
 0xf5f   :  { %v3107_v11 = vadd.f32 %v3106_v39, %v3105_v40 }
 0xf61   :  { %3642 = vtanh.f32 %v3107_v11 }
 0xf6e   :  { %v3643_v48 = vpop.eup %3642 }
 0xf6f   :  { %v3109_v33 = vmul.f32 %v3643_v48, %v3103_v26 }
 0xf71   :  { %3111 = vst [vmem:[#allocation12 + $0x38] sm:$0xff] %v3109_v33 }
 0xf72   :  { %3799 = shalt.err (!%p3796_p10)
}
 0xf73   :  { %s3824_s8 = smov 128   ;;  %s3825_s9 = smov 8  }
 0xf74   :  { %3123 = dma.vmem_to_hbm [thread:$0]  %s3118_s29, 1024, %s5022_s7, [#allocation6], %s3824_s8, %s3824_s8, %s3825_s9  }
 0xf75   :  { %3814 = dma.done.wait [#allocation6], 1024  }
 0xf76   :  { %3815 = vsyncadd [#allocation6], 4294966272 }
 0xf77   :  { %3127 = vsyncpa [#allocation5], 1 }
 0xf78   :  { %3128 = vsyncpa [#allocation8], 1 }
 0xf79   :  { %3129 = vsyncpa [#allocation11], 1 }
 0xf7a   :  { %3130 = vsyncpa [#allocation6], 1 }

</bundles_post_ra>
